<compile_context>
chip_gen: v7x
topology: tpu7x:2x2x1
jax: 0.10.0
libtpu: 0.0.40
codegen_flags: <defaults>
</compile_context>

<pallas_src>
import jax
import jax.numpy as jnp
import numpy as np
from jax.experimental import pallas as pl
from jax.experimental.pallas import tpu as pltpu

EPS = 1e-5


def _channel_sum(v):
    """Sum over every axis except the last; returns shape (1, C)."""
    while v.ndim > 2:
        v = jnp.sum(v, axis=0)
    return jnp.sum(v, axis=0, keepdims=True)


def _make_kernel(N, H, W, C):
    H2 = (H - 4) // 2 + 1
    W2 = (W - 4) // 2 + 1
    Hh, Wh = H // 2, W // 2
    R1 = N * H * W              # stage-1 rows (pixels)
    RS = N * Hh * Wh            # rows per spatial-parity slab (= R1 // 4)

    def kernel(lhs1_ref, res_ref, w1_ref, g1_ref, bt1_ref,
               w2_ref, g2_ref, bt2_ref, out_ref, y1_scr):
        # ---- stage 1: conv1 (3x3/s1/p1) as ONE K=9C matmul, BN1, +res, ReLU ----
        acc1 = jnp.dot(lhs1_ref[...], w1_ref[...],
                       preferred_element_type=jnp.float32)            # (R1, C)
        inv_r1 = 1.0 / R1
        mean1 = _channel_sum(acc1) * inv_r1
        var1 = _channel_sum(acc1 * acc1) * inv_r1 - mean1 * mean1
        scale1 = g1_ref[...] * jax.lax.rsqrt(var1 + EPS)               # (1, C)
        shift1 = bt1_ref[...] - mean1 * scale1                         # (1, C)
        y1_scr[...] = jnp.maximum(acc1 * scale1 + shift1 + res_ref[...], 0.0)

        # ---- stage 2: conv2 (4x4/s2/valid) on the VMEM-resident activation ----
        # Rows of y1 are ordered (h%2, w%2, n, h//2, w//2): parity slab
        # p = 2*(h%2) + (w%2) is the contiguous row block [p*RS, (p+1)*RS),
        # laid out as an (N, H//2, W//2, C) grid.  Writing the 4x4 taps as
        # (ky, kx) = (2*qy + r, 2*qx + c) turns the strided conv into 16 shifted
        # matmuls over whole slabs plus contiguous (qy, qx) shift-adds.
        slabs = [y1_scr[p * RS:(p + 1) * RS, :] for p in range(4)]     # (RS, C)

        accs = []
        for qy in range(2):
            for qx in range(2):
                a = None
                for r in range(2):
                    for c in range(2):
                        d = jnp.dot(slabs[2 * r + c],
                                    w2_ref[2 * qy + r, 2 * qx + c],
                                    preferred_element_type=jnp.float32)
                        a = d if a is None else a + d
                accs.append(a.reshape(N, Hh, Wh, C))

        acc2 = (accs[0][:, 0:H2, 0:W2, :] +
                accs[1][:, 0:H2, 1:W2 + 1, :] +
                accs[2][:, 1:H2 + 1, 0:W2, :] +
                accs[3][:, 1:H2 + 1, 1:W2 + 1, :])                     # (N,H2,W2,C)

        inv_r2 = 1.0 / (N * H2 * W2)
        mean2 = _channel_sum(acc2) * inv_r2
        var2 = _channel_sum(acc2 * acc2) * inv_r2 - mean2 * mean2
        scale2 = g2_ref[...] * jax.lax.rsqrt(var2 + EPS)               # (1, C)
        shift2 = bt2_ref[...] - mean2 * scale2                         # (1, C)
        out_ref[...] = jnp.maximum(acc2 * scale2.reshape(1, 1, 1, C)
                                   + shift2.reshape(1, 1, 1, C), 0.0)

    return kernel, H2, W2


def _parity_rows(t):
    """(N, H, W, D) -> (N*H*W, D), rows ordered (h%2, w%2, n, h//2, w//2)."""
    N, H, W, D = t.shape
    t = t.reshape(N, H // 2, 2, W // 2, 2, D)
    t = jnp.transpose(t, (2, 4, 0, 1, 3, 5))
    return t.reshape(N * H * W, D)


def resblock_forward(x_nchw, params):
    """ResBlock forward.  x_nchw: (N, C, H, W) float32 -> (N, C, H2, W2)."""
    N, C, H, W = x_nchw.shape
    assert H % 2 == 0 and W % 2 == 0 and H >= 4 and W >= 4

    x = jnp.transpose(x_nchw, (0, 2, 3, 1))                           # NHWC
    xpad = jnp.pad(x, ((0, 0), (1, 1), (1, 1), (0, 0)))               # pad=1 for 3x3

    # conv1 im2col LHS (rows in parity order) and matching flat residual.
    taps = [xpad[:, dy:dy + H, dx:dx + W, :]
            for dy in range(3) for dx in range(3)]
    lhs1 = _parity_rows(jnp.concatenate(taps, axis=-1))                # (N*H*W, 9C)
    res = _parity_rows(x)                                              # (N*H*W, C)

    # Weights.  Conv biases are intentionally dropped: with training-mode BN
    # immediately after each conv, a per-channel bias cancels exactly in the
    # batch-mean subtraction.
    w1 = jnp.transpose(params["conv1_w"], (2, 3, 1, 0)).reshape(9 * C, C)
    w2 = jnp.transpose(params["conv2_w"], (2, 3, 1, 0))                # (4,4,Cin,Cout)
    g1 = params["bn1_g"].reshape(1, C)
    bt1 = params["bn1_b"].reshape(1, C)
    g2 = params["bn2_g"].reshape(1, C)
    bt2 = params["bn2_b"].reshape(1, C)

    kernel, H2, W2 = _make_kernel(N, H, W, C)
    R1, R2 = N * H * W, N * H2 * W2

    flops = (2 * R1 * (9 * C) * C           # conv1 matmul
             + 2 * 16 * (R1 // 4) * C * C   # conv2 shifted matmuls
             + 14 * R1 * C + 10 * R2 * C)   # BN / residual / ReLU epilogues
    bytes_accessed = 4 * (lhs1.size + res.size + w1.size + w2.size
                          + 4 * C + R2 * C)

    vmem = pl.BlockSpec(memory_space=pltpu.MemorySpace.VMEM)
    out_nhwc = pl.pallas_call(
        kernel,
        out_shape=jax.ShapeDtypeStruct((N, H2, W2, C), jnp.float32),
        in_specs=[vmem] * 8,
        out_specs=vmem,
        scratch_shapes=[pltpu.VMEM((R1, C), jnp.float32)],
        cost_estimate=pl.CostEstimate(flops=flops, transcendentals=2 * C,
                                      bytes_accessed=bytes_accessed),
    )(lhs1, res, w1, g1, bt1, w2, g2, bt2)

    return jnp.transpose(out_nhwc, (0, 3, 1, 2))                       # NCHW


# ---------------------------------------------------------------------------
# Pure-JAX reference (lax.conv, with biases, two-pass BN) for correctness.
# ---------------------------------------------------------------------------
def _ref_forward(x_nchw, params):
    x = jnp.transpose(x_nchw, (0, 2, 3, 1))

    def bn(v, g, b):
        m = v.mean(axis=(0, 1, 2), keepdims=True)
        var = ((v - m) ** 2).mean(axis=(0, 1, 2), keepdims=True)
        return (v - m) * jax.lax.rsqrt(var + EPS) * g + b

    w1 = jnp.transpose(params["conv1_w"], (2, 3, 1, 0))
    c1 = jax.lax.conv_general_dilated(
        x, w1, (1, 1), [(1, 1), (1, 1)],
        dimension_numbers=("NHWC", "HWIO", "NHWC")) + params["conv1_b"]
    h = jnp.maximum(bn(c1, params["bn1_g"], params["bn1_b"]) + x, 0.0)

    w2 = jnp.transpose(params["conv2_w"], (2, 3, 1, 0))
    c2 = jax.lax.conv_general_dilated(
        h, w2, (2, 2), "VALID",
        dimension_numbers=("NHWC", "HWIO", "NHWC")) + params["conv2_b"]
    o = jnp.maximum(bn(c2, params["bn2_g"], params["bn2_b"]), 0.0)
    return jnp.transpose(o, (0, 3, 1, 2))


if __name__ == "__main__":
    key = jax.random.PRNGKey(0)
    N, C, H, W = 2, 32, 16, 16          # num_hidden = 32
    ks = jax.random.split(key, 9)

    params = {
        "conv1_w": 0.1 * jax.random.normal(ks[0], (C, C, 3, 3), jnp.float32),
        "conv1_b": 0.1 * jax.random.normal(ks[1], (C,), jnp.float32),
        "bn1_g": 1.0 + 0.1 * jax.random.normal(ks[2], (C,), jnp.float32),
        "bn1_b": 0.1 * jax.random.normal(ks[3], (C,), jnp.float32),
        "conv2_w": 0.1 * jax.random.normal(ks[4], (C, C, 4, 4), jnp.float32),
        "conv2_b": 0.1 * jax.random.normal(ks[5], (C,), jnp.float32),
        "bn2_g": 1.0 + 0.1 * jax.random.normal(ks[6], (C,), jnp.float32),
        "bn2_b": 0.1 * jax.random.normal(ks[7], (C,), jnp.float32),
    }
    x = jax.random.normal(ks[8], (N, C, H, W), jnp.float32)

    fwd = jax.jit(resblock_forward)
    out = jax.block_until_ready(fwd(x, params))

    H2 = (H - 4) // 2 + 1
    assert out.shape == (N, C, H2, H2), out.shape

    ref = _ref_forward(x, params)
    np.testing.assert_allclose(np.asarray(out), np.asarray(ref),
                               rtol=1e-3, atol=1e-3)
    print("KERNEL_OK")
</pallas_src>

<mosaic_0001>
module attributes {stable_mosaic.version = 11 : i64} {
  func.func @kernel(%arg0: memref<512x288xf32, #tpu.memory_space<vmem>>, %arg1: memref<512x32xf32, #tpu.memory_space<vmem>>, %arg2: memref<288x32xf32, #tpu.memory_space<vmem>>, %arg3: memref<1x32xf32, #tpu.memory_space<vmem>>, %arg4: memref<1x32xf32, #tpu.memory_space<vmem>>, %arg5: memref<4x4x32x32xf32, #tpu.memory_space<vmem>>, %arg6: memref<1x32xf32, #tpu.memory_space<vmem>>, %arg7: memref<1x32xf32, #tpu.memory_space<vmem>>, %arg8: memref<2x7x7x32xf32, #tpu.memory_space<vmem>>, %arg9: memref<512x32xf32, #tpu.memory_space<vmem>>) attributes {dimension_semantics = [], scalar_prefetch = 0 : i64, scratch_operands = 1 : i64, tpu.core_type = #tpu.core_type<tc>} {
    %c0 = arith.constant 0 : index
    %c0_0 = arith.constant 0 : index
    %0 = vector.load %arg0[%c0, %c0_0] : memref<512x288xf32, #tpu.memory_space<vmem>>, vector<512x288xf32>
    %c0_1 = arith.constant 0 : index
    %c0_2 = arith.constant 0 : index
    %1 = vector.load %arg2[%c0_1, %c0_2] : memref<288x32xf32, #tpu.memory_space<vmem>>, vector<288x32xf32>
    %cst = arith.constant dense<0.000000e+00> : vector<512x32xf32>
    %2 = tpu.matmul %0, %1, %cst {dimension_numbers = #tpu.dot_dimension_numbers<[1], [0], [0], [1], [0, 0, 1, 1], [], []>} : vector<512x288xf32>, vector<288x32xf32>, vector<512x32xf32> -> vector<512x32xf32>
    %cst_3 = arith.constant dense<0.000000e+00> : vector<32xf32>
    %3 = vector.multi_reduction <add>, %2, %cst_3 [0] : vector<512x32xf32> to vector<32xf32>
    %4 = vector.shape_cast %3 : vector<32xf32> to vector<1x32xf32>
    %cst_4 = arith.constant 0.001953125 : f32
    %5 = vector.broadcast %cst_4 : f32 to vector<1x32xf32>
    %6 = arith.mulf %4, %5 : vector<1x32xf32>
    %7 = arith.mulf %2, %2 : vector<512x32xf32>
    %cst_5 = arith.constant dense<0.000000e+00> : vector<32xf32>
    %8 = vector.multi_reduction <add>, %7, %cst_5 [0] : vector<512x32xf32> to vector<32xf32>
    %9 = vector.shape_cast %8 : vector<32xf32> to vector<1x32xf32>
    %cst_6 = arith.constant 0.001953125 : f32
    %10 = vector.broadcast %cst_6 : f32 to vector<1x32xf32>
    %11 = arith.mulf %9, %10 : vector<1x32xf32>
    %12 = arith.mulf %6, %6 : vector<1x32xf32>
    %13 = arith.subf %11, %12 : vector<1x32xf32>
    %c0_7 = arith.constant 0 : index
    %c0_8 = arith.constant 0 : index
    %14 = vector.load %arg3[%c0_7, %c0_8] : memref<1x32xf32, #tpu.memory_space<vmem>>, vector<1x32xf32>
    %cst_9 = arith.constant 9.99999974E-6 : f32
    %15 = vector.broadcast %cst_9 : f32 to vector<1x32xf32>
    %16 = arith.addf %13, %15 : vector<1x32xf32>
    %17 = math.rsqrt %16 : vector<1x32xf32>
    %18 = arith.mulf %14, %17 : vector<1x32xf32>
    %c0_10 = arith.constant 0 : index
    %c0_11 = arith.constant 0 : index
    %19 = vector.load %arg4[%c0_10, %c0_11] : memref<1x32xf32, #tpu.memory_space<vmem>>, vector<1x32xf32>
    %20 = arith.mulf %6, %18 : vector<1x32xf32>
    %21 = arith.subf %19, %20 : vector<1x32xf32>
    %22 = vector.broadcast %18 : vector<1x32xf32> to vector<512x32xf32>
    %23 = arith.mulf %2, %22 : vector<512x32xf32>
    %24 = vector.broadcast %21 : vector<1x32xf32> to vector<512x32xf32>
    %25 = arith.addf %23, %24 : vector<512x32xf32>
    %c0_12 = arith.constant 0 : index
    %c0_13 = arith.constant 0 : index
    %26 = vector.load %arg1[%c0_12, %c0_13] : memref<512x32xf32, #tpu.memory_space<vmem>>, vector<512x32xf32>
    %27 = arith.addf %25, %26 : vector<512x32xf32>
    %cst_14 = arith.constant 0.000000e+00 : f32
    %28 = vector.broadcast %cst_14 : f32 to vector<512x32xf32>
    %29 = arith.maximumf %27, %28 : vector<512x32xf32>
    %c0_15 = arith.constant 0 : index
    %c0_16 = arith.constant 0 : index
    %30 = vector.load %arg9[%c0_15, %c0_16] : memref<512x32xf32, #tpu.memory_space<vmem>>, vector<512x32xf32>
    tpu.vector_store %arg9[%c0_15, %c0_16], %29 {strides = array<i32>} : memref<512x32xf32, #tpu.memory_space<vmem>>, vector<512x32xf32>,
    %c0_17 = arith.constant 0 : index
    %c0_18 = arith.constant 0 : index
    %31 = vector.load %arg9[%c0_17, %c0_18] : memref<512x32xf32, #tpu.memory_space<vmem>>, vector<128x32xf32>
    %c128 = arith.constant 128 : index
    %c0_19 = arith.constant 0 : index
    %32 = vector.load %arg9[%c128, %c0_19] : memref<512x32xf32, #tpu.memory_space<vmem>>, vector<128x32xf32>
    %c256 = arith.constant 256 : index
    %c0_20 = arith.constant 0 : index
    %33 = vector.load %arg9[%c256, %c0_20] : memref<512x32xf32, #tpu.memory_space<vmem>>, vector<128x32xf32>
    %c384 = arith.constant 384 : index
    %c0_21 = arith.constant 0 : index
    %34 = vector.load %arg9[%c384, %c0_21] : memref<512x32xf32, #tpu.memory_space<vmem>>, vector<128x32xf32>
    %c0_22 = arith.constant 0 : index
    %c0_23 = arith.constant 0 : index
    %c0_24 = arith.constant 0 : index
    %c0_25 = arith.constant 0 : index
    %35 = vector.load %arg5[%c0_22, %c0_23, %c0_24, %c0_25] : memref<4x4x32x32xf32, #tpu.memory_space<vmem>>, vector<1x1x32x32xf32>
    %36 = vector.shape_cast %35 : vector<1x1x32x32xf32> to vector<32x32xf32>
    %cst_26 = arith.constant dense<0.000000e+00> : vector<128x32xf32>
    %37 = tpu.matmul %31, %36, %cst_26 {dimension_numbers = #tpu.dot_dimension_numbers<[1], [0], [0], [1], [0, 0, 1, 1], [], []>} : vector<128x32xf32>, vector<32x32xf32>, vector<128x32xf32> -> vector<128x32xf32>
    %c0_27 = arith.constant 0 : index
    %c1 = arith.constant 1 : index
    %c0_28 = arith.constant 0 : index
    %c0_29 = arith.constant 0 : index
    %38 = vector.load %arg5[%c0_27, %c1, %c0_28, %c0_29] : memref<4x4x32x32xf32, #tpu.memory_space<vmem>>, vector<1x1x32x32xf32>
    %39 = vector.shape_cast %38 : vector<1x1x32x32xf32> to vector<32x32xf32>
    %cst_30 = arith.constant dense<0.000000e+00> : vector<128x32xf32>
    %40 = tpu.matmul %32, %39, %cst_30 {dimension_numbers = #tpu.dot_dimension_numbers<[1], [0], [0], [1], [0, 0, 1, 1], [], []>} : vector<128x32xf32>, vector<32x32xf32>, vector<128x32xf32> -> vector<128x32xf32>
    %41 = arith.addf %37, %40 : vector<128x32xf32>
    %c1_31 = arith.constant 1 : index
    %c0_32 = arith.constant 0 : index
    %c0_33 = arith.constant 0 : index
    %c0_34 = arith.constant 0 : index
    %42 = vector.load %arg5[%c1_31, %c0_32, %c0_33, %c0_34] : memref<4x4x32x32xf32, #tpu.memory_space<vmem>>, vector<1x1x32x32xf32>
    %43 = vector.shape_cast %42 : vector<1x1x32x32xf32> to vector<32x32xf32>
    %cst_35 = arith.constant dense<0.000000e+00> : vector<128x32xf32>
    %44 = tpu.matmul %33, %43, %cst_35 {dimension_numbers = #tpu.dot_dimension_numbers<[1], [0], [0], [1], [0, 0, 1, 1], [], []>} : vector<128x32xf32>, vector<32x32xf32>, vector<128x32xf32> -> vector<128x32xf32>
    %45 = arith.addf %41, %44 : vector<128x32xf32>
    %c1_36 = arith.constant 1 : index
    %c1_37 = arith.constant 1 : index
    %c0_38 = arith.constant 0 : index
    %c0_39 = arith.constant 0 : index
    %46 = vector.load %arg5[%c1_36, %c1_37, %c0_38, %c0_39] : memref<4x4x32x32xf32, #tpu.memory_space<vmem>>, vector<1x1x32x32xf32>
    %47 = vector.shape_cast %46 : vector<1x1x32x32xf32> to vector<32x32xf32>
    %cst_40 = arith.constant dense<0.000000e+00> : vector<128x32xf32>
    %48 = tpu.matmul %34, %47, %cst_40 {dimension_numbers = #tpu.dot_dimension_numbers<[1], [0], [0], [1], [0, 0, 1, 1], [], []>} : vector<128x32xf32>, vector<32x32xf32>, vector<128x32xf32> -> vector<128x32xf32>
    %49 = arith.addf %45, %48 : vector<128x32xf32>
    %50 = vector.shape_cast %49 : vector<128x32xf32> to vector<2x8x8x32xf32>
    %c0_41 = arith.constant 0 : index
    %c2 = arith.constant 2 : index
    %c0_42 = arith.constant 0 : index
    %c0_43 = arith.constant 0 : index
    %51 = vector.load %arg5[%c0_41, %c2, %c0_42, %c0_43] : memref<4x4x32x32xf32, #tpu.memory_space<vmem>>, vector<1x1x32x32xf32>
    %52 = vector.shape_cast %51 : vector<1x1x32x32xf32> to vector<32x32xf32>
    %cst_44 = arith.constant dense<0.000000e+00> : vector<128x32xf32>
    %53 = tpu.matmul %31, %52, %cst_44 {dimension_numbers = #tpu.dot_dimension_numbers<[1], [0], [0], [1], [0, 0, 1, 1], [], []>} : vector<128x32xf32>, vector<32x32xf32>, vector<128x32xf32> -> vector<128x32xf32>
    %c0_45 = arith.constant 0 : index
    %c3 = arith.constant 3 : index
    %c0_46 = arith.constant 0 : index
    %c0_47 = arith.constant 0 : index
    %54 = vector.load %arg5[%c0_45, %c3, %c0_46, %c0_47] : memref<4x4x32x32xf32, #tpu.memory_space<vmem>>, vector<1x1x32x32xf32>
    %55 = vector.shape_cast %54 : vector<1x1x32x32xf32> to vector<32x32xf32>
    %cst_48 = arith.constant dense<0.000000e+00> : vector<128x32xf32>
    %56 = tpu.matmul %32, %55, %cst_48 {dimension_numbers = #tpu.dot_dimension_numbers<[1], [0], [0], [1], [0, 0, 1, 1], [], []>} : vector<128x32xf32>, vector<32x32xf32>, vector<128x32xf32> -> vector<128x32xf32>
    %57 = arith.addf %53, %56 : vector<128x32xf32>
    %c1_49 = arith.constant 1 : index
    %c2_50 = arith.constant 2 : index
    %c0_51 = arith.constant 0 : index
    %c0_52 = arith.constant 0 : index
    %58 = vector.load %arg5[%c1_49, %c2_50, %c0_51, %c0_52] : memref<4x4x32x32xf32, #tpu.memory_space<vmem>>, vector<1x1x32x32xf32>
    %59 = vector.shape_cast %58 : vector<1x1x32x32xf32> to vector<32x32xf32>
    %cst_53 = arith.constant dense<0.000000e+00> : vector<128x32xf32>
    %60 = tpu.matmul %33, %59, %cst_53 {dimension_numbers = #tpu.dot_dimension_numbers<[1], [0], [0], [1], [0, 0, 1, 1], [], []>} : vector<128x32xf32>, vector<32x32xf32>, vector<128x32xf32> -> vector<128x32xf32>
    %61 = arith.addf %57, %60 : vector<128x32xf32>
    %c1_54 = arith.constant 1 : index
    %c3_55 = arith.constant 3 : index
    %c0_56 = arith.constant 0 : index
    %c0_57 = arith.constant 0 : index
    %62 = vector.load %arg5[%c1_54, %c3_55, %c0_56, %c0_57] : memref<4x4x32x32xf32, #tpu.memory_space<vmem>>, vector<1x1x32x32xf32>
    %63 = vector.shape_cast %62 : vector<1x1x32x32xf32> to vector<32x32xf32>
    %cst_58 = arith.constant dense<0.000000e+00> : vector<128x32xf32>
    %64 = tpu.matmul %34, %63, %cst_58 {dimension_numbers = #tpu.dot_dimension_numbers<[1], [0], [0], [1], [0, 0, 1, 1], [], []>} : vector<128x32xf32>, vector<32x32xf32>, vector<128x32xf32> -> vector<128x32xf32>
    %65 = arith.addf %61, %64 : vector<128x32xf32>
    %66 = vector.shape_cast %65 : vector<128x32xf32> to vector<2x8x8x32xf32>
    %c2_59 = arith.constant 2 : index
    %c0_60 = arith.constant 0 : index
    %c0_61 = arith.constant 0 : index
    %c0_62 = arith.constant 0 : index
    %67 = vector.load %arg5[%c2_59, %c0_60, %c0_61, %c0_62] : memref<4x4x32x32xf32, #tpu.memory_space<vmem>>, vector<1x1x32x32xf32>
    %68 = vector.shape_cast %67 : vector<1x1x32x32xf32> to vector<32x32xf32>
    %cst_63 = arith.constant dense<0.000000e+00> : vector<128x32xf32>
    %69 = tpu.matmul %31, %68, %cst_63 {dimension_numbers = #tpu.dot_dimension_numbers<[1], [0], [0], [1], [0, 0, 1, 1], [], []>} : vector<128x32xf32>, vector<32x32xf32>, vector<128x32xf32> -> vector<128x32xf32>
    %c2_64 = arith.constant 2 : index
    %c1_65 = arith.constant 1 : index
    %c0_66 = arith.constant 0 : index
    %c0_67 = arith.constant 0 : index
    %70 = vector.load %arg5[%c2_64, %c1_65, %c0_66, %c0_67] : memref<4x4x32x32xf32, #tpu.memory_space<vmem>>, vector<1x1x32x32xf32>
    %71 = vector.shape_cast %70 : vector<1x1x32x32xf32> to vector<32x32xf32>
    %cst_68 = arith.constant dense<0.000000e+00> : vector<128x32xf32>
    %72 = tpu.matmul %32, %71, %cst_68 {dimension_numbers = #tpu.dot_dimension_numbers<[1], [0], [0], [1], [0, 0, 1, 1], [], []>} : vector<128x32xf32>, vector<32x32xf32>, vector<128x32xf32> -> vector<128x32xf32>
    %73 = arith.addf %69, %72 : vector<128x32xf32>
    %c3_69 = arith.constant 3 : index
    %c0_70 = arith.constant 0 : index
    %c0_71 = arith.constant 0 : index
    %c0_72 = arith.constant 0 : index
    %74 = vector.load %arg5[%c3_69, %c0_70, %c0_71, %c0_72] : memref<4x4x32x32xf32, #tpu.memory_space<vmem>>, vector<1x1x32x32xf32>
    %75 = vector.shape_cast %74 : vector<1x1x32x32xf32> to vector<32x32xf32>
    %cst_73 = arith.constant dense<0.000000e+00> : vector<128x32xf32>
    %76 = tpu.matmul %33, %75, %cst_73 {dimension_numbers = #tpu.dot_dimension_numbers<[1], [0], [0], [1], [0, 0, 1, 1], [], []>} : vector<128x32xf32>, vector<32x32xf32>, vector<128x32xf32> -> vector<128x32xf32>
    %77 = arith.addf %73, %76 : vector<128x32xf32>
    %c3_74 = arith.constant 3 : index
    %c1_75 = arith.constant 1 : index
    %c0_76 = arith.constant 0 : index
    %c0_77 = arith.constant 0 : index
    %78 = vector.load %arg5[%c3_74, %c1_75, %c0_76, %c0_77] : memref<4x4x32x32xf32, #tpu.memory_space<vmem>>, vector<1x1x32x32xf32>
    %79 = vector.shape_cast %78 : vector<1x1x32x32xf32> to vector<32x32xf32>
    %cst_78 = arith.constant dense<0.000000e+00> : vector<128x32xf32>
    %80 = tpu.matmul %34, %79, %cst_78 {dimension_numbers = #tpu.dot_dimension_numbers<[1], [0], [0], [1], [0, 0, 1, 1], [], []>} : vector<128x32xf32>, vector<32x32xf32>, vector<128x32xf32> -> vector<128x32xf32>
    %81 = arith.addf %77, %80 : vector<128x32xf32>
    %82 = vector.shape_cast %81 : vector<128x32xf32> to vector<2x8x8x32xf32>
    %c2_79 = arith.constant 2 : index
    %c2_80 = arith.constant 2 : index
    %c0_81 = arith.constant 0 : index
    %c0_82 = arith.constant 0 : index
    %83 = vector.load %arg5[%c2_79, %c2_80, %c0_81, %c0_82] : memref<4x4x32x32xf32, #tpu.memory_space<vmem>>, vector<1x1x32x32xf32>
    %84 = vector.shape_cast %83 : vector<1x1x32x32xf32> to vector<32x32xf32>
    %cst_83 = arith.constant dense<0.000000e+00> : vector<128x32xf32>
    %85 = tpu.matmul %31, %84, %cst_83 {dimension_numbers = #tpu.dot_dimension_numbers<[1], [0], [0], [1], [0, 0, 1, 1], [], []>} : vector<128x32xf32>, vector<32x32xf32>, vector<128x32xf32> -> vector<128x32xf32>
    %c2_84 = arith.constant 2 : index
    %c3_85 = arith.constant 3 : index
    %c0_86 = arith.constant 0 : index
    %c0_87 = arith.constant 0 : index
    %86 = vector.load %arg5[%c2_84, %c3_85, %c0_86, %c0_87] : memref<4x4x32x32xf32, #tpu.memory_space<vmem>>, vector<1x1x32x32xf32>
    %87 = vector.shape_cast %86 : vector<1x1x32x32xf32> to vector<32x32xf32>
    %cst_88 = arith.constant dense<0.000000e+00> : vector<128x32xf32>
    %88 = tpu.matmul %32, %87, %cst_88 {dimension_numbers = #tpu.dot_dimension_numbers<[1], [0], [0], [1], [0, 0, 1, 1], [], []>} : vector<128x32xf32>, vector<32x32xf32>, vector<128x32xf32> -> vector<128x32xf32>
    %89 = arith.addf %85, %88 : vector<128x32xf32>
    %c3_89 = arith.constant 3 : index
    %c2_90 = arith.constant 2 : index
    %c0_91 = arith.constant 0 : index
    %c0_92 = arith.constant 0 : index
    %90 = vector.load %arg5[%c3_89, %c2_90, %c0_91, %c0_92] : memref<4x4x32x32xf32, #tpu.memory_space<vmem>>, vector<1x1x32x32xf32>
    %91 = vector.shape_cast %90 : vector<1x1x32x32xf32> to vector<32x32xf32>
    %cst_93 = arith.constant dense<0.000000e+00> : vector<128x32xf32>
    %92 = tpu.matmul %33, %91, %cst_93 {dimension_numbers = #tpu.dot_dimension_numbers<[1], [0], [0], [1], [0, 0, 1, 1], [], []>} : vector<128x32xf32>, vector<32x32xf32>, vector<128x32xf32> -> vector<128x32xf32>
    %93 = arith.addf %89, %92 : vector<128x32xf32>
    %c3_94 = arith.constant 3 : index
    %c3_95 = arith.constant 3 : index
    %c0_96 = arith.constant 0 : index
    %c0_97 = arith.constant 0 : index
    %94 = vector.load %arg5[%c3_94, %c3_95, %c0_96, %c0_97] : memref<4x4x32x32xf32, #tpu.memory_space<vmem>>, vector<1x1x32x32xf32>
    %95 = vector.shape_cast %94 : vector<1x1x32x32xf32> to vector<32x32xf32>
    %cst_98 = arith.constant dense<0.000000e+00> : vector<128x32xf32>
    %96 = tpu.matmul %34, %95, %cst_98 {dimension_numbers = #tpu.dot_dimension_numbers<[1], [0], [0], [1], [0, 0, 1, 1], [], []>} : vector<128x32xf32>, vector<32x32xf32>, vector<128x32xf32> -> vector<128x32xf32>
    %97 = arith.addf %93, %96 : vector<128x32xf32>
    %98 = vector.shape_cast %97 : vector<128x32xf32> to vector<2x8x8x32xf32>
    %99 = vector.extract_strided_slice %50 {offsets = [0, 0, 0, 0], sizes = [2, 7, 7, 32], strides = [1, 1, 1, 1]} : vector<2x8x8x32xf32> to vector<2x7x7x32xf32>
    %100 = vector.extract_strided_slice %66 {offsets = [0, 0, 1, 0], sizes = [2, 7, 7, 32], strides = [1, 1, 1, 1]} : vector<2x8x8x32xf32> to vector<2x7x7x32xf32>
    %101 = arith.addf %99, %100 : vector<2x7x7x32xf32>
    %102 = vector.extract_strided_slice %82 {offsets = [0, 1, 0, 0], sizes = [2, 7, 7, 32], strides = [1, 1, 1, 1]} : vector<2x8x8x32xf32> to vector<2x7x7x32xf32>
    %103 = arith.addf %101, %102 : vector<2x7x7x32xf32>
    %104 = vector.extract_strided_slice %98 {offsets = [0, 1, 1, 0], sizes = [2, 7, 7, 32], strides = [1, 1, 1, 1]} : vector<2x8x8x32xf32> to vector<2x7x7x32xf32>
    %105 = arith.addf %103, %104 : vector<2x7x7x32xf32>
    %cst_99 = arith.constant dense<0.000000e+00> : vector<7x7x32xf32>
    %106 = vector.multi_reduction <add>, %105, %cst_99 [0] : vector<2x7x7x32xf32> to vector<7x7x32xf32>
    %cst_100 = arith.constant dense<0.000000e+00> : vector<7x32xf32>
    %107 = vector.multi_reduction <add>, %106, %cst_100 [0] : vector<7x7x32xf32> to vector<7x32xf32>
    %cst_101 = arith.constant dense<0.000000e+00> : vector<32xf32>
    %108 = vector.multi_reduction <add>, %107, %cst_101 [0] : vector<7x32xf32> to vector<32xf32>
    %109 = vector.shape_cast %108 : vector<32xf32> to vector<1x32xf32>
    %cst_102 = arith.constant 0.0102040814 : f32
    %110 = vector.broadcast %cst_102 : f32 to vector<1x32xf32>
    %111 = arith.mulf %109, %110 : vector<1x32xf32>
    %112 = arith.mulf %105, %105 : vector<2x7x7x32xf32>
    %cst_103 = arith.constant dense<0.000000e+00> : vector<7x7x32xf32>
    %113 = vector.multi_reduction <add>, %112, %cst_103 [0] : vector<2x7x7x32xf32> to vector<7x7x32xf32>
    %cst_104 = arith.constant dense<0.000000e+00> : vector<7x32xf32>
    %114 = vector.multi_reduction <add>, %113, %cst_104 [0] : vector<7x7x32xf32> to vector<7x32xf32>
    %cst_105 = arith.constant dense<0.000000e+00> : vector<32xf32>
    %115 = vector.multi_reduction <add>, %114, %cst_105 [0] : vector<7x32xf32> to vector<32xf32>
    %116 = vector.shape_cast %115 : vector<32xf32> to vector<1x32xf32>
    %cst_106 = arith.constant 0.0102040814 : f32
    %117 = vector.broadcast %cst_106 : f32 to vector<1x32xf32>
    %118 = arith.mulf %116, %117 : vector<1x32xf32>
    %119 = arith.mulf %111, %111 : vector<1x32xf32>
    %120 = arith.subf %118, %119 : vector<1x32xf32>
    %c0_107 = arith.constant 0 : index
    %c0_108 = arith.constant 0 : index
    %121 = vector.load %arg6[%c0_107, %c0_108] : memref<1x32xf32, #tpu.memory_space<vmem>>, vector<1x32xf32>
    %cst_109 = arith.constant 9.99999974E-6 : f32
    %122 = vector.broadcast %cst_109 : f32 to vector<1x32xf32>
    %123 = arith.addf %120, %122 : vector<1x32xf32>
    %124 = math.rsqrt %123 : vector<1x32xf32>
    %125 = arith.mulf %121, %124 : vector<1x32xf32>
    %c0_110 = arith.constant 0 : index
    %c0_111 = arith.constant 0 : index
    %126 = vector.load %arg7[%c0_110, %c0_111] : memref<1x32xf32, #tpu.memory_space<vmem>>, vector<1x32xf32>
    %127 = arith.mulf %111, %125 : vector<1x32xf32>
    %128 = arith.subf %126, %127 : vector<1x32xf32>
    %129 = vector.shape_cast %125 : vector<1x32xf32> to vector<1x1x1x32xf32>
    %130 = vector.broadcast %129 : vector<1x1x1x32xf32> to vector<2x7x7x32xf32>
    %131 = arith.mulf %105, %130 : vector<2x7x7x32xf32>
    %132 = vector.shape_cast %128 : vector<1x32xf32> to vector<1x1x1x32xf32>
    %133 = vector.broadcast %132 : vector<1x1x1x32xf32> to vector<2x7x7x32xf32>
    %134 = arith.addf %131, %133 : vector<2x7x7x32xf32>
    %cst_112 = arith.constant 0.000000e+00 : f32
    %135 = vector.broadcast %cst_112 : f32 to vector<2x7x7x32xf32>
    %136 = arith.maximumf %134, %135 : vector<2x7x7x32xf32>
    %c0_113 = arith.constant 0 : index
    %c0_114 = arith.constant 0 : index
    %c0_115 = arith.constant 0 : index
    %c0_116 = arith.constant 0 : index
    %137 = vector.load %arg8[%c0_113, %c0_114, %c0_115, %c0_116] : memref<2x7x7x32xf32, #tpu.memory_space<vmem>>, vector<2x7x7x32xf32>
    tpu.vector_store %arg8[%c0_113, %c0_114, %c0_115, %c0_116], %136 {strides = array<i32>} : memref<2x7x7x32xf32, #tpu.memory_space<vmem>>, vector<2x7x7x32xf32>,
    return
  }
}

</mosaic_0001>

<bundles_post_ra>
// kernel: resblock_forward.1
= control target key start
LH: loop header
LB: loop body
LE: loop exit
PB: predicated region body
PF: predicated region fallthrough
CT: control target
= control target key end

     0   :  { %v6756_v0 = vmov 0.0|0.0   ;;  %vm257_vm0 = vcmask 261120   ;;  %vm4818_vm1 = vcmask 260096   ;;  %s10384_s2 = inlined_call_operand.vmem [shape: f32[288,32], index: 2, kind: input, shape index: {}]   ;;  %s10385_s0 = inlined_call_operand.vmem [shape: f32[512,288], index: 0, kind: input, shape index: {}]   ;;  %s10386_s5 = inlined_call_operand.vmem [shape: f32[4,4,32,32], index: 5, kind: input, shape index: {}]   ;;  %s10387_s3 = inlined_call_operand.vmem [shape: f32[1,32], index: 3, kind: input, shape index: {}]   ;;  %s10388_s4 = inlined_call_operand.vmem [shape: f32[1,32], index: 4, kind: input, shape index: {}]   ;;  %s10389_s1 = inlined_call_operand.vmem [shape: f32[512,32], index: 1, kind: input, shape index: {}]   ;;  %s10390_s6 = inlined_call_operand.vmem [shape: f32[1,32], index: 6, kind: input, shape index: {}]   ;;  %s10391_s7 = inlined_call_operand.vmem [shape: f32[1,32], index: 7, kind: input, shape index: {}]   ;;  %s10392_s8 = inlined_call_operand.vmem [shape: f32[2,7,7,32], index: 8, kind: output, shape index: {}]  }
   0x1   :  { %6382 = vmatprep.subr.bf16.mxu0 %v6756_v0  ;;  %v221_v1 = vld [vmem:[%s10384_s2] sm:$0xff]  ;;  %v222_v2 = vld [vmem:[%s10384_s2 + $0x8] sm:$0xff]  ;;  %v223_v3 = vld [vmem:[%s10384_s2 + $0x10] sm:$0xff] }
   0x2   :  { %v6383_v4 = vpack.c.bf16 %v222_v2, %v221_v1  ;;  %v224_v5 = vld [vmem:[%s10384_s2 + $0x18] sm:$0xff]  ;;  %v225_v7 = vld [vmem:[%s10384_s2 + $0x20] sm:$0xff]  ;;  %v226_v8 = vld [vmem:[%s10384_s2 + $0x28] sm:$0xff] }
   0x3   :  { %v6386_v6 = vpack.c.bf16 %v224_v5, %v223_v3  ;;  %v6389_v9 = vpack.c.bf16 %v226_v8, %v225_v7  ;;  %v227_v10 = vld [vmem:[%s10384_s2 + $0x30] sm:$0xff]  ;;  %v228_v11 = vld [vmem:[%s10384_s2 + $0x38] sm:$0xff]  ;;  %v30_v12 = vld [vmem:[%s10385_s0 + $0x8] sm:$0xff] }
   0x4   :  { %6384 = vmatpush1.bf16.msra.mxu0 %v6383_v4  ;;  %v6392_v13 = vpack.c.bf16 %v228_v11, %v227_v10  ;;  %514 = vmatprep.mubr.f32.mxu0 %v30_v12  ;;  %v253_v14 = vld [vmem:[%s10384_s2 + $0x100] sm:$0xff]  ;;  %v254_v15 = vld [vmem:[%s10384_s2 + $0x108] sm:$0xff]  ;;  %v231_v20 = vld [vmem:[%s10384_s2 + $0x50] sm:$0xff] }
   0x5   :  { %6385 = vmatprep.subr.bf16.mxu0 %v6756_v0  ;;  %v229_v16 = vld [vmem:[%s10384_s2 + $0x40] sm:$0xff]  ;;  %v230_v17 = vld [vmem:[%s10384_s2 + $0x48] sm:$0xff]  ;;  %v6845_v18 = vpack.c.bf16 %v254_v15, %v253_v14  ;;  %v232_v21 = vld [vmem:[%s10384_s2 + $0x58] sm:$0xff] }
   0x6   :  { %v6395_v19 = vpack.c.bf16 %v230_v17, %v229_v16  ;;  %v6398_v22 = vpack.c.bf16 %v232_v21, %v231_v20  ;;  %v233_v23 = vld [vmem:[%s10384_s2 + $0x60] sm:$0xff]  ;;  %v234_v24 = vld [vmem:[%s10384_s2 + $0x68] sm:$0xff]  ;;  %v255_v26 = vld [vmem:[%s10384_s2 + $0x110] sm:$0xff] }
   0x7   :  { %6566 = vmatprep.subr.bf16.mxu1 %v6845_v18  ;;  %v6401_v25 = vpack.c.bf16 %v234_v24, %v233_v23  ;;  %v256_v27 = vld [vmem:[%s10384_s2 + $0x118] sm:$0xff]  ;;  %v235_v28 = vld [vmem:[%s10384_s2 + $0x70] sm:$0xff]  ;;  %v85_v31 = vld [vmem:[%s10385_s0 + $0x1c0] sm:$0xff] }
   0x8   :  { %6387 = vmatpush1.bf16.msra.mxu0 %v6386_v6  ;;  %6568 = vmatpush3.bf16.msra.mxu1 %v6845_v18  ;;  %v236_v29 = vld [vmem:[%s10384_s2 + $0x78] sm:$0xff]  ;;  %v6876_v30 = vpack.c.bf16 %v256_v27, %v255_v26  ;;  %v237_v34 = vld [vmem:[%s10384_s2 + $0x80] sm:$0xff]  ;;  %v238_v35 = vld [vmem:[%s10384_s2 + $0x88] sm:$0xff] }
   0x9   :  { %6388 = vmatprep.subr.bf16.mxu0 %v6756_v0  ;;  %5801 = vmatprep.mubr.msk.f32.mxu1 %vm257_vm0, %v85_v31  ;;  %v6404_v32 = vpack.c.bf16 %v236_v29, %v235_v28  ;;  %v88_v33 = vld [vmem:[%s10385_s0 + $0x1d8] sm:$0xff]  ;;  %v91_v36 = vld [vmem:[%s10385_s0 + $0x1f0] sm:$0xff]  ;;  %v6407_v37 = vpack.c.bf16 %v238_v35, %v237_v34  ;;  %v94_v38 = vld [vmem:[%s10385_s0 + $0x208] sm:$0xff] }
   0xa   :  { %6567 = vmatprep.subr.bf16.mxu1 %v6876_v30  ;;  %v239_v39 = vld [vmem:[%s10384_s2 + $0x90] sm:$0xff]  ;;  %v240_v40 = vld [vmem:[%s10384_s2 + $0x98] sm:$0xff]  ;;  %v97_v41 = vld [vmem:[%s10385_s0 + $0x220] sm:$0xff] }
   0xb   :  { %v6410_v42 = vpack.c.bf16 %v240_v40, %v239_v39  ;;  %v100_v43 = vld [vmem:[%s10385_s0 + $0x238] sm:$0xff]  ;;  %v241_v44 = vld [vmem:[%s10384_s2 + $0xa0] sm:$0xff]  ;;  %v242_v45 = vld [vmem:[%s10384_s2 + $0xa8] sm:$0xff] }
   0xc   :  { %6390 = vmatpush1.bf16.msra.mxu0 %v6389_v9  ;;  %6569 = vmatpush3.bf16.msra.mxu1 %v6876_v30  ;;  %v103_v46 = vld [vmem:[%s10385_s0 + $0x250] sm:$0xff]  ;;  %v6413_v47 = vpack.c.bf16 %v242_v45, %v241_v44  ;;  %v106_v48 = vld [vmem:[%s10385_s0 + $0x268] sm:$0xff]  ;;  %v244_v50 = vld [vmem:[%s10384_s2 + $0xb8] sm:$0xff] }
   0xd   :  { %6391 = vmatprep.subr.bf16.mxu0 %v6756_v0  ;;  %v243_v49 = vld [vmem:[%s10384_s2 + $0xb0] sm:$0xff]  ;;  %v109_v51 = vld [vmem:[%s10385_s0 + $0x280] sm:$0xff]  ;;  %v112_v53 = vld [vmem:[%s10385_s0 + $0x298] sm:$0xff] }
   0xe   :  { %v6416_v52 = vpack.c.bf16 %v244_v50, %v243_v49  ;;  %v245_v54 = vld [vmem:[%s10384_s2 + $0xc0] sm:$0xff]  ;;  %v246_v55 = vld [vmem:[%s10384_s2 + $0xc8] sm:$0xff]  ;;  %v115_v57 = vld [vmem:[%s10385_s0 + $0x2b0] sm:$0xff] }
   0xf   :  { %5802 = vmatmul.mubr.msk.f32.vlgmr.msra.gmra.mrb[0].mxu1 %vm257_vm0, %v88_v33  ;;  %v6419_v56 = vpack.c.bf16 %v246_v55, %v245_v54  ;;  %v247_v58 = vld [vmem:[%s10384_s2 + $0xd0] sm:$0xff]  ;;  %v248_v59 = vld [vmem:[%s10384_s2 + $0xd8] sm:$0xff]  ;;  %v118_v60 = vld [vmem:[%s10385_s0 + $0x2c8] sm:$0xff] }
  0x10   :  { %6393 = vmatpush1.bf16.msra.mxu0 %v6392_v13  ;;  %5804 = vmatprep.mubr.msk.f32.mxu1 %vm257_vm0, %v91_v36  ;;  %v6422_v61 = vpack.c.bf16 %v248_v59, %v247_v58  ;;  %v249_v62 = vld [vmem:[%s10384_s2 + $0xe0] sm:$0xff]  ;;  %v250_v63 = vld [vmem:[%s10384_s2 + $0xe8] sm:$0xff]  ;;  %v251_v3 = vld [vmem:[%s10384_s2 + $0xf0] sm:$0xff] }
  0x11   :  { %6394 = vmatprep.subr.bf16.mxu0 %v6756_v0  ;;  %v6425_v1 = vpack.c.bf16 %v250_v63, %v249_v62  ;;  %v121_v2 = vld [vmem:[%s10385_s0 + $0x2e0] sm:$0xff]  ;;  %v252_v4 = vld [vmem:[%s10384_s2 + $0xf8] sm:$0xff]  ;;  %v127_v8 = vld [vmem:[%s10385_s0 + $0x310] sm:$0xff] }
  0x12   :  { %v124_v5 = vld [vmem:[%s10385_s0 + $0x2f8] sm:$0xff]  ;;  %v6428_v6 = vpack.c.bf16 %v252_v4, %v251_v3  ;;  %v29_v7 = vld [vmem:[%s10385_s0] sm:$0xff]  ;;  %v35_v12 = vld [vmem:[%s10385_s0 + $0x30] sm:$0xff] }
  0x13   :  { %5805 = vmatmul.mubr.msk.f32.gmra.mrb[2].mxu1 %vm257_vm0, %v94_v38  ;;  %v33_v9 = vld [vmem:[%s10385_s0 + $0x20] sm:$0xff]  ;;  %v32_v10 = vld [vmem:[%s10385_s0 + $0x18] sm:$0xff]  ;;  %v39_v14 = vld [vmem:[%s10385_s0 + $0x50] sm:$0xff] }
  0x14   :  { %6396 = vmatpush1.bf16.msra.mxu0 %v6395_v19  ;;  %5807 = vmatprep.mubr.msk.f32.mxu1 %vm257_vm0, %v97_v41  ;;  %v36_v11 = vld [vmem:[%s10385_s0 + $0x38] sm:$0xff]  ;;  %v133_v13 = vld [vmem:[%s10385_s0 + $0x340] sm:$0xff]  ;;  %v38_v16 = vld [vmem:[%s10385_s0 + $0x48] sm:$0xff] }
  0x15   :  { %6397 = vmatprep.subr.bf16.mxu0 %v6756_v0  ;;  %v136_v15 = vld [vmem:[%s10385_s0 + $0x358] sm:$0xff]  ;;  %v42_v17 = vld [vmem:[%s10385_s0 + $0x68] sm:$0xff]  ;;  %v139_v19 = vld [vmem:[%s10385_s0 + $0x370] sm:$0xff] }
  0x16   :  { %v45_v20 = vld [vmem:[%s10385_s0 + $0x80] sm:$0xff]  ;;  %v142_v21 = vld [vmem:[%s10385_s0 + $0x388] sm:$0xff]  ;;  %v48_v23 = vld [vmem:[%s10385_s0 + $0x98] sm:$0xff] }
  0x17   :  { %5808 = vmatmul.mubr.msk.f32.gmra.mrb[4].mxu1 %vm257_vm0, %v100_v43  ;;  %v47_v24 = vld [vmem:[%s10385_s0 + $0x90] sm:$0xff]  ;;  %v148_v27 = vld [vmem:[%s10385_s0 + $0x3b8] sm:$0xff]  ;;  %v50_v28 = vld [vmem:[%s10385_s0 + $0xa8] sm:$0xff] }
  0x18   :  { %6399 = vmatpush1.bf16.msra.mxu0 %v6398_v22  ;;  %5810 = vmatprep.mubr.msk.f32.mxu1 %vm257_vm0, %v103_v46  ;;  %v44_v22 = vld [vmem:[%s10385_s0 + $0x78] sm:$0xff]  ;;  %v51_v26 = vld [vmem:[%s10385_s0 + $0xb0] sm:$0xff]  ;;  %v54_v29 = vld [vmem:[%s10385_s0 + $0xc8] sm:$0xff] }
  0x19   :  { %6400 = vmatprep.subr.bf16.mxu0 %v6756_v0  ;;  %v151_v31 = vld [vmem:[%s10385_s0 + $0x3d0] sm:$0xff]  ;;  %v154_v33 = vld [vmem:[%s10385_s0 + $0x3e8] sm:$0xff]  ;;  %v56_v34 = vld [vmem:[%s10385_s0 + $0xd8] sm:$0xff] }
  0x1a   :  { %v60_v35 = vld [vmem:[%s10385_s0 + $0xf8] sm:$0xff]  ;;  %v59_v36 = vld [vmem:[%s10385_s0 + $0xf0] sm:$0xff]  ;;  %v62_v40 = vld [vmem:[%s10385_s0 + $0x108] sm:$0xff] }
  0x1b   :  { %5811 = vmatmul.mubr.msk.f32.gmra.mrb[6].mxu1 %vm257_vm0, %v106_v48  ;;  %v63_v38 = vld [vmem:[%s10385_s0 + $0x110] sm:$0xff]  ;;  %v160_v39 = vld [vmem:[%s10385_s0 + $0x418] sm:$0xff]  ;;  %v66_v41 = vld [vmem:[%s10385_s0 + $0x128] sm:$0xff] }
  0x1c   :  { %6402 = vmatpush1.bf16.msra.mxu0 %v6401_v25  ;;  %5813 = vmatprep.mubr.msk.f32.mxu1 %vm257_vm0, %v109_v51  ;;  %v145_v25 = vld [vmem:[%s10385_s0 + $0x3a0] sm:$0xff]  ;;  %v163_v43 = vld [vmem:[%s10385_s0 + $0x430] sm:$0xff]  ;;  %v166_v45 = vld [vmem:[%s10385_s0 + $0x448] sm:$0xff] }
  0x1d   :  { %6403 = vmatprep.subr.bf16.mxu0 %v6756_v0  ;;  %v69_v44 = vld [vmem:[%s10385_s0 + $0x140] sm:$0xff]  ;;  %v68_v46 = vld [vmem:[%s10385_s0 + $0x138] sm:$0xff]  ;;  %v71_v48 = vld [vmem:[%s10385_s0 + $0x150] sm:$0xff] }
  0x1e   :  { %v169_v49 = vld [vmem:[%s10385_s0 + $0x460] sm:$0xff]  ;;  %v75_v50 = vld [vmem:[%s10385_s0 + $0x170] sm:$0xff]  ;;  %v172_v51 = vld [vmem:[%s10385_s0 + $0x478] sm:$0xff] }
  0x1f   :  { %5814 = vmatmul.mubr.msk.f32.gmra.mrb[8].mxu1 %vm257_vm0, %v112_v53  ;;  %v78_v53 = vld [vmem:[%s10385_s0 + $0x188] sm:$0xff]  ;;  %v77_v54 = vld [vmem:[%s10385_s0 + $0x180] sm:$0xff]  ;;  %v175_v55 = vld [vmem:[%s10385_s0 + $0x490] sm:$0xff] }
  0x20   :  { %6405 = vmatpush1.bf16.msra.mxu0 %v6404_v32  ;;  %5816 = vmatprep.mubr.msk.f32.mxu1 %vm257_vm0, %v115_v57  ;;  %v57_v32 = vld [vmem:[%s10385_s0 + $0xe0] sm:$0xff]  ;;  %v178_v57 = vld [vmem:[%s10385_s0 + $0x4a8] sm:$0xff]  ;;  %v80_v58 = vld [vmem:[%s10385_s0 + $0x198] sm:$0xff] }
  0x21   :  { %6406 = vmatprep.subr.bf16.mxu0 %v6756_v0  ;;  %v84_v59 = vld [vmem:[%s10385_s0 + $0x1b8] sm:$0xff]  ;;  %v87_v62 = vld [vmem:[%s10385_s0 + $0x1d0] sm:$0xff]  ;;  %v89_v3 = vld [vmem:[%s10385_s0 + $0x1e0] sm:$0xff] }
  0x22   :  { %v184_v63 = vld [vmem:[%s10385_s0 + $0x4d8] sm:$0xff]  ;;  %v187_v4 = vld [vmem:[%s10385_s0 + $0x4f0] sm:$0xff] }
  0x23   :  { %5817 = vmatmul.mubr.msk.f32.gmra.mrb[10].mxu1 %vm257_vm0, %v118_v60  ;;  %v83_v60 = vld [vmem:[%s10385_s0 + $0x1b0] sm:$0xff] }
  0x24   :  { %6408 = vmatpush1.bf16.msra.mxu0 %v6407_v37  ;;  %5819 = vmatprep.mubr.msk.f32.mxu1 %vm257_vm0, %v121_v2  ;;  %v157_v37 = vld [vmem:[%s10385_s0 + $0x400] sm:$0xff]  ;;  %v90_v2 = vld [vmem:[%s10385_s0 + $0x1e8] sm:$0xff] }
  0x25   :  { %6409 = vmatprep.subr.bf16.mxu0 %v6756_v0 }
  0x27   :  { %5820 = vmatmul.mubr.msk.f32.gmra.mrb[12].mxu1 %vm257_vm0, %v124_v5  ;;  %v93_v5 = vld [vmem:[%s10385_s0 + $0x200] sm:$0xff] }
  0x28   :  { %6411 = vmatpush1.bf16.msra.mxu0 %v6410_v42  ;;  %5822 = vmatprep.mubr.msk.f32.mxu1 %vm257_vm0, %v127_v8  ;;  %v65_v42 = vld [vmem:[%s10385_s0 + $0x120] sm:$0xff]  ;;  %v96_v8 = vld [vmem:[%s10385_s0 + $0x218] sm:$0xff] }
  0x29   :  { %6412 = vmatprep.subr.bf16.mxu0 %v6756_v0 }
  0x2c   :  { %6414 = vmatpush1.bf16.msra.mxu0 %v6413_v47  ;;  %v72_v47 = vld [vmem:[%s10385_s0 + $0x158] sm:$0xff] }
  0x2d   :  { %6415 = vmatprep.subr.bf16.mxu0 %v6756_v0 }
  0x30   :  { %6417 = vmatpush1.bf16.msra.mxu0 %v6416_v52  ;;  %v74_v52 = vld [vmem:[%s10385_s0 + $0x168] sm:$0xff] }
  0x31   :  { %6418 = vmatprep.subr.bf16.mxu0 %v6756_v0 }
  0x34   :  { %6420 = vmatpush1.bf16.msra.mxu0 %v6419_v56  ;;  %v81_v56 = vld [vmem:[%s10385_s0 + $0x1a0] sm:$0xff] }
  0x35   :  { %6421 = vmatprep.subr.bf16.mxu0 %v6756_v0 }
  0x38   :  { %6423 = vmatpush1.bf16.msra.mxu0 %v6422_v61  ;;  %v181_v61 = vld [vmem:[%s10385_s0 + $0x4c0] sm:$0xff] }
  0x39   :  { %6424 = vmatprep.subr.bf16.mxu0 %v6756_v0 }
  0x3c   :  { %6426 = vmatpush1.bf16.msra.mxu0 %v6425_v1  ;;  %v86_v1 = vld [vmem:[%s10385_s0 + $0x1c8] sm:$0xff] }
  0x3d   :  { %6427 = vmatprep.subr.bf16.mxu0 %v6756_v0  ;;  %v130_v0 = vld [vmem:[%s10385_s0 + $0x328] sm:$0xff] }
  0x3e   :  { %5823 = vmatmul.mubr.msk.f32.gmra.mrb[14].mxu1 %vm257_vm0, %v130_v0  ;;  %v193_v0 = vld [vmem:[%s10385_s0 + $0x520] sm:$0xff] }
  0x3f   :  { %5825 = vmatprep.mubr.msk.f32.mxu1 %vm257_vm0, %v133_v13  ;;  %v102_v13 = vld [vmem:[%s10385_s0 + $0x248] sm:$0xff] }
  0x40   :  { %6429 = vmatpush1.bf16.msra.mxu0 %v6428_v6  ;;  %v190_v6 = vld [vmem:[%s10385_s0 + $0x508] sm:$0xff] }
  0x41   :  { %6431 = vmatprep.subr.bf16.mxu0 %v6845_v18 }
  0x42   :  { %5826 = vmatmul.mubr.msk.f32.gmra.mrb[16].mxu1 %vm257_vm0, %v136_v15  ;;  %v199_v15 = vld [vmem:[%s10385_s0 + $0x550] sm:$0xff] }
  0x43   :  { %515 = vmatmul.mubr.f32.vlgmr.msra.gmra.mrb[0].mxu0 %v29_v7  ;;  %5828 = vmatprep.mubr.msk.f32.mxu1 %vm257_vm0, %v139_v19  ;;  %v92_v7 = vld [vmem:[%s10385_s0 + $0x1f8] sm:$0xff] }
  0x44   :  { %6433 = vmatpush3.bf16.msra.mxu0 %v6845_v18  ;;  %519 = vmatprep.mubr.f32.mxu0 %v33_v9  ;;  %v41_v18 = vld [vmem:[%s10385_s0 + $0x60] sm:$0xff]  ;;  %v95_v9 = vld [vmem:[%s10385_s0 + $0x210] sm:$0xff]  ;;  %v108_v19 = vld [vmem:[%s10385_s0 + $0x278] sm:$0xff] }
  0x45   :  { %6435 = vmatprep.subr.bf16.mxu0 %v6876_v30 }
  0x46   :  { %5829 = vmatmul.mubr.msk.f32.gmra.mrb[18].mxu1 %vm257_vm0, %v142_v21  ;;  %v205_v21 = vld [vmem:[%s10385_s0 + $0x580] sm:$0xff] }
  0x47   :  { %520 = vmatmul.mubr.f32.gmra.mrb[2].mxu0 %v32_v10  ;;  %5831 = vmatprep.mubr.msk.f32.mxu1 %vm257_vm0, %v145_v25  ;;  %v99_v10 = vld [vmem:[%s10385_s0 + $0x230] sm:$0xff]  ;;  %v114_v25 = vld [vmem:[%s10385_s0 + $0x2a8] sm:$0xff] }
  0x48   :  { %524 = vmatprep.mubr.f32.mxu0 %v36_v11  ;;  %6437 = vmatpush3.bf16.msra.mxu0 %v6876_v30  ;;  %v53_v30 = vld [vmem:[%s10385_s0 + $0xc0] sm:$0xff]  ;;  %v196_v11 = vld [vmem:[%s10385_s0 + $0x538] sm:$0xff] }
  0x4a   :  { %5832 = vmatmul.mubr.msk.f32.gmra.mrb[20].mxu1 %vm257_vm0, %v148_v27  ;;  %v211_v27 = vld [vmem:[%s10385_s0 + $0x5b0] sm:$0xff] }
  0x4b   :  { %525 = vmatmul.mubr.f32.gmra.mrb[4].mxu0 %v35_v12  ;;  %5834 = vmatprep.mubr.msk.f32.mxu1 %vm257_vm0, %v151_v31  ;;  %v98_v12 = vld [vmem:[%s10385_s0 + $0x228] sm:$0xff]  ;;  %v120_v31 = vld [vmem:[%s10385_s0 + $0x2d8] sm:$0xff] }
  0x4c   :  { %529 = vmatprep.mubr.f32.mxu0 %v39_v14  ;;  %v101_v14 = vld [vmem:[%s10385_s0 + $0x240] sm:$0xff] }
  0x4e   :  { %5835 = vmatmul.mubr.msk.f32.gmra.mrb[22].mxu1 %vm257_vm0, %v154_v33  ;;  %v217_v33 = vld [vmem:[%s10385_s0 + $0x5e0] sm:$0xff] }
  0x4f   :  { %530 = vmatmul.mubr.f32.gmra.mrb[6].mxu0 %v38_v16  ;;  %5837 = vmatprep.mubr.msk.f32.mxu1 %vm257_vm0, %v157_v37  ;;  %v105_v16 = vld [vmem:[%s10385_s0 + $0x260] sm:$0xff]  ;;  %v126_v37 = vld [vmem:[%s10385_s0 + $0x308] sm:$0xff] }
  0x50   :  { %534 = vmatprep.mubr.f32.mxu0 %v42_v17  ;;  %v202_v17 = vld [vmem:[%s10385_s0 + $0x568] sm:$0xff] }
  0x52   :  { %5838 = vmatmul.mubr.msk.f32.gmra.mrb[24].mxu1 %vm257_vm0, %v160_v39  ;;  %v129_v39 = vld [vmem:[%s10385_s0 + $0x320] sm:$0xff] }
  0x53   :  { %535 = vmatmul.mubr.f32.gmra.mrb[8].mxu0 %v41_v18  ;;  %5840 = vmatprep.mubr.msk.f32.mxu1 %vm257_vm0, %v163_v43  ;;  %v104_v18 = vld [vmem:[%s10385_s0 + $0x258] sm:$0xff]  ;;  %v135_v43 = vld [vmem:[%s10385_s0 + $0x350] sm:$0xff] }
  0x54   :  { %539 = vmatprep.mubr.f32.mxu0 %v45_v20  ;;  %v107_v20 = vld [vmem:[%s10385_s0 + $0x270] sm:$0xff] }
  0x56   :  { %5841 = vmatmul.mubr.msk.f32.gmra.mrb[26].mxu1 %vm257_vm0, %v166_v45  ;;  %v138_v45 = vld [vmem:[%s10385_s0 + $0x368] sm:$0xff] }
  0x57   :  { %540 = vmatmul.mubr.f32.gmra.mrb[10].mxu0 %v44_v22  ;;  %5843 = vmatprep.mubr.msk.f32.mxu1 %vm257_vm0, %v169_v49  ;;  %v111_v22 = vld [vmem:[%s10385_s0 + $0x290] sm:$0xff]  ;;  %v144_v49 = vld [vmem:[%s10385_s0 + $0x398] sm:$0xff] }
  0x58   :  { %544 = vmatprep.mubr.f32.mxu0 %v48_v23  ;;  %v208_v23 = vld [vmem:[%s10385_s0 + $0x598] sm:$0xff] }
  0x5a   :  { %5844 = vmatmul.mubr.msk.f32.gmra.mrb[28].mxu1 %vm257_vm0, %v172_v51  ;;  %v147_v51 = vld [vmem:[%s10385_s0 + $0x3b0] sm:$0xff] }
  0x5b   :  { %545 = vmatmul.mubr.f32.gmra.mrb[12].mxu0 %v47_v24  ;;  %5846 = vmatprep.mubr.msk.f32.mxu1 %vm257_vm0, %v175_v55  ;;  %v110_v24 = vld [vmem:[%s10385_s0 + $0x288] sm:$0xff]  ;;  %v153_v55 = vld [vmem:[%s10385_s0 + $0x3e0] sm:$0xff] }
  0x5c   :  { %549 = vmatprep.mubr.f32.mxu0 %v51_v26  ;;  %v113_v26 = vld [vmem:[%s10385_s0 + $0x2a0] sm:$0xff] }
  0x5e   :  { %5847 = vmatmul.mubr.msk.f32.gmra.mrb[30].mxu1 %vm257_vm0, %v178_v57  ;;  %v156_v57 = vld [vmem:[%s10385_s0 + $0x3f8] sm:$0xff] }
  0x5f   :  { %550 = vmatmul.mubr.f32.gmra.mrb[14].mxu0 %v50_v28  ;;  %5849 = vmatprep.mubr.msk.f32.mxu1 %vm257_vm0, %v181_v61  ;;  %v117_v28 = vld [vmem:[%s10385_s0 + $0x2c0] sm:$0xff]  ;;  %v162_v61 = vld [vmem:[%s10385_s0 + $0x428] sm:$0xff] }
  0x60   :  { %554 = vmatprep.mubr.f32.mxu0 %v54_v29  ;;  %v214_v29 = vld [vmem:[%s10385_s0 + $0x5c8] sm:$0xff] }
  0x62   :  { %5850 = vmatmul.mubr.msk.f32.gmra.mrb[32].mxu1 %vm257_vm0, %v184_v63  ;;  %v165_v63 = vld [vmem:[%s10385_s0 + $0x440] sm:$0xff] }
  0x63   :  { %555 = vmatmul.mubr.f32.gmra.mrb[16].mxu0 %v53_v30  ;;  %5852 = vmatprep.mubr.msk.f32.mxu1 %vm257_vm0, %v187_v4  ;;  %v116_v30 = vld [vmem:[%s10385_s0 + $0x2b8] sm:$0xff] }
  0x64   :  { %559 = vmatprep.mubr.f32.mxu0 %v57_v32  ;;  %v119_v32 = vld [vmem:[%s10385_s0 + $0x2d0] sm:$0xff]  ;;  %v168_v4 = vld [vmem:[%s10385_s0 + $0x458] sm:$0xff] }
  0x66   :  { %5853 = vmatmul.mubr.msk.f32.gmra.mrb[34].mxu1 %vm257_vm0, %v190_v6 }
  0x67   :  { %560 = vmatmul.mubr.f32.gmra.mrb[18].mxu0 %v56_v34  ;;  %5855 = vmatprep.mubr.msk.f32.mxu1 %vm257_vm0, %v193_v0  ;;  %v123_v34 = vld [vmem:[%s10385_s0 + $0x2f0] sm:$0xff] }
  0x68   :  { %564 = vmatprep.mubr.f32.mxu0 %v60_v35  ;;  %v220_v35 = vld [vmem:[%s10385_s0 + $0x5f8] sm:$0xff] }
  0x6a   :  { %5856 = vmatmul.mubr.msk.f32.gmra.mrb[36].mxu1 %vm257_vm0, %v196_v11  ;;  %v174_v11 = vld [vmem:[%s10385_s0 + $0x488] sm:$0xff] }
  0x6b   :  { %565 = vmatmul.mubr.f32.gmra.mrb[20].mxu0 %v59_v36  ;;  %5858 = vmatprep.mubr.msk.f32.mxu1 %vm257_vm0, %v199_v15  ;;  %v122_v36 = vld [vmem:[%s10385_s0 + $0x2e8] sm:$0xff]  ;;  %v177_v15 = vld [vmem:[%s10385_s0 + $0x4a0] sm:$0xff] }
  0x6c   :  { %569 = vmatprep.mubr.f32.mxu0 %v63_v38  ;;  %v125_v38 = vld [vmem:[%s10385_s0 + $0x300] sm:$0xff] }
  0x6e   :  { %5859 = vmatmul.mubr.msk.f32.gmra.mrb[38].mxu1 %vm257_vm0, %v202_v17 }
  0x6f   :  { %570 = vmatmul.mubr.f32.gmra.mrb[22].mxu0 %v62_v40  ;;  %5861 = vmatprep.mubr.msk.f32.mxu1 %vm257_vm0, %v205_v21  ;;  %v128_v40 = vld [vmem:[%s10385_s0 + $0x318] sm:$0xff] }
  0x70   :  { %574 = vmatprep.mubr.f32.mxu0 %v66_v41  ;;  %v132_v41 = vld [vmem:[%s10385_s0 + $0x338] sm:$0xff] }
  0x72   :  { %5862 = vmatmul.mubr.msk.f32.gmra.mrb[40].mxu1 %vm257_vm0, %v208_v23  ;;  %v183_v23 = vld [vmem:[%s10385_s0 + $0x4d0] sm:$0xff] }
  0x73   :  { %575 = vmatmul.mubr.f32.gmra.mrb[24].mxu0 %v65_v42  ;;  %5864 = vmatprep.mubr.msk.f32.mxu1 %vm257_vm0, %v211_v27  ;;  %v131_v42 = vld [vmem:[%s10385_s0 + $0x330] sm:$0xff] }
  0x74   :  { %579 = vmatprep.mubr.f32.mxu0 %v69_v44  ;;  %v134_v44 = vld [vmem:[%s10385_s0 + $0x348] sm:$0xff] }
  0x76   :  { %5865 = vmatmul.mubr.msk.f32.gmra.mrb[42].mxu1 %vm257_vm0, %v214_v29  ;;  %v189_v29 = vld [vmem:[%s10385_s0 + $0x500] sm:$0xff] }
  0x77   :  { %580 = vmatmul.mubr.f32.gmra.mrb[26].mxu0 %v68_v46  ;;  %5867 = vmatprep.mubr.msk.f32.mxu1 %vm257_vm0, %v217_v33  ;;  %v137_v46 = vld [vmem:[%s10385_s0 + $0x360] sm:$0xff] }
  0x78   :  { %584 = vmatprep.mubr.f32.mxu0 %v72_v47  ;;  %v141_v47 = vld [vmem:[%s10385_s0 + $0x380] sm:$0xff] }
  0x7a   :  { %5868 = vmatmul.mubr.msk.f32.gmra.mrb[44].mxu1 %vm257_vm0, %v220_v35 }
  0x7b   :  { %585 = vmatmul.mubr.f32.gmra.mrb[28].mxu0 %v71_v48  ;;  %v140_v48 = vld [vmem:[%s10385_s0 + $0x378] sm:$0xff] }
  0x7c   :  { %589 = vmatprep.mubr.f32.mxu0 %v75_v50  ;;  %v143_v50 = vld [vmem:[%s10385_s0 + $0x390] sm:$0xff] }
  0x7f   :  { %590 = vmatmul.mubr.f32.gmra.mrb[30].mxu0 %v74_v52  ;;  %v146_v52 = vld [vmem:[%s10385_s0 + $0x3a8] sm:$0xff] }
  0x80   :  { %594 = vmatprep.mubr.f32.mxu0 %v78_v53  ;;  %v150_v53 = vld [vmem:[%s10385_s0 + $0x3c8] sm:$0xff] }
  0x83   :  { %595 = vmatmul.mubr.f32.gmra.mrb[32].mxu0 %v77_v54  ;;  %v149_v54 = vld [vmem:[%s10385_s0 + $0x3c0] sm:$0xff] }
  0x84   :  { %599 = vmatprep.mubr.f32.mxu0 %v81_v56  ;;  %v152_v56 = vld [vmem:[%s10385_s0 + $0x3d8] sm:$0xff] }
  0x87   :  { %600 = vmatmul.mubr.f32.gmra.mrb[34].mxu0 %v80_v58  ;;  %v155_v58 = vld [vmem:[%s10385_s0 + $0x3f0] sm:$0xff] }
  0x88   :  { %604 = vmatprep.mubr.f32.mxu0 %v84_v59  ;;  %v159_v59 = vld [vmem:[%s10385_s0 + $0x410] sm:$0xff] }
  0x8b   :  { %605 = vmatmul.mubr.f32.gmra.mrb[36].mxu0 %v83_v60  ;;  %v158_v60 = vld [vmem:[%s10385_s0 + $0x408] sm:$0xff] }
  0x8c   :  { %609 = vmatprep.mubr.f32.mxu0 %v87_v62  ;;  %v161_v62 = vld [vmem:[%s10385_s0 + $0x420] sm:$0xff] }
  0x8f   :  { %610 = vmatmul.mubr.f32.gmra.mrb[38].mxu0 %v86_v1 }
  0x90   :  { %614 = vmatprep.mubr.f32.mxu0 %v90_v2 }
  0x93   :  { %615 = vmatmul.mubr.f32.gmra.mrb[40].mxu0 %v89_v3  ;;  %v164_v3 = vld [vmem:[%s10385_s0 + $0x438] sm:$0xff] }
  0x94   :  { %619 = vmatprep.mubr.f32.mxu0 %v93_v5 }
  0x97   :  { %620 = vmatmul.mubr.f32.gmra.mrb[42].mxu0 %v92_v7  ;;  %v167_v7 = vld [vmem:[%s10385_s0 + $0x450] sm:$0xff] }
  0x98   :  { %624 = vmatprep.mubr.f32.mxu0 %v96_v8  ;;  %v171_v8 = vld [vmem:[%s10385_s0 + $0x470] sm:$0xff] }
  0x9b   :  { %625 = vmatmul.mubr.f32.gmra.mrb[44].mxu0 %v95_v9 }
  0x9c   :  { %629 = vmatprep.mubr.f32.mxu0 %v99_v10  ;;  %v170_v10 = vld [vmem:[%s10385_s0 + $0x468] sm:$0xff] }
  0x9f   :  { %630 = vmatmul.mubr.f32.gmra.mrb[46].mxu0 %v98_v12 }
  0xa0   :  { %634 = vmatprep.mubr.f32.mxu0 %v102_v13 }
  0xa3   :  { %635 = vmatmul.mubr.f32.gmra.mrb[48].mxu0 %v101_v14  ;;  %v173_v14 = vld [vmem:[%s10385_s0 + $0x480] sm:$0xff] }
  0xa4   :  { %639 = vmatprep.mubr.f32.mxu0 %v105_v16 }
  0xa7   :  { %640 = vmatmul.mubr.f32.gmra.mrb[50].mxu0 %v104_v18  ;;  %v176_v18 = vld [vmem:[%s10385_s0 + $0x498] sm:$0xff] }
  0xa8   :  { %644 = vmatprep.mubr.f32.mxu0 %v108_v19  ;;  %v180_v19 = vld [vmem:[%s10385_s0 + $0x4b8] sm:$0xff] }
  0xab   :  { %645 = vmatmul.mubr.f32.gmra.mrb[52].mxu0 %v107_v20 }
  0xac   :  { %649 = vmatprep.mubr.f32.mxu0 %v111_v22  ;;  %v179_v22 = vld [vmem:[%s10385_s0 + $0x4b0] sm:$0xff] }
  0xaf   :  { %650 = vmatmul.mubr.f32.gmra.mrb[54].mxu0 %v110_v24  ;;  %v182_v24 = vld [vmem:[%s10385_s0 + $0x4c8] sm:$0xff] }
  0xb0   :  { %654 = vmatprep.mubr.f32.mxu0 %v114_v25  ;;  %v186_v25 = vld [vmem:[%s10385_s0 + $0x4e8] sm:$0xff] }
  0xb3   :  { %655 = vmatmul.mubr.f32.gmra.mrb[56].mxu0 %v113_v26 }
  0xb4   :  { %659 = vmatprep.mubr.f32.mxu0 %v117_v28  ;;  %v185_v28 = vld [vmem:[%s10385_s0 + $0x4e0] sm:$0xff] }
  0xb7   :  { %660 = vmatmul.mubr.f32.gmra.mrb[58].mxu0 %v116_v30  ;;  %v188_v30 = vld [vmem:[%s10385_s0 + $0x4f8] sm:$0xff] }
  0xb8   :  { %664 = vmatprep.mubr.f32.mxu0 %v120_v31  ;;  %v192_v31 = vld [vmem:[%s10385_s0 + $0x518] sm:$0xff] }
  0xbb   :  { %665 = vmatmul.mubr.f32.gmra.mrb[60].mxu0 %v119_v32 }
  0xbc   :  { %669 = vmatprep.mubr.f32.mxu0 %v123_v34 }
  0xbf   :  { %670 = vmatmul.mubr.f32.gmra.mrb[62].mxu0 %v122_v36  ;;  %v191_v36 = vld [vmem:[%s10385_s0 + $0x510] sm:$0xff] }
  0xc0   :  { %674 = vmatprep.mubr.f32.mxu0 %v126_v37  ;;  %v195_v37 = vld [vmem:[%s10385_s0 + $0x530] sm:$0xff] }
  0xc3   :  { %675 = vmatmul.mubr.f32.gmra.mrb[64].mxu0 %v125_v38 }
  0xc4   :  { %679 = vmatprep.mubr.f32.mxu0 %v129_v39 }
  0xc7   :  { %680 = vmatmul.mubr.f32.gmra.mrb[66].mxu0 %v128_v40  ;;  %v194_v40 = vld [vmem:[%s10385_s0 + $0x528] sm:$0xff] }
  0xc8   :  { %684 = vmatprep.mubr.f32.mxu0 %v132_v41  ;;  %v198_v41 = vld [vmem:[%s10385_s0 + $0x548] sm:$0xff] }
  0xcb   :  { %685 = vmatmul.mubr.f32.gmra.mrb[68].mxu0 %v131_v42 }
  0xcc   :  { %689 = vmatprep.mubr.f32.mxu0 %v135_v43 }
  0xcf   :  { %690 = vmatmul.mubr.f32.gmra.mrb[70].mxu0 %v134_v44 }
  0xd0   :  { %694 = vmatprep.mubr.f32.mxu0 %v138_v45 }
  0xd3   :  { %695 = vmatmul.mubr.f32.gmra.mrb[72].mxu0 %v137_v46  ;;  %v197_v46 = vld [vmem:[%s10385_s0 + $0x540] sm:$0xff] }
  0xd4   :  { %699 = vmatprep.mubr.f32.mxu0 %v141_v47  ;;  %v201_v47 = vld [vmem:[%s10385_s0 + $0x560] sm:$0xff] }
  0xd7   :  { %700 = vmatmul.mubr.f32.gmra.mrb[74].mxu0 %v140_v48 }
  0xd8   :  { %704 = vmatprep.mubr.f32.mxu0 %v144_v49 }
  0xdb   :  { %705 = vmatmul.mubr.f32.gmra.mrb[76].mxu0 %v143_v50  ;;  %v200_v50 = vld [vmem:[%s10385_s0 + $0x558] sm:$0xff] }
  0xdc   :  { %709 = vmatprep.mubr.f32.mxu0 %v147_v51  ;;  %v204_v51 = vld [vmem:[%s10385_s0 + $0x578] sm:$0xff] }
  0xdf   :  { %710 = vmatmul.mubr.f32.gmra.mrb[78].mxu0 %v146_v52 }
  0xe0   :  { %714 = vmatprep.mubr.f32.mxu0 %v150_v53 }
  0xe2   :  { %v7395_v1 = vpop.f32.mrb[0].mxu1 }
  0xe3   :  { %715 = vmatmul.mubr.f32.gmra.mrb[80].mxu0 %v149_v54  ;;  %v7397_v2 = vpop.f32.mrb[1].mxu1 }
  0xe4   :  { %719 = vmatprep.mubr.f32.mxu0 %v153_v55 }
  0xe6   :  { %v7405_v5 = vpop.f32.mrb[2].mxu1 }
  0xe7   :  { %720 = vmatmul.mubr.f32.gmra.mrb[82].mxu0 %v152_v56  ;;  %v7407_v6 = vpop.f32.mrb[3].mxu1  ;;  %v203_v56 = vld [vmem:[%s10385_s0 + $0x570] sm:$0xff] }
  0xe8   :  { %724 = vmatprep.mubr.f32.mxu0 %v156_v57  ;;  %v207_v57 = vld [vmem:[%s10385_s0 + $0x590] sm:$0xff] }
  0xea   :  { %v7415_v9 = vpop.f32.mrb[4].mxu1 }
  0xeb   :  { %725 = vmatmul.mubr.f32.gmra.mrb[84].mxu0 %v155_v58  ;;  %v7417_v0 = vpop.f32.mrb[5].mxu1 }
  0xec   :  { %729 = vmatprep.mubr.f32.mxu0 %v159_v59 }
  0xee   :  { %v7425_v12 = vpop.f32.mrb[6].mxu1 }
  0xef   :  { %730 = vmatmul.mubr.f32.gmra.mrb[86].mxu0 %v158_v60  ;;  %v7427_v13 = vpop.f32.mrb[7].mxu1  ;;  %v206_v60 = vld [vmem:[%s10385_s0 + $0x588] sm:$0xff] }
  0xf0   :  { %734 = vmatprep.mubr.f32.mxu0 %v162_v61  ;;  %v210_v61 = vld [vmem:[%s10385_s0 + $0x5a8] sm:$0xff] }
  0xf2   :  { %v7435_v16 = vpop.f32.mrb[8].mxu1 }
  0xf3   :  { %735 = vmatmul.mubr.f32.gmra.mrb[88].mxu0 %v161_v62  ;;  %v7437_v17 = vpop.f32.mrb[9].mxu1 }
  0xf4   :  { %739 = vmatprep.mubr.f32.mxu0 %v165_v63 }
  0xf6   :  { %v7445_v20 = vpop.f32.mrb[10].mxu1 }
  0xf7   :  { %740 = vmatmul.mubr.f32.gmra.mrb[90].mxu0 %v164_v3  ;;  %v7447_v21 = vpop.f32.mrb[11].mxu1 }
  0xf8   :  { %744 = vmatprep.mubr.f32.mxu0 %v168_v4 }
  0xfa   :  { %v7461_v26 = vpop.f32.mrb[12].mxu1 }
  0xfb   :  { %745 = vmatmul.mubr.f32.gmra.mrb[92].mxu0 %v167_v7  ;;  %v7463_v27 = vpop.f32.mrb[13].mxu1  ;;  %v209_v7 = vld [vmem:[%s10385_s0 + $0x5a0] sm:$0xff] }
  0xfc   :  { %749 = vmatprep.mubr.f32.mxu0 %v171_v8  ;;  %v213_v8 = vld [vmem:[%s10385_s0 + $0x5c0] sm:$0xff] }
  0xff   :  { %750 = vmatmul.mubr.f32.gmra.mrb[94].mxu0 %v170_v10 }
 0x100   :  { %754 = vmatprep.mubr.f32.mxu0 %v174_v11 }
 0x103   :  { %755 = vmatmul.mubr.f32.gmra.mrb[96].mxu0 %v173_v14  ;;  %v212_v14 = vld [vmem:[%s10385_s0 + $0x5b8] sm:$0xff] }
 0x104   :  { %759 = vmatprep.mubr.f32.mxu0 %v177_v15  ;;  %v216_v15 = vld [vmem:[%s10385_s0 + $0x5d8] sm:$0xff] }
 0x107   :  { %760 = vmatmul.mubr.f32.gmra.mrb[98].mxu0 %v176_v18 }
 0x108   :  { %764 = vmatprep.mubr.f32.mxu0 %v180_v19 }
 0x10b   :  { %765 = vmatmul.mubr.f32.gmra.mrb[100].mxu0 %v179_v22 }
 0x10c   :  { %769 = vmatprep.mubr.f32.mxu0 %v183_v23 }
 0x10f   :  { %770 = vmatmul.mubr.f32.gmra.mrb[102].mxu0 %v182_v24  ;;  %v215_v24 = vld [vmem:[%s10385_s0 + $0x5d0] sm:$0xff] }
 0x110   :  { %774 = vmatprep.mubr.f32.mxu0 %v186_v25  ;;  %v219_v25 = vld [vmem:[%s10385_s0 + $0x5f0] sm:$0xff] }
 0x111   :  { %v7477_v32 = vpop.f32.mrb[14].mxu1 }
 0x112   :  { %v7481_v34 = vpop.f32.mrb[15].mxu1 }
 0x113   :  { %775 = vmatmul.mubr.f32.gmra.mrb[104].mxu0 %v185_v28 }
 0x114   :  { %779 = vmatprep.mubr.f32.mxu0 %v189_v29 }
 0x115   :  { %v7497_v42 = vpop.f32.mrb[16].mxu1 }
 0x116   :  { %v7479_v33 = vpop.f32.mrb[0].mxu0  ;;  %v7501_v44 = vpop.f32.mrb[17].mxu1 }
 0x117   :  { %v518_v35 = vpop.f32.mrb[1].mxu0  ;;  %780 = vmatmul.mubr.f32.gmra.mrb[106].mxu0 %v188_v30  ;;  %v218_v30 = vld [vmem:[%s10385_s0 + $0x5e8] sm:$0xff] }
 0x118   :  { %784 = vmatprep.mubr.f32.mxu0 %v192_v31  ;;  %v31_v31 = vld [vmem:[%s10385_s0 + $0x10] sm:$0xff] }
 0x119   :  { %v7517_v52 = vpop.f32.mrb[18].mxu1 }
 0x11a   :  { %v7489_v38 = vpop.f32.mrb[2].mxu0  ;;  %v7521_v54 = vpop.f32.mrb[19].mxu1 }
 0x11b   :  { %v523_v39 = vpop.f32.mrb[3].mxu0  ;;  %785 = vmatmul.mubr.f32.gmra.mrb[108].mxu0 %v191_v36 }
 0x11c   :  { %789 = vmatprep.mubr.f32.mxu0 %v195_v37 }
 0x11d   :  { %v7537_v62 = vpop.f32.mrb[20].mxu1 }
 0x11e   :  { %v7499_v43 = vpop.f32.mrb[4].mxu0  ;;  %v7541_v3 = vpop.f32.mrb[21].mxu1 }
 0x11f   :  { %v528_v45 = vpop.f32.mrb[5].mxu0  ;;  %790 = vmatmul.mubr.f32.gmra.mrb[110].mxu0 %v194_v40  ;;  %v34_v40 = vld [vmem:[%s10385_s0 + $0x28] sm:$0xff] }
 0x120   :  { %794 = vmatprep.mubr.f32.mxu0 %v198_v41  ;;  %v37_v41 = vld [vmem:[%s10385_s0 + $0x40] sm:$0xff] }
 0x121   :  { %v7557_v18 = vpop.f32.mrb[22].mxu1 }
 0x122   :  { %v7509_v48 = vpop.f32.mrb[6].mxu0  ;;  %v7561_v22 = vpop.f32.mrb[23].mxu1 }
 0x123   :  { %v533_v49 = vpop.f32.mrb[7].mxu0  ;;  %795 = vmatmul.mubr.f32.gmra.mrb[112].mxu0 %v197_v46 }
 0x124   :  { %799 = vmatprep.mubr.f32.mxu0 %v201_v47  ;;  %v40_v47 = vld [vmem:[%s10385_s0 + $0x58] sm:$0xff]  ;;  %v43_v49 = vld [vmem:[%s10385_s0 + $0x70] sm:$0xff] }
 0x125   :  { %v7577_v35 = vpop.f32.mrb[24].mxu1 }
 0x126   :  { %v7519_v53 = vpop.f32.mrb[8].mxu0  ;;  %v7581_v37 = vpop.f32.mrb[25].mxu1 }
 0x127   :  { %v538_v55 = vpop.f32.mrb[9].mxu0  ;;  %800 = vmatmul.mubr.f32.gmra.mrb[114].mxu0 %v200_v50 }
 0x128   :  { %804 = vmatprep.mubr.f32.mxu0 %v204_v51 }
 0x129   :  { %v7600_v50 = vpop.f32.mrb[26].mxu1 }
 0x12a   :  { %v7529_v58 = vpop.f32.mrb[10].mxu0  ;;  %v7604_v55 = vpop.f32.mrb[27].mxu1 }
 0x12b   :  { %v543_v59 = vpop.f32.mrb[11].mxu0  ;;  %805 = vmatmul.mubr.f32.gmra.mrb[116].mxu0 %v203_v56 }
 0x12c   :  { %809 = vmatprep.mubr.f32.mxu0 %v207_v57  ;;  %v46_v57 = vld [vmem:[%s10385_s0 + $0x88] sm:$0xff]  ;;  %v49_v59 = vld [vmem:[%s10385_s0 + $0xa0] sm:$0xff] }
 0x12e   :  { %v7539_v63 = vpop.f32.mrb[12].mxu0 }
 0x12f   :  { %v548_v4 = vpop.f32.mrb[13].mxu0  ;;  %810 = vmatmul.mubr.f32.gmra.mrb[118].mxu0 %v206_v60 }
 0x130   :  { %814 = vmatprep.mubr.f32.mxu0 %v210_v61  ;;  %v52_v4 = vld [vmem:[%s10385_s0 + $0xb8] sm:$0xff] }
 0x132   :  { %v7549_v10 = vpop.f32.mrb[14].mxu0 }
 0x133   :  { %v553_v11 = vpop.f32.mrb[15].mxu0  ;;  %815 = vmatmul.mubr.f32.gmra.mrb[120].mxu0 %v209_v7  ;;  %v55_v7 = vld [vmem:[%s10385_s0 + $0xd0] sm:$0xff] }
 0x134   :  { %819 = vmatprep.mubr.f32.mxu0 %v213_v8  ;;  %v7624_v8 = vpop.f32.mrb[28].mxu1 }
 0x136   :  { %v7559_v19 = vpop.f32.mrb[16].mxu0 }
 0x137   :  { %v558_v23 = vpop.f32.mrb[17].mxu0  ;;  %820 = vmatmul.mubr.f32.gmra.mrb[122].mxu0 %v212_v14  ;;  %v7628_v14 = vpop.f32.mrb[29].mxu1 }
 0x138   :  { %824 = vmatprep.mubr.f32.mxu0 %v216_v15  ;;  %v58_v23 = vld [vmem:[%s10385_s0 + $0xe8] sm:$0xff] }
 0x13a   :  { %v7569_v28 = vpop.f32.mrb[18].mxu0 }
 0x13b   :  { %v563_v29 = vpop.f32.mrb[19].mxu0  ;;  %825 = vmatmul.mubr.f32.gmra.mrb[124].mxu0 %v215_v24  ;;  %v61_v24 = vld [vmem:[%s10385_s0 + $0x100] sm:$0xff] }
 0x13c   :  { %829 = vmatprep.mubr.f32.mxu0 %v219_v25 }
 0x13e   :  { %v7579_v36 = vpop.f32.mrb[20].mxu0 }
 0x13f   :  { %v568_v39 = vpop.f32.mrb[21].mxu0  ;;  %830 = vmatmul.mubr.f32.gmra.mrb[126].mxu0 %v218_v30  ;;  %v64_v30 = vld [vmem:[%s10385_s0 + $0x118] sm:$0xff] }
 0x140   :  { %5774 = vmatprep.mubr.msk.f32.mxu0 %vm257_vm0, %v31_v31  ;;  %v67_v31 = vld [vmem:[%s10385_s0 + $0x130] sm:$0xff]  ;;  %v7648_v39 = vpop.f32.mrb[30].mxu1 }
 0x142   :  { %v7590_v45 = vpop.f32.mrb[22].mxu0 }
 0x143   :  { %v573_v46 = vpop.f32.mrb[23].mxu0  ;;  %5775 = vmatmul.mubr.msk.f32.vlgmr.msra.gmra.mrb[128].mxu0 %vm257_vm0, %v34_v40 }
 0x144   :  { %5777 = vmatprep.mubr.msk.f32.mxu0 %vm257_vm0, %v37_v41  ;;  %v7652_v41 = vpop.f32.mrb[31].mxu1 }
 0x146   :  { %v7602_v51 = vpop.f32.mrb[24].mxu0 }
 0x147   :  { %v578_v56 = vpop.f32.mrb[25].mxu0  ;;  %5778 = vmatmul.mubr.msk.f32.gmra.mrb[130].mxu0 %vm257_vm0, %v40_v47  ;;  %v70_v47 = vld [vmem:[%s10385_s0 + $0x148] sm:$0xff] }
 0x148   :  { %5780 = vmatprep.mubr.msk.f32.mxu0 %vm257_vm0, %v43_v49  ;;  %v73_v49 = vld [vmem:[%s10385_s0 + $0x160] sm:$0xff] }
 0x14a   :  { %v7614_v60 = vpop.f32.mrb[26].mxu0 }
 0x14b   :  { %v583_v61 = vpop.f32.mrb[27].mxu0  ;;  %5781 = vmatmul.mubr.msk.f32.gmra.mrb[132].mxu0 %vm257_vm0, %v46_v57 }
 0x14c   :  { %5783 = vmatprep.mubr.msk.f32.mxu0 %vm257_vm0, %v49_v59  ;;  %v76_v59 = vld [vmem:[%s10385_s0 + $0x178] sm:$0xff]  ;;  %v79_v61 = vld [vmem:[%s10385_s0 + $0x190] sm:$0xff] }
 0x14e   :  { %v7626_v11 = vpop.f32.mrb[28].mxu0 }
 0x14f   :  { %v588_v15 = vpop.f32.mrb[29].mxu0  ;;  %5784 = vmatmul.mubr.msk.f32.gmra.mrb[134].mxu0 %vm257_vm0, %v52_v4  ;;  %v7672_v4 = vpop.f32.mrb[32].mxu1 }
 0x150   :  { %5786 = vmatprep.mubr.msk.f32.mxu0 %vm257_vm0, %v55_v7  ;;  %v7674_v15 = vpop.f32.mrb[33].mxu1 }
 0x152   :  { %v7638_v25 = vpop.f32.mrb[30].mxu0 }
 0x153   :  { %v593_v29 = vpop.f32.mrb[31].mxu0  ;;  %5787 = vmatmul.mubr.msk.f32.gmra.mrb[136].mxu0 %vm257_vm0, %v58_v23 }
 0x154   :  { %5789 = vmatprep.mubr.msk.f32.mxu0 %vm257_vm0, %v61_v24  ;;  %v82_v29 = vld [vmem:[%s10385_s0 + $0x1a8] sm:$0xff] }
 0x156   :  { %v7650_v40 = vpop.f32.mrb[32].mxu0 }
 0x157   :  { %10455 = vst [vmem:[#allocation3_spill] sm:$0xff] %v7650_v40  ;;  %v598_v46 = vpop.f32.mrb[33].mxu0  ;;  %5790 = vmatmul.mubr.msk.f32.gmra.mrb[138].mxu0 %vm257_vm0, %v64_v30 }
 0x158   :  { %5792 = vmatprep.mubr.msk.f32.mxu0 %vm257_vm0, %v67_v31 }
 0x15a   :  { %v7662_v56 = vpop.f32.mrb[34].mxu0 }
 0x15b   :  { %v603_v57 = vpop.f32.mrb[35].mxu0  ;;  %5793 = vmatmul.mubr.msk.f32.gmra.mrb[140].mxu0 %vm257_vm0, %v70_v47  ;;  %v7688_v47 = vpop.f32.mrb[34].mxu1 }
 0x15c   :  { %5795 = vmatprep.mubr.msk.f32.mxu0 %vm257_vm0, %v73_v49  ;;  %v7690_v57 = vpop.f32.mrb[35].mxu1 }
 0x15e   :  { %v606_v7 = vpop.f32.mrb[36].mxu0 }
 0x15f   :  { %v608_v23 = vpop.f32.mrb[37].mxu0  ;;  %5796 = vmatmul.mubr.msk.f32.gmra.mrb[142].mxu0 %vm257_vm0, %v76_v59  ;;  %v7678_v24 = vadd.f32 %v7397_v2, %v606_v7 }
 0x160   :  { %5798 = vmatprep.mubr.msk.f32.mxu0 %vm257_vm0, %v79_v61 }
 0x161   :  { %10456 = vst [vmem:[#allocation4_spill] sm:$0xff] %v7678_v24  ;;  %v7698_v24 = vpop.f32.mrb[36].mxu1 }
 0x162   :  { %v611_v30 = vpop.f32.mrb[38].mxu0 }
 0x163   :  { %v7685_v31 = vadd.f32 %v7395_v1, %v611_v30  ;;  %v613_v46 = vpop.f32.mrb[39].mxu0  ;;  %5799 = vmatmul.mubr.msk.f32.gmra.mrb[144].mxu0 %vm257_vm0, %v82_v29  ;;  %v7700_v30 = vpop.f32.mrb[37].mxu1 }
 0x165   :  { %10457 = vst [vmem:[#allocation5_spill] sm:$0xff] %v7685_v31 }
 0x166   :  { %v616_v49 = vpop.f32.mrb[40].mxu0 }
 0x167   :  { %v618_v2 = vpop.f32.mrb[41].mxu0  ;;  %v7693_v59 = vadd.f32 %v7407_v6, %v616_v49  ;;  %v7708_v49 = vpop.f32.mrb[38].mxu1 }
 0x169   :  { %10458 = vst [vmem:[#allocation6_spill] sm:$0xff] %v7693_v59 }
 0x16a   :  { %v621_v61 = vpop.f32.mrb[42].mxu0 }
 0x16b   :  { %v7696_v7 = vadd.f32 %v7405_v5, %v621_v61  ;;  %v623_v23 = vpop.f32.mrb[43].mxu0  ;;  %v7710_v5 = vpop.f32.mrb[39].mxu1 }
 0x16d   :  { %10459 = vst [vmem:[#allocation7_spill] sm:$0xff] %v7696_v7 }
 0x16e   :  { %v626_v1 = vpop.f32.mrb[44].mxu0 }
 0x16f   :  { %v628_v29 = vpop.f32.mrb[45].mxu0  ;;  %v7703_v46 = vadd.f32 %v7417_v0, %v626_v1  ;;  %v7718_v1 = vpop.f32.mrb[40].mxu1 }
 0x171   :  { %10460 = vst [vmem:[#allocation8_spill] sm:$0xff] %v7703_v46 }
 0x172   :  { %v631_v31 = vpop.f32.mrb[46].mxu0 }
 0x173   :  { %v7706_v2 = vadd.f32 %v7415_v9, %v631_v31  ;;  %v633_v6 = vpop.f32.mrb[47].mxu0  ;;  %v7720_v9 = vpop.f32.mrb[41].mxu1 }
 0x175   :  { %10461 = vst [vmem:[#allocation9_spill] sm:$0xff] %v7706_v2 }
 0x176   :  { %v636_v59 = vpop.f32.mrb[48].mxu0 }
 0x177   :  { %v638_v61 = vpop.f32.mrb[49].mxu0  ;;  %v7713_v23 = vadd.f32 %v7427_v13, %v636_v59  ;;  %v7728_v59 = vpop.f32.mrb[42].mxu1 }
 0x179   :  { %10462 = vst [vmem:[#allocation10_spill] sm:$0xff] %v7713_v23 }
 0x17a   :  { %v641_v7 = vpop.f32.mrb[50].mxu0 }
 0x17b   :  { %v7716_v29 = vadd.f32 %v7425_v12, %v641_v7  ;;  %v643_v0 = vpop.f32.mrb[51].mxu0  ;;  %v7730_v12 = vpop.f32.mrb[43].mxu1 }
 0x17d   :  { %10463 = vst [vmem:[#allocation11_spill] sm:$0xff] %v7716_v29 }
 0x17e   :  { %v646_v46 = vpop.f32.mrb[52].mxu0 }
 0x17f   :  { %v648_v31 = vpop.f32.mrb[53].mxu0  ;;  %v7723_v6 = vadd.f32 %v7437_v17, %v646_v46  ;;  %v7738_v46 = vpop.f32.mrb[44].mxu1 }
 0x181   :  { %10464 = vst [vmem:[#allocation12_spill] sm:$0xff] %v7723_v6 }
 0x182   :  { %v651_v2 = vpop.f32.mrb[54].mxu0 }
 0x183   :  { %v7726_v61 = vadd.f32 %v7435_v16, %v651_v2  ;;  %v653_v13 = vpop.f32.mrb[55].mxu0  ;;  %v7740_v16 = vpop.f32.mrb[45].mxu1 }
 0x185   :  { %10465 = vst [vmem:[#allocation13_spill] sm:$0xff] %v7726_v61 }
 0x186   :  { %v656_v23 = vpop.f32.mrb[56].mxu0 }
 0x187   :  { %v658_v7 = vpop.f32.mrb[57].mxu0  ;;  %v7733_v0 = vadd.f32 %v7447_v21, %v656_v23 }
 0x189   :  { %10466 = vst [vmem:[#allocation14_spill] sm:$0xff] %v7733_v0 }
 0x18a   :  { %v661_v29 = vpop.f32.mrb[58].mxu0 }
 0x18b   :  { %v7736_v31 = vadd.f32 %v7445_v20, %v661_v29  ;;  %v663_v17 = vpop.f32.mrb[59].mxu0 }
 0x18d   :  { %10467 = vst [vmem:[#allocation15_spill] sm:$0xff] %v7736_v31 }
 0x18e   :  { %v666_v6 = vpop.f32.mrb[60].mxu0 }
 0x18f   :  { %v668_v2 = vpop.f32.mrb[61].mxu0  ;;  %v7743_v13 = vadd.f32 %v7463_v27, %v666_v6 }
 0x192   :  { %v671_v61 = vpop.f32.mrb[62].mxu0 }
 0x193   :  { %v7746_v7 = vadd.f32 %v7461_v26, %v671_v61  ;;  %v673_v21 = vpop.f32.mrb[63].mxu0 }
 0x196   :  { %v676_v23 = vpop.f32.mrb[64].mxu0 }
 0x197   :  { %v678_v0 = vpop.f32.mrb[65].mxu0  ;;  %v7749_v20 = vadd.f32 %v7481_v34, %v676_v23 }
 0x19a   :  { %v681_v29 = vpop.f32.mrb[66].mxu0 }
 0x19b   :  { %v7752_v17 = vadd.f32 %v7477_v32, %v681_v29  ;;  %v683_v31 = vpop.f32.mrb[67].mxu0 }
 0x19e   :  { %v686_v40 = vpop.f32.mrb[68].mxu0 }
 0x19f   :  { %v688_v2 = vpop.f32.mrb[69].mxu0  ;;  %v7755_v27 = vadd.f32 %v7501_v44, %v686_v40 }
 0x1a2   :  { %v691_v6 = vpop.f32.mrb[70].mxu0 }
 0x1a3   :  { %v7758_v26 = vadd.f32 %v7497_v42, %v691_v6  ;;  %v693_v61 = vpop.f32.mrb[71].mxu0 }
 0x1a6   :  { %v696_v21 = vpop.f32.mrb[72].mxu0 }
 0x1a7   :  { %v698_v0 = vpop.f32.mrb[73].mxu0  ;;  %v7761_v34 = vadd.f32 %v7521_v54, %v696_v21 }
 0x1aa   :  { %v701_v23 = vpop.f32.mrb[74].mxu0 }
 0x1ab   :  { %v7764_v32 = vadd.f32 %v7517_v52, %v701_v23  ;;  %v703_v31 = vpop.f32.mrb[75].mxu0 }
 0x1ae   :  { %v706_v29 = vpop.f32.mrb[76].mxu0 }
 0x1af   :  { %v708_v2 = vpop.f32.mrb[77].mxu0  ;;  %v7767_v44 = vadd.f32 %v7541_v3, %v706_v29 }
 0x1b2   :  { %v711_v40 = vpop.f32.mrb[78].mxu0 }
 0x1b3   :  { %v7770_v42 = vadd.f32 %v7537_v62, %v711_v40  ;;  %v713_v6 = vpop.f32.mrb[79].mxu0 }
 0x1b6   :  { %v716_v61 = vpop.f32.mrb[80].mxu0 }
 0x1b7   :  { %v718_v0 = vpop.f32.mrb[81].mxu0  ;;  %v7773_v54 = vadd.f32 %v7561_v22, %v716_v61 }
 0x1ba   :  { %v721_v21 = vpop.f32.mrb[82].mxu0 }
 0x1bb   :  { %v7776_v52 = vadd.f32 %v7557_v18, %v721_v21  ;;  %v723_v23 = vpop.f32.mrb[83].mxu0 }
 0x1be   :  { %v726_v31 = vpop.f32.mrb[84].mxu0 }
 0x1bf   :  { %v728_v2 = vpop.f32.mrb[85].mxu0  ;;  %v7779_v3 = vadd.f32 %v7581_v37, %v726_v31 }
 0x1c2   :  { %v731_v29 = vpop.f32.mrb[86].mxu0 }
 0x1c3   :  { %v7782_v62 = vadd.f32 %v7577_v35, %v731_v29  ;;  %v733_v40 = vpop.f32.mrb[87].mxu0 }
 0x1c6   :  { %v736_v6 = vpop.f32.mrb[88].mxu0 }
 0x1c7   :  { %v738_v0 = vpop.f32.mrb[89].mxu0  ;;  %v7785_v22 = vadd.f32 %v7604_v55, %v736_v6 }
 0x1ca   :  { %v741_v61 = vpop.f32.mrb[90].mxu0 }
 0x1cb   :  { %v7788_v18 = vadd.f32 %v7600_v50, %v741_v61  ;;  %v743_v21 = vpop.f32.mrb[91].mxu0 }
 0x1ce   :  { %v746_v23 = vpop.f32.mrb[92].mxu0 }
 0x1cf   :  { %v748_v2 = vpop.f32.mrb[93].mxu0  ;;  %v7791_v37 = vadd.f32 %v7628_v14, %v746_v23 }
 0x1d2   :  { %v751_v31 = vpop.f32.mrb[94].mxu0 }
 0x1d3   :  { %v7794_v35 = vadd.f32 %v7624_v8, %v751_v31  ;;  %v753_v29 = vpop.f32.mrb[95].mxu0 }
 0x1d5   :  { %10468 = vst [vmem:[#allocation16_spill] sm:$0xff] %v7794_v35 }
 0x1d6   :  { %v756_v40 = vpop.f32.mrb[96].mxu0 }
 0x1d7   :  { %v758_v0 = vpop.f32.mrb[97].mxu0  ;;  %v7797_v55 = vadd.f32 %v7652_v41, %v756_v40 }
 0x1d9   :  { %10469 = vst [vmem:[#allocation17_spill] sm:$0xff] %v7797_v55 }
 0x1da   :  { %v761_v6 = vpop.f32.mrb[98].mxu0 }
 0x1db   :  { %v7800_v50 = vadd.f32 %v7648_v39, %v761_v6  ;;  %v763_v61 = vpop.f32.mrb[99].mxu0 }
 0x1dd   :  { %10470 = vst [vmem:[#allocation18_spill] sm:$0xff] %v7800_v50 }
 0x1de   :  { %v766_v21 = vpop.f32.mrb[100].mxu0 }
 0x1df   :  { %v768_v2 = vpop.f32.mrb[101].mxu0  ;;  %v7803_v14 = vadd.f32 %v7674_v15, %v766_v21 }
 0x1e1   :  { %10471 = vst [vmem:[#allocation19_spill] sm:$0xff] %v7803_v14 }
 0x1e2   :  { %v771_v23 = vpop.f32.mrb[102].mxu0 }
 0x1e3   :  { %v7806_v8 = vadd.f32 %v7672_v4, %v771_v23  ;;  %v773_v31 = vpop.f32.mrb[103].mxu0 }
 0x1e5   :  { %10472 = vst [vmem:[#allocation20_spill] sm:$0xff] %v7806_v8 }
 0x1e6   :  { %v776_v29 = vpop.f32.mrb[104].mxu0 }
 0x1e7   :  { %v778_v0 = vpop.f32.mrb[105].mxu0  ;;  %v7809_v41 = vadd.f32 %v7690_v57, %v776_v29 }
 0x1e9   :  { %10473 = vst [vmem:[#allocation21_spill] sm:$0xff] %v7809_v41 }
 0x1ea   :  { %v781_v40 = vpop.f32.mrb[106].mxu0 }
 0x1eb   :  { %v7812_v39 = vadd.f32 %v7688_v47, %v781_v40  ;;  %v783_v6 = vpop.f32.mrb[107].mxu0 }
 0x1ee   :  { %v786_v61 = vpop.f32.mrb[108].mxu0 }
 0x1ef   :  { %v788_v2 = vpop.f32.mrb[109].mxu0  ;;  %v7815_v15 = vadd.f32 %v7700_v30, %v786_v61 }
 0x1f2   :  { %v791_v21 = vpop.f32.mrb[110].mxu0 }
 0x1f3   :  { %v7818_v4 = vadd.f32 %v7698_v24, %v791_v21  ;;  %v793_v23 = vpop.f32.mrb[111].mxu0 }
 0x1f6   :  { %v796_v31 = vpop.f32.mrb[112].mxu0 }
 0x1f7   :  { %v798_v0 = vpop.f32.mrb[113].mxu0  ;;  %v7821_v57 = vadd.f32 %v7710_v5, %v796_v31 }
 0x1fa   :  { %v801_v29 = vpop.f32.mrb[114].mxu0 }
 0x1fb   :  { %v7824_v47 = vadd.f32 %v7708_v49, %v801_v29  ;;  %v803_v40 = vpop.f32.mrb[115].mxu0 }
 0x1fe   :  { %v806_v6 = vpop.f32.mrb[116].mxu0 }
 0x1ff   :  { %v808_v2 = vpop.f32.mrb[117].mxu0  ;;  %v7827_v30 = vadd.f32 %v7720_v9, %v806_v6 }
 0x202   :  { %v811_v61 = vpop.f32.mrb[118].mxu0 }
 0x203   :  { %v7830_v24 = vadd.f32 %v7718_v1, %v811_v61  ;;  %v813_v21 = vpop.f32.mrb[119].mxu0 }
 0x206   :  { %v816_v23 = vpop.f32.mrb[120].mxu0 }
 0x207   :  { %v818_v0 = vpop.f32.mrb[121].mxu0  ;;  %v7833_v5 = vadd.f32 %v7730_v12, %v816_v23 }
 0x209   :  { %10474 = vst [vmem:[#allocation22_spill] sm:$0xff] %v7833_v5 }
 0x20a   :  { %v821_v31 = vpop.f32.mrb[122].mxu0 }
 0x20b   :  { %v7836_v49 = vadd.f32 %v7728_v59, %v821_v31  ;;  %v823_v29 = vpop.f32.mrb[123].mxu0 }
 0x20d   :  { %10475 = vst [vmem:[#allocation23_spill] sm:$0xff] %v7836_v49 }
 0x20e   :  { %v826_v40 = vpop.f32.mrb[124].mxu0 }
 0x20f   :  { %v828_v2 = vpop.f32.mrb[125].mxu0  ;;  %v7839_v9 = vadd.f32 %v7740_v16, %v826_v40 }
 0x211   :  { %10476 = vst [vmem:[#allocation24_spill] sm:$0xff] %v7839_v9 }
 0x212   :  { %v831_v6 = vpop.f32.mrb[126].mxu0 }
 0x213   :  { %v7842_v1 = vadd.f32 %v7738_v46, %v831_v6  ;;  %v833_v61 = vpop.f32.mrb[127].mxu0 }
 0x215   :  { %10477 = vst [vmem:[#allocation25_spill] sm:$0xff] %v7842_v1 }
 0x216   :  { %v5776_v21 = vpop.f32.mrb[128].mxu0 }
 0x217   :  { %v7845_v0 = vadd.f32 %v5776_v21, %v7489_v38  ;;  %v901_v12 = vpop.f32.mrb[129].mxu0 }
 0x218   :  { %v7848_v23 = vadd.f32 %v901_v12, %v7479_v33 }
 0x219   :  { %10478 = vst [vmem:[#allocation26_spill] sm:$0xff] %v7845_v0  ;;  %v1355_v59 = vmul.f32 %v7845_v0, %v7845_v0  ;;  %v1221_v16 = vsel %vm257_vm0, %v7845_v0, 0.0 }
 0x21a   :  { %10479 = vst [vmem:[#allocation27_spill] sm:$0xff] %v7848_v23  ;;  %v1220_v31 = vsel %vm257_vm0, %v7848_v23, 0.0  ;;  %v1354_v46 = vmul.f32 %v7848_v23, %v7848_v23  ;;  %v5779_v29 = vpop.f32.mrb[130].mxu0 }
 0x21b   :  { %v7859_v38 = vadd.f32 %v5779_v29, %v7509_v48  ;;  %v911_v40 = vpop.f32.mrb[131].mxu0  ;;  %v1419_v33 = vsel %vm257_vm0, %v1355_v59, 0.0  ;;  %v1222_v61 = vadd.f32 %v1221_v16, %v1220_v31 }
 0x21c   :  { %v1418_v2 = vsel %vm257_vm0, %v1354_v46, 0.0  ;;  %v7864_v6 = vadd.f32 %v911_v40, %v7499_v43 }
 0x21d   :  { %v1357_v21 = vmul.f32 %v7859_v38, %v7859_v38  ;;  %v1420_v29 = vadd.f32 %v1419_v33, %v1418_v2  ;;  %v1225_v43 = vsel %vm257_vm0, %v7859_v38, 0.0 }
 0x21e   :  { %v1223_v12 = vsel %vm257_vm0, %v7864_v6, 0.0  ;;  %v1356_v0 = vmul.f32 %v7864_v6, %v7864_v6  ;;  %v5782_v48 = vpop.f32.mrb[132].mxu0 }
 0x21f   :  { %v1224_v23 = vadd.f32 %v1223_v12, %v1222_v61  ;;  %v7873_v59 = vadd.f32 %v5782_v48, %v7529_v58  ;;  %v921_v46 = vpop.f32.mrb[133].mxu0  ;;  %v1423_v9 = vsel %vm257_vm0, %v1357_v21, 0.0 }
 0x220   :  { %v1421_v16 = vsel %vm257_vm0, %v1356_v0, 0.0  ;;  %v7879_v31 = vadd.f32 %v921_v46, %v7519_v53 }
 0x221   :  { %v1422_v40 = vadd.f32 %v1421_v16, %v1420_v29  ;;  %v1226_v1 = vadd.f32 %v1225_v43, %v1224_v23  ;;  %v1359_v33 = vmul.f32 %v7873_v59, %v7873_v59  ;;  %v1229_v23 = vsel %vm257_vm0, %v7873_v59, 0.0 }
 0x222   :  { %v1227_v58 = vsel %vm257_vm0, %v7879_v31, 0.0  ;;  %v1358_v2 = vmul.f32 %v7879_v31, %v7879_v31  ;;  %v5785_v61 = vpop.f32.mrb[134].mxu0 }
 0x223   :  { %v1228_v12 = vadd.f32 %v1227_v58, %v1226_v1  ;;  %v1424_v48 = vadd.f32 %v1423_v9, %v1422_v40  ;;  %v7889_v0 = vadd.f32 %v5785_v61, %v7549_v10  ;;  %v931_v53 = vpop.f32.mrb[135].mxu0  ;;  %v1427_v16 = vsel %vm257_vm0, %v1359_v33, 0.0 }
 0x224   :  { %v1425_v21 = vsel %vm257_vm0, %v1358_v2, 0.0  ;;  %v7895_v29 = vadd.f32 %v931_v53, %v7539_v63 }
 0x225   :  { %v1426_v46 = vadd.f32 %v1425_v21, %v1424_v48  ;;  %v1230_v43 = vadd.f32 %v1229_v23, %v1228_v12  ;;  %v1361_v1 = vmul.f32 %v7889_v0, %v7889_v0  ;;  %v1233_v12 = vsel %vm257_vm0, %v7889_v0, 0.0 }
 0x226   :  { %v1231_v10 = vsel %vm257_vm0, %v7895_v29, 0.0  ;;  %v1360_v9 = vmul.f32 %v7895_v29, %v7895_v29  ;;  %v5788_v40 = vpop.f32.mrb[136].mxu0 }
 0x227   :  { %v1232_v58 = vadd.f32 %v1231_v10, %v1230_v43  ;;  %v1428_v61 = vadd.f32 %v1427_v16, %v1426_v46  ;;  %v7905_v2 = vadd.f32 %v5788_v40, %v7569_v28  ;;  %v941_v63 = vpop.f32.mrb[137].mxu0  ;;  %v1431_v21 = vsel %vm257_vm0, %v1361_v1, 0.0 }
 0x228   :  { %v1429_v33 = vsel %vm257_vm0, %v1360_v9, 0.0  ;;  %v7911_v48 = vadd.f32 %v941_v63, %v7559_v19 }
 0x229   :  { %v1430_v53 = vadd.f32 %v1429_v33, %v1428_v61  ;;  %v1234_v23 = vadd.f32 %v1233_v12, %v1232_v58  ;;  %v1363_v43 = vmul.f32 %v7905_v2, %v7905_v2  ;;  %v1237_v58 = vsel %vm257_vm0, %v7905_v2, 0.0 }
 0x22a   :  { %v1235_v28 = vsel %vm257_vm0, %v7911_v48, 0.0  ;;  %v1362_v46 = vmul.f32 %v7911_v48, %v7911_v48  ;;  %v5791_v16 = vpop.f32.mrb[138].mxu0 }
 0x22b   :  { %v1236_v10 = vadd.f32 %v1235_v28, %v1234_v23  ;;  %v1432_v40 = vadd.f32 %v1431_v21, %v1430_v53  ;;  %v7921_v9 = vadd.f32 %v5791_v16, %v7590_v45  ;;  %v951_v19 = vpop.f32.mrb[139].mxu0  ;;  %v1435_v33 = vsel %vm257_vm0, %v1363_v43, 0.0 }
 0x22c   :  { %v1433_v1 = vsel %vm257_vm0, %v1362_v46, 0.0  ;;  %v7927_v61 = vadd.f32 %v951_v19, %v7579_v36 }
 0x22d   :  { %v1434_v63 = vadd.f32 %v1433_v1, %v1432_v40  ;;  %v1238_v12 = vadd.f32 %v1237_v58, %v1236_v10  ;;  %v1365_v23 = vmul.f32 %v7921_v9, %v7921_v9  ;;  %v1241_v10 = vsel %vm257_vm0, %v7921_v9, 0.0 }
 0x22e   :  { %v1239_v45 = vsel %vm257_vm0, %v7927_v61, 0.0  ;;  %v1364_v53 = vmul.f32 %v7927_v61, %v7927_v61  ;;  %v5794_v21 = vpop.f32.mrb[140].mxu0 }
 0x22f   :  { %v1240_v28 = vadd.f32 %v1239_v45, %v1238_v12  ;;  %v1436_v16 = vadd.f32 %v1435_v33, %v1434_v63  ;;  %v7937_v46 = vadd.f32 %v5794_v21, %v7614_v60  ;;  %v961_v36 = vpop.f32.mrb[141].mxu0  ;;  %v1439_v1 = vsel %vm257_vm0, %v1365_v23, 0.0 }
 0x230   :  { %v1437_v43 = vsel %vm257_vm0, %v1364_v53, 0.0  ;;  %v7943_v40 = vadd.f32 %v961_v36, %v7602_v51 }
 0x231   :  { %10480 = vst [vmem:[#allocation28_spill] sm:$0xff] %v7937_v46  ;;  %v1438_v19 = vadd.f32 %v1437_v43, %v1436_v16  ;;  %v1242_v58 = vadd.f32 %v1241_v10, %v1240_v28  ;;  %v1367_v12 = vmul.f32 %v7937_v46, %v7937_v46  ;;  %v1245_v28 = vsel %vm257_vm0, %v7937_v46, 0.0 }
 0x232   :  { %v1243_v60 = vsel %vm257_vm0, %v7943_v40, 0.0  ;;  %v1366_v63 = vmul.f32 %v7943_v40, %v7943_v40  ;;  %v5797_v33 = vpop.f32.mrb[142].mxu0 }
 0x233   :  { %v1244_v45 = vadd.f32 %v1243_v60, %v1242_v58  ;;  %v1440_v21 = vadd.f32 %v1439_v1, %v1438_v19  ;;  %v7953_v53 = vadd.f32 %v5797_v33, %v7638_v25  ;;  %v971_v51 = vpop.f32.mrb[143].mxu0  ;;  %v1443_v43 = vsel %vm257_vm0, %v1367_v12, 0.0 }
 0x234   :  { %v1441_v23 = vsel %vm257_vm0, %v1366_v63, 0.0  ;;  %v7959_v16 = vadd.f32 %v971_v51, %v7626_v11 }
 0x235   :  { %10481 = vst [vmem:[#allocation29_spill] sm:$0xff] %v7953_v53  ;;  %v1442_v36 = vadd.f32 %v1441_v23, %v1440_v21  ;;  %v1246_v10 = vadd.f32 %v1245_v28, %v1244_v45  ;;  %v1369_v58 = vmul.f32 %v7953_v53, %v7953_v53  ;;  %v1249_v45 = vsel %vm257_vm0, %v7953_v53, 0.0  ;;  %v10483_v21 = vld [vmem:[#allocation3_spill] sm:$0xff] }
 0x236   :  { %v1247_v25 = vsel %vm257_vm0, %v7959_v16, 0.0  ;;  %v1368_v19 = vmul.f32 %v7959_v16, %v7959_v16  ;;  %v5800_v1 = vpop.f32.mrb[144].mxu0 }
 0x237   :  { %v1248_v60 = vadd.f32 %v1247_v25, %v1246_v10  ;;  %v1444_v33 = vadd.f32 %v1443_v43, %v1442_v36  ;;  %v7969_v63 = vadd.f32 %v5800_v1, %v7662_v56  ;;  %v981_v11 = vpop.f32.mrb[145].mxu0  ;;  %v1447_v46 = vsel %vm257_vm0, %v1369_v58, 0.0  ;;  %v10484_v1 = vld [vmem:[#allocation4_spill] sm:$0xff] }
 0x238   :  { %v1445_v12 = vsel %vm257_vm0, %v1368_v19, 0.0  ;;  %v7975_v51 = vadd.f32 %v981_v11, %v10483_v21  ;;  %v1372_v19 = vmul.f32 %v10484_v1, %v10484_v1 }
 0x239   :  { %10482 = vst [vmem:[#allocation30_spill] sm:$0xff] %v7969_v63  ;;  %v1446_v28 = vadd.f32 %v1445_v12, %v1444_v33  ;;  %v1250_v23 = vadd.f32 %v1249_v45, %v1248_v60  ;;  %v1371_v10 = vmul.f32 %v7969_v63, %v7969_v63  ;;  %v1253_v33 = vsel %vm257_vm0, %v7969_v63, 0.0  ;;  %v10485_v12 = vld [vmem:[#allocation5_spill] sm:$0xff]  ;;  %v10486_v63 = vld [vmem:[#allocation6_spill] sm:$0xff] }
 0x23a   :  { %v1251_v56 = vsel %vm257_vm0, %v7975_v51, 0.0  ;;  %v1370_v36 = vmul.f32 %v7975_v51, %v7975_v51  ;;  %v1255_v45 = vsel %vm257_vm0, %v10484_v1, 0.0  ;;  %v1373_v21 = vmul.f32 %v10485_v12, %v10485_v12  ;;  %v10487_v1 = vld [vmem:[#allocation7_spill] sm:$0xff] }
 0x23b   :  { %v1252_v43 = vadd.f32 %v1251_v56, %v1250_v23  ;;  %v1448_v25 = vadd.f32 %v1447_v46, %v1446_v28  ;;  %v1451_v53 = vsel %vm257_vm0, %v1371_v10, 0.0  ;;  %v1453_v28 = vsel %vm257_vm0, %v1372_v19, 0.0 }
 0x23c   :  { %v1449_v60 = vsel %vm257_vm0, %v1370_v36, 0.0  ;;  %v1257_v56 = vsel %vm257_vm0, %v10485_v12, 0.0  ;;  %v1374_v36 = vmul.f32 %v10486_v63, %v10486_v63  ;;  %v1375_v10 = vmul.f32 %v10487_v1, %v10487_v1 }
 0x23d   :  { %v1254_v58 = vadd.f32 %v1253_v33, %v1252_v43  ;;  %v1450_v11 = vadd.f32 %v1449_v60, %v1448_v25  ;;  %v1455_v33 = vsel %vm257_vm0, %v1373_v21, 0.0  ;;  %v1259_v60 = vsel %vm257_vm0, %v10486_v63, 0.0 }
 0x23e   :  { %v1457_v19 = vsel %vm257_vm0, %v1374_v36, 0.0  ;;  %v1459_v21 = vsel %vm257_vm0, %v1375_v10, 0.0 }
 0x23f   :  { %v1256_v23 = vadd.f32 %v1255_v45, %v1254_v58  ;;  %v1452_v46 = vadd.f32 %v1451_v53, %v1450_v11  ;;  %v1261_v11 = vsel %vm257_vm0, %v10487_v1, 0.0  ;;  %v10488_v45 = vld [vmem:[#allocation8_spill] sm:$0xff] }
 0x240   :  { %v1376_v12 = vmul.f32 %v10488_v45, %v10488_v45 }
 0x241   :  { %v1258_v43 = vadd.f32 %v1257_v56, %v1256_v23  ;;  %v1454_v25 = vadd.f32 %v1453_v28, %v1452_v46  ;;  %v1263_v28 = vsel %vm257_vm0, %v10488_v45, 0.0  ;;  %v10489_v56 = vld [vmem:[#allocation9_spill] sm:$0xff] }
 0x242   :  { %v1377_v63 = vmul.f32 %v10489_v56, %v10489_v56  ;;  %v1461_v36 = vsel %vm257_vm0, %v1376_v12, 0.0 }
 0x243   :  { %v1260_v58 = vadd.f32 %v1259_v60, %v1258_v43  ;;  %v1456_v53 = vadd.f32 %v1455_v33, %v1454_v25  ;;  %v1265_v33 = vsel %vm257_vm0, %v10489_v56, 0.0  ;;  %v10490_v60 = vld [vmem:[#allocation10_spill] sm:$0xff] }
 0x244   :  { %v1378_v1 = vmul.f32 %v10490_v60, %v10490_v60  ;;  %v1463_v10 = vsel %vm257_vm0, %v1377_v63, 0.0 }
 0x245   :  { %v1262_v23 = vadd.f32 %v1261_v11, %v1260_v58  ;;  %v1458_v46 = vadd.f32 %v1457_v19, %v1456_v53  ;;  %v1267_v19 = vsel %vm257_vm0, %v10490_v60, 0.0  ;;  %v10491_v11 = vld [vmem:[#allocation11_spill] sm:$0xff] }
 0x246   :  { %v1379_v45 = vmul.f32 %v10491_v11, %v10491_v11  ;;  %v1465_v12 = vsel %vm257_vm0, %v1378_v1, 0.0 }
 0x247   :  { %v1264_v43 = vadd.f32 %v1263_v28, %v1262_v23  ;;  %v1460_v25 = vadd.f32 %v1459_v21, %v1458_v46  ;;  %v1269_v21 = vsel %vm257_vm0, %v10491_v11, 0.0  ;;  %v10492_v28 = vld [vmem:[#allocation12_spill] sm:$0xff] }
 0x248   :  { %v1380_v56 = vmul.f32 %v10492_v28, %v10492_v28  ;;  %v1467_v63 = vsel %vm257_vm0, %v1379_v45, 0.0 }
 0x249   :  { %v1266_v58 = vadd.f32 %v1265_v33, %v1264_v43  ;;  %v1462_v53 = vadd.f32 %v1461_v36, %v1460_v25  ;;  %v1271_v36 = vsel %vm257_vm0, %v10492_v28, 0.0  ;;  %v10493_v33 = vld [vmem:[#allocation13_spill] sm:$0xff] }
 0x24a   :  { %v1381_v60 = vmul.f32 %v10493_v33, %v10493_v33  ;;  %v1469_v1 = vsel %vm257_vm0, %v1380_v56, 0.0 }
 0x24b   :  { %v1268_v23 = vadd.f32 %v1267_v19, %v1266_v58  ;;  %v1464_v46 = vadd.f32 %v1463_v10, %v1462_v53  ;;  %v1273_v10 = vsel %vm257_vm0, %v10493_v33, 0.0  ;;  %v10494_v19 = vld [vmem:[#allocation14_spill] sm:$0xff] }
 0x24c   :  { %v1382_v11 = vmul.f32 %v10494_v19, %v10494_v19  ;;  %v1471_v45 = vsel %vm257_vm0, %v1381_v60, 0.0 }
 0x24d   :  { %v1270_v43 = vadd.f32 %v1269_v21, %v1268_v23  ;;  %v1466_v25 = vadd.f32 %v1465_v12, %v1464_v46  ;;  %v1275_v12 = vsel %vm257_vm0, %v10494_v19, 0.0  ;;  %v10495_v21 = vld [vmem:[#allocation15_spill] sm:$0xff] }
 0x24e   :  { %v1383_v28 = vmul.f32 %v10495_v21, %v10495_v21  ;;  %v1473_v56 = vsel %vm257_vm0, %v1382_v11, 0.0 }
 0x24f   :  { %v1272_v58 = vadd.f32 %v1271_v36, %v1270_v43  ;;  %v1468_v53 = vadd.f32 %v1467_v63, %v1466_v25  ;;  %v1277_v63 = vsel %vm257_vm0, %v10495_v21, 0.0  ;;  %v1384_v36 = vmul.f32 %v7743_v13, %v7743_v13 }
 0x250   :  { %v1475_v60 = vsel %vm257_vm0, %v1383_v28, 0.0 }
 0x251   :  { %v1274_v23 = vadd.f32 %v1273_v10, %v1272_v58  ;;  %v1470_v46 = vadd.f32 %v1469_v1, %v1468_v53  ;;  %v1279_v1 = vsel %vm257_vm0, %v7743_v13, 0.0  ;;  %v1385_v10 = vmul.f32 %v7746_v7, %v7746_v7 }
 0x252   :  { %v1477_v11 = vsel %vm257_vm0, %v1384_v36, 0.0 }
 0x253   :  { %v1276_v43 = vadd.f32 %v1275_v12, %v1274_v23  ;;  %v1472_v25 = vadd.f32 %v1471_v45, %v1470_v46  ;;  %v1281_v45 = vsel %vm257_vm0, %v7746_v7, 0.0  ;;  %v1386_v12 = vmul.f32 %v7749_v20, %v7749_v20 }
 0x254   :  { %v1479_v28 = vsel %vm257_vm0, %v1385_v10, 0.0 }
 0x255   :  { %v1278_v58 = vadd.f32 %v1277_v63, %v1276_v43  ;;  %v1474_v53 = vadd.f32 %v1473_v56, %v1472_v25  ;;  %v1283_v56 = vsel %vm257_vm0, %v7749_v20, 0.0  ;;  %v1387_v63 = vmul.f32 %v7752_v17, %v7752_v17 }
 0x256   :  { %v1481_v36 = vsel %vm257_vm0, %v1386_v12, 0.0 }
 0x257   :  { %v1280_v23 = vadd.f32 %v1279_v1, %v1278_v58  ;;  %v1476_v46 = vadd.f32 %v1475_v60, %v1474_v53  ;;  %v1285_v60 = vsel %vm257_vm0, %v7752_v17, 0.0  ;;  %v1388_v1 = vmul.f32 %v7755_v27, %v7755_v27 }
 0x258   :  { %v1483_v10 = vsel %vm257_vm0, %v1387_v63, 0.0 }
 0x259   :  { %v1282_v43 = vadd.f32 %v1281_v45, %v1280_v23  ;;  %v1478_v25 = vadd.f32 %v1477_v11, %v1476_v46  ;;  %v1287_v11 = vsel %vm257_vm0, %v7755_v27, 0.0  ;;  %v1389_v45 = vmul.f32 %v7758_v26, %v7758_v26 }
 0x25a   :  { %v1485_v12 = vsel %vm257_vm0, %v1388_v1, 0.0 }
 0x25b   :  { %v1284_v58 = vadd.f32 %v1283_v56, %v1282_v43  ;;  %v1480_v53 = vadd.f32 %v1479_v28, %v1478_v25  ;;  %v1289_v28 = vsel %vm257_vm0, %v7758_v26, 0.0  ;;  %v1390_v56 = vmul.f32 %v7761_v34, %v7761_v34 }
 0x25c   :  { %v1487_v63 = vsel %vm257_vm0, %v1389_v45, 0.0 }
 0x25d   :  { %v1286_v23 = vadd.f32 %v1285_v60, %v1284_v58  ;;  %v1482_v46 = vadd.f32 %v1481_v36, %v1480_v53  ;;  %v1291_v36 = vsel %vm257_vm0, %v7761_v34, 0.0  ;;  %v1391_v60 = vmul.f32 %v7764_v32, %v7764_v32 }
 0x25e   :  { %v1489_v1 = vsel %vm257_vm0, %v1390_v56, 0.0 }
 0x25f   :  { %v1288_v43 = vadd.f32 %v1287_v11, %v1286_v23  ;;  %v1484_v25 = vadd.f32 %v1483_v10, %v1482_v46  ;;  %v1293_v10 = vsel %vm257_vm0, %v7764_v32, 0.0  ;;  %v1392_v11 = vmul.f32 %v7767_v44, %v7767_v44 }
 0x260   :  { %v1491_v45 = vsel %vm257_vm0, %v1391_v60, 0.0 }
 0x261   :  { %v1290_v58 = vadd.f32 %v1289_v28, %v1288_v43  ;;  %v1486_v53 = vadd.f32 %v1485_v12, %v1484_v25  ;;  %v1295_v12 = vsel %vm257_vm0, %v7767_v44, 0.0  ;;  %v1393_v28 = vmul.f32 %v7770_v42, %v7770_v42 }
 0x262   :  { %v1493_v56 = vsel %vm257_vm0, %v1392_v11, 0.0 }
 0x263   :  { %v1292_v23 = vadd.f32 %v1291_v36, %v1290_v58  ;;  %v1488_v46 = vadd.f32 %v1487_v63, %v1486_v53  ;;  %v1297_v63 = vsel %vm257_vm0, %v7770_v42, 0.0  ;;  %v1394_v36 = vmul.f32 %v7773_v54, %v7773_v54 }
 0x264   :  { %v1495_v60 = vsel %vm257_vm0, %v1393_v28, 0.0 }
 0x265   :  { %v1294_v43 = vadd.f32 %v1293_v10, %v1292_v23  ;;  %v1490_v25 = vadd.f32 %v1489_v1, %v1488_v46  ;;  %v1299_v1 = vsel %vm257_vm0, %v7773_v54, 0.0  ;;  %v1395_v10 = vmul.f32 %v7776_v52, %v7776_v52 }
 0x266   :  { %v1497_v11 = vsel %vm257_vm0, %v1394_v36, 0.0 }
 0x267   :  { %v1296_v58 = vadd.f32 %v1295_v12, %v1294_v43  ;;  %v1492_v53 = vadd.f32 %v1491_v45, %v1490_v25  ;;  %v1301_v45 = vsel %vm257_vm0, %v7776_v52, 0.0  ;;  %v1396_v12 = vmul.f32 %v7779_v3, %v7779_v3 }
 0x268   :  { %v1499_v28 = vsel %vm257_vm0, %v1395_v10, 0.0 }
 0x269   :  { %v1298_v23 = vadd.f32 %v1297_v63, %v1296_v58  ;;  %v1494_v46 = vadd.f32 %v1493_v56, %v1492_v53  ;;  %v1303_v56 = vsel %vm257_vm0, %v7779_v3, 0.0  ;;  %v1397_v63 = vmul.f32 %v7782_v62, %v7782_v62 }
 0x26a   :  { %v1501_v36 = vsel %vm257_vm0, %v1396_v12, 0.0 }
 0x26b   :  { %v1300_v43 = vadd.f32 %v1299_v1, %v1298_v23  ;;  %v1496_v25 = vadd.f32 %v1495_v60, %v1494_v46  ;;  %v1305_v60 = vsel %vm257_vm0, %v7782_v62, 0.0  ;;  %v1398_v1 = vmul.f32 %v7785_v22, %v7785_v22 }
 0x26c   :  { %v1503_v10 = vsel %vm257_vm0, %v1397_v63, 0.0 }
 0x26d   :  { %v1302_v58 = vadd.f32 %v1301_v45, %v1300_v43  ;;  %v1498_v53 = vadd.f32 %v1497_v11, %v1496_v25  ;;  %v1307_v11 = vsel %vm257_vm0, %v7785_v22, 0.0  ;;  %v1399_v45 = vmul.f32 %v7788_v18, %v7788_v18 }
 0x26e   :  { %v1505_v12 = vsel %vm257_vm0, %v1398_v1, 0.0 }
 0x26f   :  { %v1304_v23 = vadd.f32 %v1303_v56, %v1302_v58  ;;  %v1500_v46 = vadd.f32 %v1499_v28, %v1498_v53  ;;  %v1309_v28 = vsel %vm257_vm0, %v7788_v18, 0.0  ;;  %v1400_v56 = vmul.f32 %v7791_v37, %v7791_v37 }
 0x270   :  { %v1507_v63 = vsel %vm257_vm0, %v1399_v45, 0.0 }
 0x271   :  { %v1306_v43 = vadd.f32 %v1305_v60, %v1304_v23  ;;  %v1502_v25 = vadd.f32 %v1501_v36, %v1500_v46  ;;  %v1311_v36 = vsel %vm257_vm0, %v7791_v37, 0.0  ;;  %v1401_v60 = vmul.f32 %v7794_v35, %v7794_v35 }
 0x272   :  { %v1509_v1 = vsel %vm257_vm0, %v1400_v56, 0.0 }
 0x273   :  { %v1308_v58 = vadd.f32 %v1307_v11, %v1306_v43  ;;  %v1504_v53 = vadd.f32 %v1503_v10, %v1502_v25  ;;  %v1313_v10 = vsel %vm257_vm0, %v7794_v35, 0.0  ;;  %v1402_v11 = vmul.f32 %v7797_v55, %v7797_v55 }
 0x274   :  { %v1511_v45 = vsel %vm257_vm0, %v1401_v60, 0.0 }
 0x275   :  { %v1310_v23 = vadd.f32 %v1309_v28, %v1308_v58  ;;  %v1506_v46 = vadd.f32 %v1505_v12, %v1504_v53  ;;  %v1315_v12 = vsel %vm257_vm0, %v7797_v55, 0.0  ;;  %v1403_v28 = vmul.f32 %v7800_v50, %v7800_v50 }
 0x276   :  { %v1513_v56 = vsel %vm257_vm0, %v1402_v11, 0.0  ;;  %v5062_v11 = vld [vmem:[%s10386_s5 + $0x20] sm:$0xff] }
 0x277   :  { %v1312_v43 = vadd.f32 %v1311_v36, %v1310_v23  ;;  %v1508_v25 = vadd.f32 %v1507_v63, %v1506_v46  ;;  %v1317_v63 = vsel %vm257_vm0, %v7800_v50, 0.0  ;;  %v1404_v36 = vmul.f32 %v7803_v14, %v7803_v14 }
 0x278   :  { %v1515_v60 = vsel %vm257_vm0, %v1403_v28, 0.0 }
 0x279   :  { %v1314_v58 = vadd.f32 %v1313_v10, %v1312_v43  ;;  %v1510_v53 = vadd.f32 %v1509_v1, %v1508_v25  ;;  %v1319_v1 = vsel %vm257_vm0, %v7803_v14, 0.0  ;;  %v1405_v10 = vmul.f32 %v7806_v8, %v7806_v8  ;;  %v5064_v14 = vld [vmem:[%s10386_s5 + $0x30] sm:$0xff] }
 0x27b   :  { %v1316_v23 = vadd.f32 %v1315_v12, %v1314_v58  ;;  %v1512_v46 = vadd.f32 %v1511_v45, %v1510_v53  ;;  %v5063_v58 = vld [vmem:[%s10386_s5 + $0x28] sm:$0xff]  ;;  %v5222_v53 = vld [vmem:[%s10386_s5 + $0x120] sm:$0xff] }
 0x27c   :  { %v6438_v28 = vpack.c.bf16 %v5063_v58, %v5062_v11  ;;  %v5225_v58 = vld [vmem:[%s10386_s5 + $0x138] sm:$0xff] }
 0x27d   :  { %v1318_v43 = vadd.f32 %v1317_v63, %v1316_v23  ;;  %v1514_v25 = vadd.f32 %v1513_v56, %v1512_v46  ;;  %v5223_v23 = vld [vmem:[%s10386_s5 + $0x128] sm:$0xff]  ;;  %v1517_v46 = vsel %vm257_vm0, %v1404_v36, 0.0  ;;  %v1321_v56 = vsel %vm257_vm0, %v7806_v8, 0.0  ;;  %v2021_v8 = vld [vmem:[%s10386_s5] sm:$0xff] }
 0x27e   :  { %v1406_v63 = vmul.f32 %v7809_v41, %v7809_v41  ;;  %6439 = vmatprep.subr.bf16.mxu1 %v6438_v28 }
 0x27f   :  { %v1320_v45 = vadd.f32 %v1319_v1, %v1318_v43  ;;  %v1516_v12 = vadd.f32 %v1515_v60, %v1514_v25  ;;  %v5065_v43 = vld [vmem:[%s10386_s5 + $0x38] sm:$0xff]  ;;  %v6502_v25 = vpack.c.bf16 %v5223_v23, %v5222_v53  ;;  %v5224_v60 = vld [vmem:[%s10386_s5 + $0x130] sm:$0xff]  ;;  %v2022_v53 = vld [vmem:[%s10386_s5 + $0x8] sm:$0xff]  ;;  %v1519_v23 = vsel %vm257_vm0, %v1405_v10, 0.0  ;;  %6441 = vmatpush3.bf16.msra.mxu1 %v6438_v28 }
 0x280   :  { %v6442_v11 = vpack.c.bf16 %v5065_v43, %v5064_v14  ;;  %v1407_v14 = vmul.f32 %v7812_v39, %v7812_v39  ;;  %v8194_v43 = vpack.c.bf16 %v2022_v53, %v2021_v8  ;;  %v1521_v50 = vsel %vm257_vm0, %v1406_v63, 0.0 }
 0x281   :  { %v1322_v36 = vadd.f32 %v1321_v56, %v1320_v45  ;;  %v1518_v1 = vadd.f32 %v1517_v46, %v1516_v12  ;;  %v1323_v45 = vsel %vm257_vm0, %v7809_v41, 0.0  ;;  %6503 = vmatprep.subr.bf16.mxu0 %v6502_v25  ;;  %v6506_v12 = vpack.c.bf16 %v5225_v58, %v5224_v60 }
 0x282   :  { %6443 = vmatprep.subr.bf16.mxu1 %v6442_v11  ;;  %6505 = vmatpush3.bf16.msra.mxu0 %v6502_v25  ;;  %10496 = vst [vmem:[#allocation3_spill] sm:$0xff] %v8194_v43  ;;  %v1325_v10 = vsel %vm257_vm0, %v7812_v39, 0.0  ;;  %v1408_v41 = vmul.f32 %v7815_v15, %v7815_v15  ;;  %v1523_v28 = vsel %vm257_vm0, %v1407_v14, 0.0  ;;  %v1327_v60 = vsel %vm257_vm0, %v7815_v15, 0.0 }
 0x283   :  { %v1324_v46 = vadd.f32 %v1323_v45, %v1322_v36  ;;  %v1520_v56 = vadd.f32 %v1519_v23, %v1518_v1  ;;  %6507 = vmatprep.subr.bf16.mxu0 %v6506_v12  ;;  %v1409_v8 = vmul.f32 %v7818_v4, %v7818_v4  ;;  %6445 = vmatpush3.bf16.msra.mxu1 %v6442_v11  ;;  %v1329_v1 = vsel %vm257_vm0, %v7818_v4, 0.0 }
 0x284   :  { %6447 = vmatprep.subr.bf16.mxu1 %v8194_v43  ;;  %v1525_v36 = vsel %vm257_vm0, %v1408_v41, 0.0  ;;  %v1331_v11 = vsel %vm257_vm0, %v7821_v57, 0.0  ;;  %v1333_v14 = vsel %vm257_vm0, %v7824_v47, 0.0 }
 0x285   :  { %v1326_v55 = vadd.f32 %v1325_v10, %v1324_v46  ;;  %v1522_v35 = vadd.f32 %v1521_v50, %v1520_v56  ;;  %v1410_v50 = vmul.f32 %v7821_v57, %v7821_v57  ;;  %v1527_v23 = vsel %vm257_vm0, %v1409_v8, 0.0 }
 0x286   :  { %6509 = vmatpush3.bf16.msra.mxu0 %v6506_v12  ;;  %v1412_v12 = vmul.f32 %v7827_v30, %v7827_v30 }
 0x287   :  { %v1328_v25 = vadd.f32 %v1327_v60, %v1326_v55  ;;  %v1524_v63 = vadd.f32 %v1523_v28, %v1522_v35  ;;  %v1411_v35 = vmul.f32 %v7824_v47, %v7824_v47  ;;  %v1529_v41 = vsel %vm257_vm0, %v1410_v50, 0.0 }
 0x288   :  { %v1335_v28 = vsel %vm257_vm0, %v7827_v30, 0.0  ;;  %v1413_v60 = vmul.f32 %v7830_v24, %v7830_v24 }
 0x289   :  { %v1330_v58 = vadd.f32 %v1329_v1, %v1328_v25  ;;  %v1526_v53 = vadd.f32 %v1525_v36, %v1524_v63  ;;  %v1531_v10 = vsel %vm257_vm0, %v1411_v35, 0.0  ;;  %v1533_v63 = vsel %vm257_vm0, %v1412_v12, 0.0 }
 0x28a   :  { %v1337_v36 = vsel %vm257_vm0, %v7830_v24, 0.0  ;;  %v1414_v1 = vmul.f32 %v7833_v5, %v7833_v5 }
 0x28b   :  { %v1332_v55 = vadd.f32 %v1331_v11, %v1330_v58  ;;  %v1528_v45 = vadd.f32 %v1527_v23, %v1526_v53  ;;  %v1535_v53 = vsel %vm257_vm0, %v1413_v60, 0.0  ;;  %v1339_v23 = vsel %vm257_vm0, %v7833_v5, 0.0 }
 0x28c   :  { %v1415_v11 = vmul.f32 %v7836_v49, %v7836_v49 }
 0x28d   :  { %v1334_v46 = vadd.f32 %v1333_v14, %v1332_v55  ;;  %v1530_v56 = vadd.f32 %v1529_v41, %v1528_v45  ;;  %v1537_v45 = vsel %vm257_vm0, %v1414_v1, 0.0  ;;  %v1341_v41 = vsel %vm257_vm0, %v7836_v49, 0.0  ;;  %v10497_v14 = vld [vmem:[#allocation24_spill] sm:$0xff] }
 0x28e   :  { %v1416_v12 = vmul.f32 %v10497_v14, %v10497_v14 }
 0x28f   :  { %v1336_v8 = vadd.f32 %v1335_v28, %v1334_v46  ;;  %v1532_v25 = vadd.f32 %v1531_v10, %v1530_v56  ;;  %v5218_v46 = vld [vmem:[%s10386_s5 + $0x100] sm:$0xff]  ;;  %v5219_v56 = vld [vmem:[%s10386_s5 + $0x108] sm:$0xff] }
 0x290   :  { %v8248_v60 = vpack.c.bf16 %v5219_v56, %v5218_v46 }
 0x291   :  { %v1338_v50 = vadd.f32 %v1337_v36, %v1336_v8  ;;  %v1534_v58 = vadd.f32 %v1533_v63, %v1532_v25  ;;  %v1539_v8 = vsel %vm257_vm0, %v1415_v11, 0.0  ;;  %v1343_v25 = vsel %vm257_vm0, %v10497_v14, 0.0  ;;  %v10499_v63 = vld [vmem:[#allocation25_spill] sm:$0xff] }
 0x292   :  { %10498 = vst [vmem:[#allocation13_spill] sm:$0xff] %v8248_v60  ;;  %v1417_v36 = vmul.f32 %v10499_v63, %v10499_v63  ;;  %6511 = vmatprep.subr.bf16.mxu0 %v8248_v60 }
 0x293   :  { %v1340_v35 = vadd.f32 %v1339_v23, %v1338_v50  ;;  %v1536_v55 = vadd.f32 %v1535_v53, %v1534_v58  ;;  %v1541_v58 = vsel %vm257_vm0, %v1416_v12, 0.0  ;;  %v1345_v53 = vsel %vm257_vm0, %v10499_v63, 0.0 }
 0x295   :  { %v1342_v10 = vadd.f32 %v1341_v41, %v1340_v35  ;;  %v1538_v28 = vadd.f32 %v1537_v45, %v1536_v55  ;;  %v1543_v55 = vsel %vm257_vm0, %v1417_v36, 0.0  ;;  %v1562_v36 = vlaneseq }
 0x297   :  { %v1344_v1 = vadd.f32 %v1343_v25, %v1342_v10  ;;  %v1540_v50 = vadd.f32 %v1539_v8, %v1538_v28 }
 0x299   :  { %v1346_v23 = vadd.f32 %v1345_v53, %v1344_v1  ;;  %v1542_v35 = vadd.f32 %v1541_v58, %v1540_v50  ;;  %v1563_v58 = vshrl.u32 %v1562_v36, 7  ;;  %v1554_v53 = vld [vmem:[%s10387_s3] sm:$0x1]  ;;  %v10504_v36 = vld [vmem:[#allocation28_spill] sm:$0xff] }
 0x29b   :  { %v1347_v11 = vrot.slane %v1346_v23, 4  ;;  %v1544_v45 = vadd.f32 %v1543_v55, %v1542_v35 }
 0x29d   :  { %v1348_v41 = vadd.f32 %v1347_v11, %v1346_v23  ;;  %v1545_v46 = vrot.slane %v1544_v45, 4  ;;  %v8263_v23 = vsub.s32 0, %v1563_v58 }
 0x29f   :  { %v1349_v56 = vrot.slane %v1348_v41, 2  ;;  %v1546_v43 = vadd.f32 %v1545_v46, %v1544_v45  ;;  %10500 = vst [vmem:[#allocation14_spill] sm:$0xff] %v8263_v23 }
 0x2a1   :  { %v1350_v14 = vadd.f32 %v1349_v56, %v1348_v41  ;;  %v1547_v10 = vrot.slane %v1546_v43, 2  ;;  %v10502_v41 = vld [vmem:[#allocation27_spill] sm:$0xff]  ;;  %v10503_v56 = vld [vmem:[#allocation26_spill] sm:$0xff] }
 0x2a3   :  { %v1351_v28 = vrot.slane %v1350_v14, 1  ;;  %v1548_v8 = vadd.f32 %v1547_v10, %v1546_v43  ;;  %v2023_v43 = vld [vmem:[%s10386_s5 + $0x10] sm:$0xff] }
 0x2a5   :  { %v1352_v25 = vadd.f32 %v1351_v28, %v1350_v14  ;;  %v1549_v60 = vrot.slane %v1548_v8, 1 }
 0x2a7   :  { %v1353_v12 = vmul.f32 0.001953125, %v1352_v25  ;;  %v1550_v49 = vadd.f32 %v1549_v60, %v1548_v8 }
 0x2a9   :  { %v1551_v5 = vmul.f32 0.001953125, %v1550_v49  ;;  %v1552_v63 = vmul.f32 %v1353_v12, %v1353_v12  ;;  %v1558_v49 = vld [vmem:[%s10388_s4] sm:$0x1] }
 0x2ab   :  { %v1553_v1 = vsub.f32 %v1551_v5, %v1552_v63  ;;  %v2024_v5 = vld [vmem:[%s10386_s5 + $0x18] sm:$0xff] }
 0x2ac   :  { %v8277_v63 = vpack.c.bf16 %v2024_v5, %v2023_v43  ;;  %v10508_v43 = vld [vmem:[#allocation5_spill] sm:$0xff] }
 0x2ad   :  { %v1555_v50 = vadd.f32 1e-05, %v1553_v1 }
 0x2ae   :  { %10501 = vst [vmem:[#allocation15_spill] sm:$0xff] %v8277_v63  ;;  %v10521_v63 = vld [vmem:[#allocation19_spill] sm:$0xff] }
 0x2af   :  { %6751 = vrsqrt.f32 %v1555_v50 }
 0x2b9   :  { %v6752_v35 = vpop.eup %6751 }
 0x2ba   :  { %v1557_v55 = vmul.f32 %v6752_v35, %v1554_v53 }
 0x2bc   :  { %v1559_v14 = vmul.f32 %v1557_v55, %v1353_v12  ;;  %v8275_v60 = vrot.slane %v1557_v55, %v8263_v23 }
 0x2be   :  { %v1560_v11 = vsub.f32 %v1558_v49, %v1559_v14  ;;  %v1583_v45 = vmul.f32 %v8275_v60, %v7975_v51  ;;  %v8283_v46 = vmul.f32 %v8275_v60, %v10502_v41  ;;  %v8287_v10 = vmul.f32 %v8275_v60, %v10503_v56  ;;  %v10509_v49 = vld [vmem:[#allocation6_spill] sm:$0xff]  ;;  %v10511_v41 = vld [vmem:[#allocation8_spill] sm:$0xff] }
 0x2bf   :  { %v8291_v28 = vmul.f32 %v8275_v60, %v7864_v6  ;;  %v8295_v8 = vmul.f32 %v8275_v60, %v7859_v38  ;;  %v8299_v25 = vmul.f32 %v8275_v60, %v7879_v31  ;;  %v8303_v51 = vmul.f32 %v8275_v60, %v7873_v59  ;;  %v1717_v59 = vld [vmem:[%s10389_s1 + $0x80] sm:$0xff] }
 0x2c0   :  { %v8306_v12 = vrot.slane %v1560_v11, %v8263_v23  ;;  %v8310_v1 = vmul.f32 %v8275_v60, %v7895_v29  ;;  %v8314_v6 = vmul.f32 %v8275_v60, %v7889_v0  ;;  %v8318_v38 = vmul.f32 %v8275_v60, %v7911_v48  ;;  %v10510_v11 = vld [vmem:[#allocation7_spill] sm:$0xff]  ;;  %v10520_v23 = vld [vmem:[#allocation18_spill] sm:$0xff] }
 0x2c1   :  { %v8325_v31 = vmul.f32 %v8275_v60, %v7905_v2  ;;  %v8329_v29 = vmul.f32 %v8275_v60, %v7927_v61  ;;  %v8333_v0 = vmul.f32 %v8275_v60, %v7921_v9  ;;  %v8337_v48 = vmul.f32 %v8275_v60, %v7943_v40  ;;  %v10505_v61 = vld [vmem:[#allocation29_spill] sm:$0xff]  ;;  %v10506_v9 = vld [vmem:[#allocation30_spill] sm:$0xff]  ;;  %v10507_v40 = vld [vmem:[#allocation4_spill] sm:$0xff] }
 0x2c2   :  { %v1653_v50 = vadd.f32 %v8306_v12, %v1583_v45  ;;  %v8342_v58 = vmul.f32 %v8275_v60, %v10504_v36  ;;  %v8346_v2 = vmul.f32 %v8275_v60, %v7959_v16  ;;  %v8350_v53 = vmul.f32 %v8275_v60, %v10505_v61  ;;  %v10512_v36 = vld [vmem:[#allocation9_spill] sm:$0xff] }
 0x2c3   :  { %v8354_v35 = vmul.f32 %v8275_v60, %v10506_v9  ;;  %v8358_v55 = vmul.f32 %v8275_v60, %v10507_v40  ;;  %v8362_v5 = vmul.f32 %v8275_v60, %v10508_v43  ;;  %v8366_v16 = vmul.f32 %v8275_v60, %v10509_v49  ;;  %v10513_v9 = vld [vmem:[#allocation10_spill] sm:$0xff]  ;;  %v10514_v43 = vld [vmem:[#allocation11_spill] sm:$0xff] }
 0x2c4   :  { %v1781_v14 = vadd.f32 %v1717_v59, %v1653_v50  ;;  %v8370_v45 = vmul.f32 %v8275_v60, %v10510_v11  ;;  %v8374_v56 = vmul.f32 %v8275_v60, %v10511_v41  ;;  %v8378_v61 = vmul.f32 %v8275_v60, %v10512_v36  ;;  %v10515_v59 = vld [vmem:[#allocation12_spill] sm:$0xff] }
 0x2c5   :  { %v8382_v40 = vmul.f32 %v8275_v60, %v10513_v9  ;;  %v8386_v49 = vmul.f32 %v8275_v60, %v10514_v43  ;;  %v8390_v50 = vmul.f32 %v8275_v60, %v10515_v59  ;;  %v8394_v11 = vmul.f32 %v8275_v60, %v10493_v33 }
 0x2c6   :  { %v1845_v41 = vmax.f32 %v1781_v14, 0.0  ;;  %v8398_v36 = vmul.f32 %v8275_v60, %v10494_v19  ;;  %v8402_v9 = vmul.f32 %v8275_v60, %v10495_v21  ;;  %v8406_v43 = vmul.f32 %v8275_v60, %v7743_v13  ;;  %v10518_v14 = vld [vmem:[#allocation16_spill] sm:$0xff] }
 0x2c7   :  { %v8410_v59 = vmul.f32 %v8275_v60, %v7746_v7  ;;  %v8414_v33 = vmul.f32 %v8275_v60, %v7749_v20  ;;  %v8418_v19 = vmul.f32 %v8275_v60, %v7752_v17  ;;  %v8422_v21 = vmul.f32 %v8275_v60, %v7755_v27 }
 0x2c8   :  { %1909 = vst.msk [vmem:[#allocation2 + $0x80] sm:$0xff] %vm257_vm0, %v1845_v41  ;;  %v8427_v13 = vmul.f32 %v8275_v60, %v7758_v26  ;;  %v8431_v7 = vmul.f32 %v8275_v60, %v7761_v34  ;;  %v8435_v20 = vmul.f32 %v8275_v60, %v7764_v32  ;;  %v8439_v17 = vmul.f32 %v8275_v60, %v7767_v44  ;;  %v10519_v41 = vld [vmem:[#allocation17_spill] sm:$0xff] }
 0x2c9   :  { %v8443_v27 = vmul.f32 %v8275_v60, %v7770_v42  ;;  %v8447_v26 = vmul.f32 %v8275_v60, %v7773_v54  ;;  %v8451_v34 = vmul.f32 %v8275_v60, %v7776_v52  ;;  %v8455_v32 = vmul.f32 %v8275_v60, %v7779_v3 }
 0x2ca   :  { %v8459_v44 = vmul.f32 %v8275_v60, %v7782_v62  ;;  %v8463_v42 = vmul.f32 %v8275_v60, %v7785_v22  ;;  %v8467_v54 = vmul.f32 %v8275_v60, %v7788_v18  ;;  %v8471_v52 = vmul.f32 %v8275_v60, %v7791_v37 }
 0x2cb   :  { %v8475_v3 = vmul.f32 %v8275_v60, %v10518_v14  ;;  %v8479_v62 = vmul.f32 %v8275_v60, %v10519_v41  ;;  %v8483_v22 = vmul.f32 %v8275_v60, %v10520_v23  ;;  %v8487_v18 = vmul.f32 %v8275_v60, %v10521_v63 }
 0x2cc   :  { %10516 = vst [vmem:[#allocation27_spill] sm:$0xff] %v8467_v54  ;;  %10517 = vst [vmem:[#allocation26_spill] sm:$0xff] %v8471_v52  ;;  %v10522_v54 = vld [vmem:[#allocation20_spill] sm:$0xff]  ;;  %v10523_v52 = vld [vmem:[#allocation21_spill] sm:$0xff]  ;;  %v8499_v41 = vmul.f32 %v8275_v60, %v7812_v39  ;;  %v8503_v23 = vmul.f32 %v8275_v60, %v7815_v15  ;;  %v8507_v63 = vmul.f32 %v8275_v60, %v7818_v4 }
 0x2cd   :  { %v8491_v37 = vmul.f32 %v8275_v60, %v10522_v54  ;;  %v8495_v14 = vmul.f32 %v8275_v60, %v10523_v52  ;;  %v8511_v54 = vmul.f32 %v8275_v60, %v7821_v57  ;;  %v8515_v52 = vmul.f32 %v8275_v60, %v7824_v47 }
 0x2ce   :  { %10524 = vst [vmem:[#allocation28_spill] sm:$0xff] %v8503_v23  ;;  %10525 = vst [vmem:[#allocation29_spill] sm:$0xff] %v8507_v63  ;;  %v8519_v39 = vmul.f32 %v8275_v60, %v7827_v30  ;;  %v8523_v15 = vmul.f32 %v8275_v60, %v7830_v24  ;;  %v10528_v23 = vld [vmem:[#allocation22_spill] sm:$0xff]  ;;  %v10529_v63 = vld [vmem:[#allocation23_spill] sm:$0xff]  ;;  %v8543_v24 = vadd.f32 %v8306_v12, %v8283_v46 }
 0x2cf   :  { %10526 = vst [vmem:[#allocation30_spill] sm:$0xff] %v8511_v54  ;;  %10527 = vst [vmem:[#allocation4_spill] sm:$0xff] %v8515_v52  ;;  %v8527_v4 = vmul.f32 %v8275_v60, %v10528_v23  ;;  %v8531_v57 = vmul.f32 %v8275_v60, %v10529_v63  ;;  %v10531_v54 = vld [vmem:[#allocation24_spill] sm:$0xff]  ;;  %v10532_v52 = vld [vmem:[#allocation25_spill] sm:$0xff]  ;;  %v8547_v23 = vadd.f32 %v8306_v12, %v8287_v10 }
 0x2d0   :  { %v8535_v47 = vmul.f32 %v8275_v60, %v10531_v54  ;;  %v8539_v30 = vmul.f32 %v8275_v60, %v10532_v52  ;;  %v8551_v63 = vadd.f32 %v8306_v12, %v8291_v28  ;;  %v8555_v54 = vadd.f32 %v8306_v12, %v8295_v8 }
 0x2d1   :  { %10530 = vst [vmem:[#allocation5_spill] sm:$0xff] %v8531_v57  ;;  %v1973_v57 = vld [vmem:[#allocation2 + $0x80] sm:$0xff]  ;;  %v8559_v60 = vadd.f32 %v8306_v12, %v8299_v25  ;;  %v8563_v46 = vadd.f32 %v8306_v12, %v8303_v51  ;;  %v8567_v10 = vadd.f32 %v8306_v12, %v8310_v1  ;;  %v8572_v28 = vadd.f32 %v8306_v12, %v8314_v6 }
 0x2d2   :  { %5878 = vmatprep.mubr.msk.f32.mxu1 %vm257_vm0, %v1973_v57  ;;  %v8576_v8 = vadd.f32 %v8306_v12, %v8318_v38  ;;  %v8580_v25 = vadd.f32 %v8306_v12, %v8325_v31  ;;  %v8584_v51 = vadd.f32 %v8306_v12, %v8329_v29  ;;  %6134 = vmatprep.mubr.msk.f32.mxu0 %vm257_vm0, %v1973_v57 }
 0x2d3   :  { %v8589_v1 = vadd.f32 %v8306_v12, %v8333_v0  ;;  %v8593_v6 = vadd.f32 %v8306_v12, %v8337_v48  ;;  %v8597_v38 = vadd.f32 %v8306_v12, %v8342_v58  ;;  %v8601_v31 = vadd.f32 %v8306_v12, %v8346_v2  ;;  %v10542_v52 = vld [vmem:[#allocation27_spill] sm:$0xff]  ;;  %v10544_v57 = vld [vmem:[#allocation26_spill] sm:$0xff] }
 0x2d4   :  { %v8605_v29 = vadd.f32 %v8306_v12, %v8350_v53  ;;  %v8609_v0 = vadd.f32 %v8306_v12, %v8354_v35  ;;  %v8613_v48 = vadd.f32 %v8306_v12, %v8358_v55  ;;  %v8617_v58 = vadd.f32 %v8306_v12, %v8362_v5 }
 0x2d5   :  { %v8621_v2 = vadd.f32 %v8306_v12, %v8366_v16  ;;  %v8625_v53 = vadd.f32 %v8306_v12, %v8370_v45  ;;  %v8629_v35 = vadd.f32 %v8306_v12, %v8374_v56  ;;  %v8633_v55 = vadd.f32 %v8306_v12, %v8378_v61 }
 0x2d6   :  { %v8637_v5 = vadd.f32 %v8306_v12, %v8382_v40  ;;  %v8641_v16 = vadd.f32 %v8306_v12, %v8386_v49  ;;  %v8645_v45 = vadd.f32 %v8306_v12, %v8390_v50  ;;  %v8649_v56 = vadd.f32 %v8306_v12, %v8394_v11 }
 0x2d7   :  { %v8653_v61 = vadd.f32 %v8306_v12, %v8398_v36  ;;  %v8657_v40 = vadd.f32 %v8306_v12, %v8402_v9  ;;  %v8661_v49 = vadd.f32 %v8306_v12, %v8406_v43  ;;  %v8665_v50 = vadd.f32 %v8306_v12, %v8410_v59 }
 0x2d8   :  { %v8669_v11 = vadd.f32 %v8306_v12, %v8414_v33  ;;  %v8673_v36 = vadd.f32 %v8306_v12, %v8418_v19  ;;  %v8677_v9 = vadd.f32 %v8306_v12, %v8422_v21  ;;  %v8681_v43 = vadd.f32 %v8306_v12, %v8427_v13 }
 0x2d9   :  { %v8685_v59 = vadd.f32 %v8306_v12, %v8431_v7  ;;  %v8689_v33 = vadd.f32 %v8306_v12, %v8435_v20  ;;  %v8693_v19 = vadd.f32 %v8306_v12, %v8439_v17  ;;  %v8697_v21 = vadd.f32 %v8306_v12, %v8443_v27  ;;  %v1702_v27 = vld [vmem:[%s10389_s1 + $0x8] sm:$0xff] }
 0x2da   :  { %v8701_v13 = vadd.f32 %v8306_v12, %v8447_v26  ;;  %v8705_v7 = vadd.f32 %v8306_v12, %v8451_v34  ;;  %v8709_v20 = vadd.f32 %v8306_v12, %v8455_v32  ;;  %v8713_v17 = vadd.f32 %v8306_v12, %v8459_v44 }
 0x2db   :  { %10533 = vst [vmem:[#allocation6_spill] sm:$0xff] %v8685_v59  ;;  %10534 = vst [vmem:[#allocation7_spill] sm:$0xff] %v8689_v33  ;;  %v8720_v26 = vadd.f32 %v8306_v12, %v8463_v42  ;;  %v8724_v34 = vadd.f32 %v8306_v12, %v10542_v52  ;;  %v8728_v32 = vadd.f32 %v8306_v12, %v10544_v57  ;;  %v1704_v42 = vld [vmem:[%s10389_s1 + $0x18] sm:$0xff]  ;;  %v1703_v52 = vld [vmem:[%s10389_s1 + $0x10] sm:$0xff] }
 0x2dc   :  { %10535 = vst [vmem:[#allocation8_spill] sm:$0xff] %v8693_v19  ;;  %10536 = vst [vmem:[#allocation9_spill] sm:$0xff] %v8697_v21  ;;  %v8732_v44 = vadd.f32 %v8306_v12, %v8475_v3  ;;  %v8745_v57 = vadd.f32 %v8306_v12, %v8479_v62  ;;  %v8749_v3 = vadd.f32 %v8306_v12, %v8483_v22  ;;  %v1705_v62 = vld [vmem:[%s10389_s1 + $0x20] sm:$0xff]  ;;  %v1708_v22 = vld [vmem:[%s10389_s1 + $0x38] sm:$0xff] }
 0x2dd   :  { %10537 = vst [vmem:[#allocation10_spill] sm:$0xff] %v8701_v13  ;;  %10538 = vst [vmem:[#allocation11_spill] sm:$0xff] %v8705_v7  ;;  %v8837_v7 = vadd.f32 %v8306_v12, %v8535_v47  ;;  %v8841_v13 = vadd.f32 %v8306_v12, %v8539_v30  ;;  %v1722_v21 = vld [vmem:[%s10389_s1 + $0xa8] sm:$0xff]  ;;  %v1725_v47 = vld [vmem:[%s10389_s1 + $0xc0] sm:$0xff]  ;;  %v8874_v19 = vadd.f32 %v1704_v42, %v8555_v54 }
 0x2de   :  { %10539 = vst [vmem:[#allocation12_spill] sm:$0xff] %v8709_v20  ;;  %10540 = vst [vmem:[#allocation16_spill] sm:$0xff] %v8713_v17  ;;  %v1701_v17 = vld [vmem:[%s10389_s1] sm:$0xff]  ;;  %v1719_v20 = vld [vmem:[%s10389_s1 + $0x90] sm:$0xff]  ;;  %v8892_v54 = vadd.f32 %v1705_v62, %v8559_v60  ;;  %v8901_v42 = vadd.f32 %v1708_v22, %v8572_v28 }
 0x2df   :  { %10541 = vst [vmem:[#allocation17_spill] sm:$0xff] %v8720_v26  ;;  %10543 = vst [vmem:[#allocation18_spill] sm:$0xff] %v8724_v34  ;;  %v1706_v34 = vld [vmem:[%s10389_s1 + $0x28] sm:$0xff]  ;;  %v1707_v26 = vld [vmem:[%s10389_s1 + $0x30] sm:$0xff] }
 0x2e0   :  { %10545 = vst [vmem:[#allocation19_spill] sm:$0xff] %v8728_v32  ;;  %10546 = vst [vmem:[#allocation20_spill] sm:$0xff] %v8732_v44  ;;  %v8753_v44 = vadd.f32 %v8306_v12, %v8487_v18  ;;  %v8757_v32 = vadd.f32 %v8306_v12, %v8491_v37  ;;  %v8770_v18 = vadd.f32 %v8306_v12, %v8495_v14  ;;  %v1710_v14 = vld [vmem:[%s10389_s1 + $0x48] sm:$0xff]  ;;  %v1716_v30 = vld [vmem:[%s10389_s1 + $0x78] sm:$0xff] }
 0x2e1   :  { %10547 = vst [vmem:[#allocation21_spill] sm:$0xff] %v8745_v57  ;;  %10548 = vst [vmem:[#allocation22_spill] sm:$0xff] %v8749_v3  ;;  %v8774_v37 = vadd.f32 %v8306_v12, %v8499_v41  ;;  %v10555_v3 = vld [vmem:[#allocation29_spill] sm:$0xff]  ;;  %v1709_v41 = vld [vmem:[%s10389_s1 + $0x40] sm:$0xff]  ;;  %v8919_v28 = vadd.f32 %v1710_v14, %v8580_v25 }
 0x2e2   :  { %10549 = vst [vmem:[#allocation23_spill] sm:$0xff] %v8753_v44  ;;  %10550 = vst [vmem:[#allocation24_spill] sm:$0xff] %v8757_v32  ;;  %v10553_v32 = vld [vmem:[#allocation28_spill] sm:$0xff]  ;;  %v8782_v57 = vadd.f32 %v8306_v12, %v10555_v3  ;;  %v1727_v59 = vld [vmem:[%s10389_s1 + $0xd0] sm:$0xff] }
 0x2e3   :  { %10551 = vst [vmem:[#allocation25_spill] sm:$0xff] %v8770_v18  ;;  %10552 = vst [vmem:[#allocation27_spill] sm:$0xff] %v8774_v37  ;;  %v8778_v44 = vadd.f32 %v8306_v12, %v10553_v32  ;;  %v10557_v37 = vld [vmem:[#allocation30_spill] sm:$0xff]  ;;  %v8807_v18 = vadd.f32 %v8306_v12, %v8523_v15  ;;  %v1711_v15 = vld [vmem:[%s10389_s1 + $0x50] sm:$0xff] }
 0x2e4   :  { %10556 = vst [vmem:[#allocation28_spill] sm:$0xff] %v8782_v57  ;;  %v8795_v32 = vadd.f32 %v8306_v12, %v10557_v37  ;;  %v8803_v57 = vadd.f32 %v8306_v12, %v8519_v39  ;;  %v1720_v37 = vld [vmem:[%s10389_s1 + $0x98] sm:$0xff]  ;;  %10566 = vst [vmem:[#allocation33_spill] sm:$0xff] %v8837_v7  ;;  %v8865_v7 = vadd.f32 %v1701_v17, %v8543_v24  ;;  %v1726_v33 = vld [vmem:[%s10389_s1 + $0xc8] sm:$0xff] }
 0x2e5   :  { %10554 = vst [vmem:[#allocation26_spill] sm:$0xff] %v8778_v44  ;;  %v10559_v44 = vld [vmem:[#allocation4_spill] sm:$0xff]  ;;  %10562 = vst [vmem:[#allocation31_spill] sm:$0xff] %v8807_v18  ;;  %v1712_v39 = vld [vmem:[%s10389_s1 + $0x58] sm:$0xff]  ;;  %v8895_v17 = vadd.f32 %v1706_v34, %v8563_v46 }
 0x2e6   :  { %10558 = vst [vmem:[#allocation29_spill] sm:$0xff] %v8795_v32  ;;  %v8799_v3 = vadd.f32 %v8306_v12, %v10559_v44  ;;  %10561 = vst [vmem:[#allocation4_spill] sm:$0xff] %v8803_v57  ;;  %v1721_v44 = vld [vmem:[%s10389_s1 + $0xa0] sm:$0xff]  ;;  %v1714_v18 = vld [vmem:[%s10389_s1 + $0x68] sm:$0xff]  ;;  %v8829_v57 = vadd.f32 %v8306_v12, %v8527_v4  ;;  %v8925_v34 = vadd.f32 %v1712_v39, %v8589_v1 }
 0x2e7   :  { %10567 = vst [vmem:[#allocation34_spill] sm:$0xff] %v8841_v13  ;;  %v1723_v4 = vld [vmem:[%s10389_s1 + $0xb0] sm:$0xff]  ;;  %10568 = vst [vmem:[#allocation35_spill] sm:$0xff] %v8874_v19  ;;  %v1728_v24 = vld [vmem:[%s10389_s1 + $0xd8] sm:$0xff]  ;;  %v8943_v1 = vadd.f32 %v1714_v18, %v8597_v38 }
 0x2e8   :  { %10560 = vst [vmem:[#allocation30_spill] sm:$0xff] %v8799_v3  ;;  %10563 = vst [vmem:[#allocation32_spill] sm:$0xff] %v8829_v57  ;;  %v10564_v3 = vld [vmem:[#allocation5_spill] sm:$0xff]  ;;  %v8871_v57 = vadd.f32 %v1703_v52, %v8551_v63  ;;  %v1718_v63 = vld [vmem:[%s10389_s1 + $0x88] sm:$0xff] }
 0x2e9   :  { %v8833_v32 = vadd.f32 %v8306_v12, %v10564_v3  ;;  %v1724_v3 = vld [vmem:[%s10389_s1 + $0xb8] sm:$0xff]  ;;  %v1713_v12 = vld [vmem:[%s10389_s1 + $0x60] sm:$0xff]  ;;  %v1715_v13 = vld [vmem:[%s10389_s1 + $0x70] sm:$0xff]  ;;  %v8961_v38 = vadd.f32 %v1718_v63, %v8609_v0 }
 0x2ea   :  { %v1730_v52 = vld [vmem:[%s10389_s1 + $0xe8] sm:$0xff]  ;;  %v1731_v19 = vld [vmem:[%s10389_s1 + $0xf0] sm:$0xff]  ;;  %v1732_v60 = vld [vmem:[%s10389_s1 + $0xf8] sm:$0xff]  ;;  %v8946_v14 = vadd.f32 %v1715_v13, %v8601_v31  ;;  %v8964_v31 = vadd.f32 %v1719_v20, %v8613_v48  ;;  %v8970_v13 = vadd.f32 %v1721_v44, %v8621_v2  ;;  %v8982_v48 = vadd.f32 %v1722_v21, %v8625_v53 }
 0x2eb   :  { %10565 = vst [vmem:[#allocation5_spill] sm:$0xff] %v8833_v32  ;;  %v8868_v32 = vadd.f32 %v1702_v27, %v8547_v23  ;;  %v1729_v23 = vld [vmem:[%s10389_s1 + $0xe0] sm:$0xff]  ;;  %v8898_v27 = vadd.f32 %v1707_v26, %v8567_v10  ;;  %v8916_v10 = vadd.f32 %v1709_v41, %v8576_v8  ;;  %v8922_v26 = vadd.f32 %v1711_v15, %v8584_v51  ;;  %v1734_v62 = vld [vmem:[%s10389_s1 + $0x108] sm:$0xff]  ;;  %v1735_v22 = vld [vmem:[%s10389_s1 + $0x110] sm:$0xff] }
 0x2ec   :  { %v1733_v46 = vld [vmem:[%s10389_s1 + $0x100] sm:$0xff]  ;;  %v1736_v8 = vld [vmem:[%s10389_s1 + $0x118] sm:$0xff]  ;;  %v8940_v51 = vadd.f32 %v1713_v12, %v8593_v6  ;;  %v8949_v41 = vadd.f32 %v1716_v30, %v8605_v29  ;;  %v1738_v39 = vld [vmem:[%s10389_s1 + $0x128] sm:$0xff]  ;;  %v8967_v29 = vadd.f32 %v1720_v37, %v8617_v58  ;;  %v8985_v58 = vadd.f32 %v1723_v4, %v8629_v35 }
 0x2ed   :  { %v1737_v25 = vld [vmem:[%s10389_s1 + $0x120] sm:$0xff]  ;;  %v1739_v15 = vld [vmem:[%s10389_s1 + $0x130] sm:$0xff]  ;;  %v1740_v6 = vld [vmem:[%s10389_s1 + $0x138] sm:$0xff]  ;;  %v8988_v2 = vadd.f32 %v1724_v3, %v8633_v55  ;;  %v8991_v20 = vadd.f32 %v1725_v47, %v8637_v5  ;;  %v9003_v35 = vadd.f32 %v1726_v33, %v8641_v16  ;;  %v9006_v55 = vadd.f32 %v1727_v59, %v8645_v45 }
 0x2ee   :  { %v1741_v18 = vld [vmem:[%s10389_s1 + $0x140] sm:$0xff]  ;;  %v1742_v12 = vld [vmem:[%s10389_s1 + $0x148] sm:$0xff]  ;;  %v1743_v0 = vld [vmem:[%s10389_s1 + $0x150] sm:$0xff]  ;;  %v9009_v5 = vadd.f32 %v1728_v24, %v8649_v56  ;;  %v9012_v21 = vadd.f32 %v1729_v23, %v8653_v61  ;;  %v9024_v45 = vadd.f32 %v1730_v52, %v8657_v40  ;;  %v9027_v56 = vadd.f32 %v1731_v19, %v8661_v49 }
 0x2ef   :  { %v1744_v37 = vld [vmem:[%s10389_s1 + $0x158] sm:$0xff]  ;;  %v1745_v44 = vld [vmem:[%s10389_s1 + $0x160] sm:$0xff]  ;;  %v1746_v53 = vld [vmem:[%s10389_s1 + $0x168] sm:$0xff]  ;;  %v9030_v61 = vadd.f32 %v1732_v60, %v8665_v50  ;;  %v9033_v59 = vadd.f32 %v1733_v46, %v8669_v11  ;;  %v9045_v49 = vadd.f32 %v1734_v62, %v8673_v36  ;;  %v9048_v50 = vadd.f32 %v1735_v22, %v8677_v9 }
 0x2f0   :  { %v1747_v4 = vld [vmem:[%s10389_s1 + $0x170] sm:$0xff]  ;;  %v1748_v3 = vld [vmem:[%s10389_s1 + $0x178] sm:$0xff]  ;;  %v1749_v16 = vld [vmem:[%s10389_s1 + $0x180] sm:$0xff]  ;;  %v9051_v11 = vadd.f32 %v1736_v8, %v8681_v43 }
 0x2f1   :  { %v1750_v33 = vld [vmem:[%s10389_s1 + $0x188] sm:$0xff]  ;;  %v1751_v47 = vld [vmem:[%s10389_s1 + $0x190] sm:$0xff]  ;;  %v1752_v40 = vld [vmem:[%s10389_s1 + $0x198] sm:$0xff] }
 0x2f2   :  { %v10569_v19 = vld [vmem:[#allocation6_spill] sm:$0xff]  ;;  %v1753_v24 = vld [vmem:[%s10389_s1 + $0x1a0] sm:$0xff]  ;;  %v1754_v23 = vld [vmem:[%s10389_s1 + $0x1a8] sm:$0xff] }
 0x2f3   :  { %v9054_v30 = vadd.f32 %v1737_v25, %v10569_v19  ;;  %v1755_v36 = vld [vmem:[%s10389_s1 + $0x1b0] sm:$0xff]  ;;  %v10570_v9 = vld [vmem:[#allocation7_spill] sm:$0xff]  ;;  %v10572_v43 = vld [vmem:[#allocation8_spill] sm:$0xff] }
 0x2f4   :  { %v9066_v63 = vadd.f32 %v1738_v39, %v10570_v9  ;;  %v9069_v52 = vadd.f32 %v1739_v15, %v10572_v43  ;;  %v10574_v60 = vld [vmem:[#allocation9_spill] sm:$0xff]  ;;  %v10576_v62 = vld [vmem:[#allocation10_spill] sm:$0xff]  ;;  %v1757_v25 = vld [vmem:[%s10389_s1 + $0x1c0] sm:$0xff] }
 0x2f5   :  { %v9072_v46 = vadd.f32 %v1740_v6, %v10574_v60  ;;  %v9075_v22 = vadd.f32 %v1741_v18, %v10576_v62  ;;  %v1756_v8 = vld [vmem:[%s10389_s1 + $0x1b8] sm:$0xff]  ;;  %v1758_v39 = vld [vmem:[%s10389_s1 + $0x1c8] sm:$0xff]  ;;  %v10578_v15 = vld [vmem:[#allocation11_spill] sm:$0xff] }
 0x2f6   :  { %10571 = vst [vmem:[#allocation6_spill] sm:$0xff] %v9066_v63  ;;  %10573 = vst [vmem:[#allocation7_spill] sm:$0xff] %v9069_v52  ;;  %v9087_v19 = vadd.f32 %v1742_v12, %v10578_v15  ;;  %v10580_v6 = vld [vmem:[#allocation12_spill] sm:$0xff]  ;;  %v10584_v60 = vld [vmem:[#allocation17_spill] sm:$0xff] }
 0x2f7   :  { %10575 = vst [vmem:[#allocation8_spill] sm:$0xff] %v9072_v46  ;;  %10577 = vst [vmem:[#allocation9_spill] sm:$0xff] %v9075_v22  ;;  %v9090_v9 = vadd.f32 %v1743_v0, %v10580_v6  ;;  %v10582_v18 = vld [vmem:[#allocation16_spill] sm:$0xff]  ;;  %v9096_v62 = vadd.f32 %v1745_v44, %v10584_v60  ;;  %v1759_v22 = vld [vmem:[%s10389_s1 + $0x1d0] sm:$0xff] }
 0x2f8   :  { %10579 = vst [vmem:[#allocation10_spill] sm:$0xff] %v9087_v19  ;;  %v9093_v43 = vadd.f32 %v1744_v37, %v10582_v18  ;;  %v1760_v46 = vld [vmem:[%s10389_s1 + $0x1d8] sm:$0xff]  ;;  %v1761_v12 = vld [vmem:[%s10389_s1 + $0x1e0] sm:$0xff]  ;;  %v10590_v44 = vld [vmem:[#allocation20_spill] sm:$0xff] }
 0x2f9   :  { %10581 = vst [vmem:[#allocation11_spill] sm:$0xff] %v9090_v9  ;;  %10585 = vst [vmem:[#allocation16_spill] sm:$0xff] %v9096_v62  ;;  %v10586_v0 = vld [vmem:[#allocation18_spill] sm:$0xff]  ;;  %v10588_v37 = vld [vmem:[#allocation19_spill] sm:$0xff]  ;;  %v9114_v18 = vadd.f32 %v1748_v3, %v10590_v44 }
 0x2fa   :  { %10583 = vst [vmem:[#allocation12_spill] sm:$0xff] %v9093_v43  ;;  %v9108_v15 = vadd.f32 %v1746_v53, %v10586_v0  ;;  %v9111_v6 = vadd.f32 %v1747_v4, %v10588_v37  ;;  %v10592_v60 = vld [vmem:[#allocation21_spill] sm:$0xff]  ;;  %v1762_v43 = vld [vmem:[%s10389_s1 + $0x1e8] sm:$0xff]  ;;  %v1764_v53 = vld [vmem:[%s10389_s1 + $0x1f8] sm:$0xff] }
 0x2fb   :  { %10591 = vst [vmem:[#allocation19_spill] sm:$0xff] %v9114_v18  ;;  %v9117_v62 = vadd.f32 %v1749_v16, %v10592_v60  ;;  %v1763_v9 = vld [vmem:[%s10389_s1 + $0x1f0] sm:$0xff]  ;;  %v10594_v4 = vld [vmem:[#allocation22_spill] sm:$0xff]  ;;  %v10595_v3 = vld [vmem:[#allocation23_spill] sm:$0xff] }
 0x2fc   :  { %10587 = vst [vmem:[#allocation17_spill] sm:$0xff] %v9108_v15  ;;  %10589 = vst [vmem:[#allocation18_spill] sm:$0xff] %v9111_v6  ;;  %v9129_v0 = vadd.f32 %v1750_v33, %v10594_v4  ;;  %v9132_v37 = vadd.f32 %v1751_v47, %v10595_v3  ;;  %v10596_v16 = vld [vmem:[#allocation24_spill] sm:$0xff]  ;;  %v10597_v60 = vld [vmem:[#allocation25_spill] sm:$0xff] }
 0x2fd   :  { %10593 = vst [vmem:[#allocation20_spill] sm:$0xff] %v9117_v62  ;;  %v9135_v44 = vadd.f32 %v1752_v40, %v10596_v16  ;;  %v9138_v62 = vadd.f32 %v1753_v24, %v10597_v60  ;;  %v10598_v18 = vld [vmem:[#allocation27_spill] sm:$0xff]  ;;  %v10599_v15 = vld [vmem:[#allocation26_spill] sm:$0xff]  ;;  %v10600_v52 = vld [vmem:[#allocation28_spill] sm:$0xff] }
 0x2fe   :  { %v9141_v6 = vadd.f32 %v1754_v23, %v10598_v18  ;;  %v9144_v19 = vadd.f32 %v1755_v36, %v10599_v15  ;;  %v9147_v63 = vadd.f32 %v1756_v8, %v10600_v52  ;;  %v10601_v33 = vld [vmem:[#allocation29_spill] sm:$0xff]  ;;  %v10602_v47 = vld [vmem:[#allocation30_spill] sm:$0xff]  ;;  %v10603_v40 = vld [vmem:[#allocation4_spill] sm:$0xff] }
 0x2ff   :  { %v9150_v4 = vadd.f32 %v1757_v25, %v10601_v33  ;;  %v9153_v3 = vadd.f32 %v1758_v39, %v10602_v47  ;;  %v9156_v16 = vadd.f32 %v1759_v22, %v10603_v40  ;;  %v10604_v24 = vld [vmem:[#allocation31_spill] sm:$0xff]  ;;  %v10605_v23 = vld [vmem:[#allocation32_spill] sm:$0xff]  ;;  %v10606_v36 = vld [vmem:[#allocation5_spill] sm:$0xff]  ;;  %v1829_v39 = vmax.f32 %v8865_v7, 0.0 }
 0x300   :  { %v9159_v60 = vadd.f32 %v1760_v46, %v10604_v24  ;;  %v9162_v18 = vadd.f32 %v1761_v12, %v10605_v23  ;;  %v9165_v15 = vadd.f32 %v1762_v43, %v10606_v36  ;;  %v10607_v52 = vld [vmem:[#allocation33_spill] sm:$0xff]  ;;  %v10608_v25 = vld [vmem:[#allocation34_spill] sm:$0xff]  ;;  %v1830_v22 = vmax.f32 %v8868_v32, 0.0  ;;  %v10609_v46 = vld [vmem:[#allocation35_spill] sm:$0xff] }
 0x301   :  { %v9168_v8 = vadd.f32 %v1763_v9, %v10607_v52  ;;  %v9171_v33 = vadd.f32 %v1764_v53, %v10608_v25  ;;  %v1831_v47 = vmax.f32 %v8871_v57, 0.0  ;;  %v1832_v40 = vmax.f32 %v10609_v46, 0.0  ;;  %1893 = vst.msk [vmem:[#allocation2] sm:$0xff] %vm257_vm0, %v1829_v39  ;;  %v10613_v36 = vld [vmem:[#allocation9_spill] sm:$0xff]  ;;  %v10614_v52 = vld [vmem:[#allocation10_spill] sm:$0xff]  ;;  %v10616_v39 = vld [vmem:[#allocation12_spill] sm:$0xff] }
 0x302   :  { %v1833_v12 = vmax.f32 %v8892_v54, 0.0  ;;  %v1834_v24 = vmax.f32 %v8895_v17, 0.0  ;;  %v1835_v43 = vmax.f32 %v8898_v27, 0.0  ;;  %v1836_v9 = vmax.f32 %v8901_v42, 0.0  ;;  %1894 = vst.msk [vmem:[#allocation2 + $0x8] sm:$0xff] %vm257_vm0, %v1830_v22 }
 0x303   :  { %v1837_v23 = vmax.f32 %v8916_v10, 0.0  ;;  %v1838_v7 = vmax.f32 %v8919_v28, 0.0  ;;  %v1839_v32 = vmax.f32 %v8922_v26, 0.0  ;;  %v1840_v57 = vmax.f32 %v8925_v34, 0.0  ;;  %1895 = vst.msk [vmem:[#allocation2 + $0x10] sm:$0xff] %vm257_vm0, %v1831_v47  ;;  %1896 = vst.msk [vmem:[#allocation2 + $0x18] sm:$0xff] %vm257_vm0, %v1832_v40 }
 0x304   :  { %v1841_v53 = vmax.f32 %v8940_v51, 0.0  ;;  %1897 = vst.msk [vmem:[#allocation2 + $0x20] sm:$0xff] %vm257_vm0, %v1833_v12  ;;  %v1842_v54 = vmax.f32 %v8943_v1, 0.0  ;;  %v1843_v17 = vmax.f32 %v8946_v14, 0.0  ;;  %v1844_v27 = vmax.f32 %v8949_v41, 0.0  ;;  %1898 = vst.msk [vmem:[#allocation2 + $0x28] sm:$0xff] %vm257_vm0, %v1834_v24 }
 0x305   :  { %v1846_v42 = vmax.f32 %v8961_v38, 0.0  ;;  %1899 = vst.msk [vmem:[#allocation2 + $0x30] sm:$0xff] %vm257_vm0, %v1835_v43  ;;  %1900 = vst.msk [vmem:[#allocation2 + $0x38] sm:$0xff] %vm257_vm0, %v1836_v9  ;;  %v1847_v10 = vmax.f32 %v8964_v31, 0.0  ;;  %v1848_v28 = vmax.f32 %v8967_v29, 0.0  ;;  %v1849_v26 = vmax.f32 %v8970_v13, 0.0 }
 0x306   :  { %1901 = vst.msk [vmem:[#allocation2 + $0x40] sm:$0xff] %vm257_vm0, %v1837_v23  ;;  %v1850_v34 = vmax.f32 %v8982_v48, 0.0  ;;  %1902 = vst.msk [vmem:[#allocation2 + $0x48] sm:$0xff] %vm257_vm0, %v1838_v7  ;;  %v1851_v51 = vmax.f32 %v8985_v58, 0.0  ;;  %v1852_v1 = vmax.f32 %v8988_v2, 0.0  ;;  %v1853_v14 = vmax.f32 %v8991_v20, 0.0 }
 0x307   :  { %1903 = vst.msk [vmem:[#allocation2 + $0x50] sm:$0xff] %vm257_vm0, %v1839_v32  ;;  %1904 = vst.msk [vmem:[#allocation2 + $0x58] sm:$0xff] %vm257_vm0, %v1840_v57  ;;  %v1854_v41 = vmax.f32 %v9003_v35, 0.0  ;;  %v1855_v38 = vmax.f32 %v9006_v55, 0.0  ;;  %v1856_v31 = vmax.f32 %v9009_v5, 0.0  ;;  %v1857_v29 = vmax.f32 %v9012_v21, 0.0 }
 0x308   :  { %1905 = vst.msk [vmem:[#allocation2 + $0x60] sm:$0xff] %vm257_vm0, %v1841_v53  ;;  %1906 = vst.msk [vmem:[#allocation2 + $0x68] sm:$0xff] %vm257_vm0, %v1842_v54  ;;  %v1858_v13 = vmax.f32 %v9024_v45, 0.0  ;;  %v1859_v48 = vmax.f32 %v9027_v56, 0.0  ;;  %v1860_v58 = vmax.f32 %v9030_v61, 0.0  ;;  %v1861_v2 = vmax.f32 %v9033_v59, 0.0 }
 0x309   :  { %1907 = vst.msk [vmem:[#allocation2 + $0x70] sm:$0xff] %vm257_vm0, %v1843_v17  ;;  %1908 = vst.msk [vmem:[#allocation2 + $0x78] sm:$0xff] %vm257_vm0, %v1844_v27  ;;  %v1862_v20 = vmax.f32 %v9045_v49, 0.0  ;;  %v1863_v35 = vmax.f32 %v9048_v50, 0.0  ;;  %v1864_v55 = vmax.f32 %v9051_v11, 0.0  ;;  %v1865_v5 = vmax.f32 %v9054_v30, 0.0 }
 0x30a   :  { %1910 = vst.msk [vmem:[#allocation2 + $0x88] sm:$0xff] %vm257_vm0, %v1846_v42  ;;  %1911 = vst.msk [vmem:[#allocation2 + $0x90] sm:$0xff] %vm257_vm0, %v1847_v10  ;;  %v10610_v21 = vld [vmem:[#allocation6_spill] sm:$0xff]  ;;  %v10611_v56 = vld [vmem:[#allocation7_spill] sm:$0xff]  ;;  %v1869_v50 = vmax.f32 %v10613_v36, 0.0  ;;  %v1870_v11 = vmax.f32 %v10614_v52, 0.0 }
 0x30b   :  { %1912 = vst.msk [vmem:[#allocation2 + $0x98] sm:$0xff] %vm257_vm0, %v1848_v28  ;;  %1913 = vst.msk [vmem:[#allocation2 + $0xa0] sm:$0xff] %vm257_vm0, %v1849_v26  ;;  %v1866_v45 = vmax.f32 %v10610_v21, 0.0  ;;  %v1867_v61 = vmax.f32 %v10611_v56, 0.0  ;;  %v10612_v59 = vld [vmem:[#allocation8_spill] sm:$0xff]  ;;  %v10615_v30 = vld [vmem:[#allocation11_spill] sm:$0xff] }
 0x30c   :  { %1914 = vst.msk [vmem:[#allocation2 + $0xa8] sm:$0xff] %vm257_vm0, %v1850_v34  ;;  %1915 = vst.msk [vmem:[#allocation2 + $0xb0] sm:$0xff] %vm257_vm0, %v1851_v51  ;;  %v1868_v49 = vmax.f32 %v10612_v59, 0.0  ;;  %v1871_v25 = vmax.f32 %v10615_v30, 0.0  ;;  %v1872_v22 = vmax.f32 %v10616_v39, 0.0  ;;  %v10617_v47 = vld [vmem:[#allocation16_spill] sm:$0xff] }
 0x30d   :  { %1916 = vst.msk [vmem:[#allocation2 + $0xb8] sm:$0xff] %vm257_vm0, %v1852_v1  ;;  %1917 = vst.msk [vmem:[#allocation2 + $0xc0] sm:$0xff] %vm257_vm0, %v1853_v14  ;;  %v1873_v46 = vmax.f32 %v10617_v47, 0.0  ;;  %v10618_v40 = vld [vmem:[#allocation17_spill] sm:$0xff]  ;;  %v10619_v24 = vld [vmem:[#allocation18_spill] sm:$0xff]  ;;  %v1878_v57 = vmax.f32 %v9129_v0, 0.0 }
 0x30e   :  { %1918 = vst.msk [vmem:[#allocation2 + $0xc8] sm:$0xff] %vm257_vm0, %v1854_v41  ;;  %1919 = vst.msk [vmem:[#allocation2 + $0xd0] sm:$0xff] %vm257_vm0, %v1855_v38  ;;  %v1874_v12 = vmax.f32 %v10618_v40, 0.0  ;;  %v1875_v43 = vmax.f32 %v10619_v24, 0.0  ;;  %v10620_v9 = vld [vmem:[#allocation19_spill] sm:$0xff]  ;;  %v10621_v7 = vld [vmem:[#allocation20_spill] sm:$0xff] }
 0x30f   :  { %1920 = vst.msk [vmem:[#allocation2 + $0xd8] sm:$0xff] %vm257_vm0, %v1856_v31  ;;  %1921 = vst.msk [vmem:[#allocation2 + $0xe0] sm:$0xff] %vm257_vm0, %v1857_v29  ;;  %v1876_v23 = vmax.f32 %v10620_v9, 0.0  ;;  %v1877_v32 = vmax.f32 %v10621_v7, 0.0  ;;  %v5220_v53 = vld [vmem:[%s10386_s5 + $0x110] sm:$0xff]  ;;  %v5221_v54 = vld [vmem:[%s10386_s5 + $0x118] sm:$0xff] }
 0x310   :  { %1922 = vst.msk [vmem:[#allocation2 + $0xe8] sm:$0xff] %vm257_vm0, %v1858_v13  ;;  %1923 = vst.msk [vmem:[#allocation2 + $0xf0] sm:$0xff] %vm257_vm0, %v1859_v48  ;;  %v1879_v17 = vmax.f32 %v9132_v37, 0.0  ;;  %v1880_v0 = vmax.f32 %v9135_v44, 0.0  ;;  %v1881_v27 = vmax.f32 %v9138_v62, 0.0  ;;  %v1882_v42 = vmax.f32 %v9141_v6, 0.0 }
 0x311   :  { %1924 = vst.msk [vmem:[#allocation2 + $0xf8] sm:$0xff] %vm257_vm0, %v1860_v58  ;;  %1925 = vst.msk [vmem:[#allocation2 + $0x100] sm:$0xff] %vm257_vm0, %v1861_v2  ;;  %v9277_v10 = vld [vmem:[#allocation2 + $0x88] sm:$0xff]  ;;  %v5098_v37 = vld [vmem:[%s10386_s5 + $0x80] sm:$0xff]  ;;  %v1883_v44 = vmax.f32 %v9144_v19, 0.0  ;;  %v1884_v62 = vmax.f32 %v9147_v63, 0.0 }
 0x312   :  { %1926 = vst.msk [vmem:[#allocation2 + $0x108] sm:$0xff] %vm257_vm0, %v1862_v20  ;;  %1927 = vst.msk [vmem:[#allocation2 + $0x110] sm:$0xff] %vm257_vm0, %v1863_v35  ;;  %v1885_v6 = vmax.f32 %v9150_v4, 0.0  ;;  %v1886_v28 = vmax.f32 %v9153_v3, 0.0  ;;  %5879 = vmatmul.mubr.msk.f32.vlgmr.msra.gmra.mrb[46].mxu1 %vm257_vm0, %v9277_v10  ;;  %6135 = vmatmul.mubr.msk.f32.vlgmr.msra.gmra.mrb[146].mxu0 %vm257_vm0, %v9277_v10  ;;  %v9294_v19 = vld [vmem:[#allocation2 + $0x90] sm:$0xff]  ;;  %v5099_v63 = vld [vmem:[%s10386_s5 + $0x88] sm:$0xff] }
 0x313   :  { %1928 = vst.msk [vmem:[#allocation2 + $0x118] sm:$0xff] %vm257_vm0, %v1864_v55  ;;  %1929 = vst.msk [vmem:[#allocation2 + $0x120] sm:$0xff] %vm257_vm0, %v1865_v5  ;;  %v1887_v4 = vmax.f32 %v9156_v16, 0.0  ;;  %v1888_v3 = vmax.f32 %v9159_v60, 0.0  ;;  %v1889_v26 = vmax.f32 %v9162_v18, 0.0  ;;  %v1890_v34 = vmax.f32 %v9165_v15, 0.0  ;;  %5881 = vmatprep.mubr.msk.f32.mxu1 %vm257_vm0, %v9294_v19  ;;  %6137 = vmatprep.mubr.msk.f32.mxu0 %vm257_vm0, %v9294_v19 }
 0x314   :  { %1930 = vst.msk [vmem:[#allocation2 + $0x128] sm:$0xff] %vm257_vm0, %v1866_v45  ;;  %1931 = vst.msk [vmem:[#allocation2 + $0x130] sm:$0xff] %vm257_vm0, %v1867_v61  ;;  %v10622_v51 = vld [vmem:[#allocation3_spill] sm:$0xff]  ;;  %v1891_v16 = vmax.f32 %v9168_v8, 0.0  ;;  %v1892_v60 = vmax.f32 %v9171_v33, 0.0  ;;  %v6514_v15 = vpack.c.bf16 %v5221_v54, %v5220_v53  ;;  %v9323_v8 = vld [vmem:[#allocation2 + $0x98] sm:$0xff]  ;;  %v9326_v1 = vpack.c.bf16 %v5099_v63, %v5098_v37 }
 0x315   :  { %1932 = vst.msk [vmem:[#allocation2 + $0x138] sm:$0xff] %vm257_vm0, %v1868_v49  ;;  %1933 = vst.msk [vmem:[#allocation2 + $0x140] sm:$0xff] %vm257_vm0, %v1869_v50  ;;  %6449 = vmatpush3.bf16.msra.mxu1 %v10622_v51  ;;  %v10623_v18 = vld [vmem:[#allocation15_spill] sm:$0xff]  ;;  %v10624_v33 = vld [vmem:[#allocation13_spill] sm:$0xff] }
 0x316   :  { %1934 = vst.msk [vmem:[#allocation2 + $0x148] sm:$0xff] %vm257_vm0, %v1870_v11  ;;  %1935 = vst.msk [vmem:[#allocation2 + $0x150] sm:$0xff] %vm257_vm0, %v1871_v25  ;;  %6451 = vmatprep.subr.bf16.mxu1 %v10623_v18  ;;  %6513 = vmatpush3.bf16.msra.mxu0 %v10624_v33  ;;  %v5258_v14 = vld [vmem:[%s10386_s5 + $0x180] sm:$0xff]  ;;  %v5259_v41 = vld [vmem:[%s10386_s5 + $0x188] sm:$0xff] }
 0x317   :  { %1936 = vst.msk [vmem:[#allocation2 + $0x158] sm:$0xff] %vm257_vm0, %v1872_v22  ;;  %1937 = vst.msk [vmem:[#allocation2 + $0x160] sm:$0xff] %vm257_vm0, %v1873_v46  ;;  %5882 = vmatmul.mubr.msk.f32.gmra.mrb[48].mxu1 %vm257_vm0, %v9323_v8  ;;  %6138 = vmatmul.mubr.msk.f32.gmra.mrb[148].mxu0 %vm257_vm0, %v9323_v8  ;;  %v9340_v38 = vld [vmem:[#allocation2 + $0xa0] sm:$0xff]  ;;  %v6518_v31 = vpack.c.bf16 %v5259_v41, %v5258_v14  ;;  %v9347_v29 = vld [vmem:[#allocation2 + $0xa8] sm:$0xff] }
 0x318   :  { %1938 = vst.msk [vmem:[#allocation2 + $0x168] sm:$0xff] %vm257_vm0, %v1874_v12  ;;  %1939 = vst.msk [vmem:[#allocation2 + $0x170] sm:$0xff] %vm257_vm0, %v1875_v43  ;;  %5884 = vmatprep.mubr.msk.f32.mxu1 %vm257_vm0, %v9340_v38  ;;  %6140 = vmatprep.mubr.msk.f32.mxu0 %vm257_vm0, %v9340_v38  ;;  %v9354_v13 = vld [vmem:[#allocation2 + $0xb0] sm:$0xff]  ;;  %v9360_v48 = vld [vmem:[#allocation2 + $0xb8] sm:$0xff] }
 0x319   :  { %1940 = vst.msk [vmem:[#allocation2 + $0x178] sm:$0xff] %vm257_vm0, %v1876_v23  ;;  %1941 = vst.msk [vmem:[#allocation2 + $0x180] sm:$0xff] %vm257_vm0, %v1877_v32  ;;  %6453 = vmatpush3.bf16.msra.mxu1 %v10623_v18  ;;  %6515 = vmatprep.subr.bf16.mxu0 %v6514_v15  ;;  %v9366_v58 = vld [vmem:[#allocation2 + $0xc0] sm:$0xff]  ;;  %v9372_v2 = vld [vmem:[#allocation2 + $0xc8] sm:$0xff] }
 0x31a   :  { %1942 = vst.msk [vmem:[#allocation2 + $0x188] sm:$0xff] %vm257_vm0, %v1878_v57  ;;  %1943 = vst.msk [vmem:[#allocation2 + $0x190] sm:$0xff] %vm257_vm0, %v1879_v17  ;;  %6517 = vmatpush3.bf16.msra.mxu0 %v6514_v15  ;;  %6455 = vmatprep.subr.bf16.mxu1 %v9326_v1  ;;  %v9378_v20 = vld [vmem:[#allocation2 + $0xd0] sm:$0xff]  ;;  %v9384_v35 = vld [vmem:[#allocation2 + $0xd8] sm:$0xff] }
 0x31b   :  { %1944 = vst.msk [vmem:[#allocation2 + $0x198] sm:$0xff] %vm257_vm0, %v1880_v0  ;;  %1945 = vst.msk [vmem:[#allocation2 + $0x1a0] sm:$0xff] %vm257_vm0, %v1881_v27  ;;  %5885 = vmatmul.mubr.msk.f32.gmra.mrb[50].mxu1 %vm257_vm0, %v9347_v29  ;;  %6141 = vmatmul.mubr.msk.f32.gmra.mrb[150].mxu0 %vm257_vm0, %v9347_v29  ;;  %v9390_v55 = vld [vmem:[#allocation2 + $0xe0] sm:$0xff]  ;;  %v9396_v5 = vld [vmem:[#allocation2 + $0xe8] sm:$0xff] }
 0x31c   :  { %1946 = vst.msk [vmem:[#allocation2 + $0x1a8] sm:$0xff] %vm257_vm0, %v1882_v42  ;;  %1947 = vst.msk [vmem:[#allocation2 + $0x1b0] sm:$0xff] %vm257_vm0, %v1883_v44  ;;  %5887 = vmatprep.mubr.msk.f32.mxu1 %vm257_vm0, %v9354_v13  ;;  %6143 = vmatprep.mubr.msk.f32.mxu0 %vm257_vm0, %v9354_v13  ;;  %v9402_v21 = vld [vmem:[#allocation2 + $0xf0] sm:$0xff]  ;;  %v9408_v45 = vld [vmem:[#allocation2 + $0xf8] sm:$0xff] }
 0x31d   :  { %1948 = vst.msk [vmem:[#allocation2 + $0x1b8] sm:$0xff] %vm257_vm0, %v1884_v62  ;;  %1949 = vst.msk [vmem:[#allocation2 + $0x1c0] sm:$0xff] %vm257_vm0, %v1885_v6  ;;  %6519 = vmatprep.subr.bf16.mxu0 %v6518_v31  ;;  %v5100_v56 = vld [vmem:[%s10386_s5 + $0x90] sm:$0xff]  ;;  %v5101_v61 = vld [vmem:[%s10386_s5 + $0x98] sm:$0xff] }
 0x31e   :  { %1950 = vst.msk [vmem:[#allocation2 + $0x1c8] sm:$0xff] %vm257_vm0, %v1886_v28  ;;  %1951 = vst.msk [vmem:[#allocation2 + $0x1d0] sm:$0xff] %vm257_vm0, %v1887_v4  ;;  %v9420_v59 = vld [vmem:[#allocation2] sm:$0xff]  ;;  %v6458_v49 = vpack.c.bf16 %v5101_v61, %v5100_v56  ;;  %v9426_v36 = vld [vmem:[#allocation2 + $0x8] sm:$0xff] }
 0x31f   :  { %1952 = vst.msk [vmem:[#allocation2 + $0x1d8] sm:$0xff] %vm257_vm0, %v1888_v3  ;;  %1953 = vst.msk [vmem:[#allocation2 + $0x1e0] sm:$0xff] %vm257_vm0, %v1889_v26  ;;  %5888 = vmatmul.mubr.msk.f32.gmra.mrb[52].mxu1 %vm257_vm0, %v9360_v48  ;;  %6144 = vmatmul.mubr.msk.f32.gmra.mrb[152].mxu0 %vm257_vm0, %v9360_v48  ;;  %v5260_v50 = vld [vmem:[%s10386_s5 + $0x190] sm:$0xff]  ;;  %v5261_v52 = vld [vmem:[%s10386_s5 + $0x198] sm:$0xff] }
 0x320   :  { %1954 = vst.msk [vmem:[#allocation2 + $0x1e8] sm:$0xff] %vm257_vm0, %v1890_v34  ;;  %1955 = vst.msk [vmem:[#allocation2 + $0x1f0] sm:$0xff] %vm257_vm0, %v1891_v16  ;;  %5890 = vmatprep.mubr.msk.f32.mxu1 %vm257_vm0, %v9366_v58  ;;  %6146 = vmatprep.mubr.msk.f32.mxu0 %vm257_vm0, %v9366_v58  ;;  %v9438_v11 = vld [vmem:[#allocation2 + $0x10] sm:$0xff]  ;;  %v5118_v30 = vld [vmem:[%s10386_s5 + $0xa0] sm:$0xff]  ;;  %v6522_v39 = vpack.c.bf16 %v5261_v52, %v5260_v50 }
 0x321   :  { %1956 = vst.msk [vmem:[#allocation2 + $0x1f8] sm:$0xff] %vm257_vm0, %v1892_v60  ;;  %v5119_v25 = vld [vmem:[%s10386_s5 + $0xa8] sm:$0xff]  ;;  %v9451_v22 = vld [vmem:[#allocation2 + $0x18] sm:$0xff]  ;;  %v5278_v46 = vld [vmem:[%s10386_s5 + $0x1a0] sm:$0xff] }
 0x322   :  { %v6462_v47 = vpack.c.bf16 %v5119_v25, %v5118_v30  ;;  %v5279_v40 = vld [vmem:[%s10386_s5 + $0x1a8] sm:$0xff]  ;;  %v9463_v12 = vld [vmem:[#allocation2 + $0x20] sm:$0xff]  ;;  %v9475_v9 = vld [vmem:[#allocation2 + $0x30] sm:$0xff] }
 0x323   :  { %5891 = vmatmul.mubr.msk.f32.gmra.mrb[54].mxu1 %vm257_vm0, %v9372_v2  ;;  %6147 = vmatmul.mubr.msk.f32.gmra.mrb[154].mxu0 %vm257_vm0, %v9372_v2  ;;  %v6526_v24 = vpack.c.bf16 %v5279_v40, %v5278_v46  ;;  %v9469_v43 = vld [vmem:[#allocation2 + $0x28] sm:$0xff]  ;;  %v9481_v23 = vld [vmem:[#allocation2 + $0x38] sm:$0xff]  ;;  %v9487_v7 = vld [vmem:[#allocation2 + $0x40] sm:$0xff] }
 0x324   :  { %5893 = vmatprep.mubr.msk.f32.mxu1 %vm257_vm0, %v9378_v20  ;;  %6149 = vmatprep.mubr.msk.f32.mxu0 %vm257_vm0, %v9378_v20  ;;  %v9493_v32 = vld [vmem:[#allocation2 + $0x48] sm:$0xff]  ;;  %v9499_v57 = vld [vmem:[#allocation2 + $0x50] sm:$0xff]  ;;  %v9505_v53 = vld [vmem:[#allocation2 + $0x58] sm:$0xff] }
 0x325   :  { %v9511_v54 = vld [vmem:[#allocation2 + $0x60] sm:$0xff]  ;;  %v9517_v17 = vld [vmem:[#allocation2 + $0x68] sm:$0xff]  ;;  %v9523_v0 = vld [vmem:[#allocation2 + $0x70] sm:$0xff] }
 0x326   :  { %v9529_v27 = vld [vmem:[#allocation2 + $0x78] sm:$0xff]  ;;  %v5120_v42 = vld [vmem:[%s10386_s5 + $0xb0] sm:$0xff]  ;;  %v9541_v44 = vld [vmem:[#allocation2 + $0x100] sm:$0xff] }
 0x327   :  { %5894 = vmatmul.mubr.msk.f32.gmra.mrb[56].mxu1 %vm257_vm0, %v9384_v35  ;;  %6150 = vmatmul.mubr.msk.f32.gmra.mrb[156].mxu0 %vm257_vm0, %v9384_v35  ;;  %v5121_v37 = vld [vmem:[%s10386_s5 + $0xb8] sm:$0xff]  ;;  %v9547_v6 = vld [vmem:[#allocation2 + $0x108] sm:$0xff]  ;;  %v5280_v28 = vld [vmem:[%s10386_s5 + $0x1b0] sm:$0xff] }
 0x328   :  { %5896 = vmatprep.mubr.msk.f32.mxu1 %vm257_vm0, %v9390_v55  ;;  %6152 = vmatprep.mubr.msk.f32.mxu0 %vm257_vm0, %v9390_v55  ;;  %v6466_v62 = vpack.c.bf16 %v5121_v37, %v5120_v42  ;;  %v5281_v63 = vld [vmem:[%s10386_s5 + $0x1b8] sm:$0xff]  ;;  %v9559_v4 = vld [vmem:[#allocation2 + $0x110] sm:$0xff]  ;;  %v5142_v3 = vld [vmem:[%s10386_s5 + $0x60] sm:$0xff] }
 0x329   :  { %v5143_v26 = vld [vmem:[%s10386_s5 + $0x68] sm:$0xff]  ;;  %v6530_v34 = vpack.c.bf16 %v5281_v63, %v5280_v28  ;;  %v9571_v51 = vld [vmem:[#allocation2 + $0x118] sm:$0xff]  ;;  %v9577_v60 = vld [vmem:[#allocation2 + $0x120] sm:$0xff] }
 0x32a   :  { %v6470_v16 = vpack.c.bf16 %v5143_v26, %v5142_v3  ;;  %v9583_v18 = vld [vmem:[#allocation2 + $0x128] sm:$0xff]  ;;  %v9589_v15 = vld [vmem:[#allocation2 + $0x130] sm:$0xff]  ;;  %v9595_v33 = vld [vmem:[#allocation2 + $0x138] sm:$0xff] }
 0x32b   :  { %5897 = vmatmul.mubr.msk.f32.gmra.mrb[58].mxu1 %vm257_vm0, %v9396_v5  ;;  %6153 = vmatmul.mubr.msk.f32.gmra.mrb[158].mxu0 %vm257_vm0, %v9396_v5  ;;  %v9607_v14 = vld [vmem:[#allocation2 + $0x148] sm:$0xff]  ;;  %v9613_v41 = vld [vmem:[#allocation2 + $0x150] sm:$0xff]  ;;  %v9625_v56 = vld [vmem:[#allocation2 + $0x160] sm:$0xff] }
 0x32c   :  { %5899 = vmatprep.mubr.msk.f32.mxu1 %vm257_vm0, %v9402_v21  ;;  %6155 = vmatprep.mubr.msk.f32.mxu0 %vm257_vm0, %v9402_v21  ;;  %v9631_v61 = vld [vmem:[#allocation2 + $0x168] sm:$0xff]  ;;  %v9643_v50 = vld [vmem:[#allocation2 + $0x178] sm:$0xff]  ;;  %v5144_v52 = vld [vmem:[%s10386_s5 + $0x70] sm:$0xff] }
 0x32d   :  { %v5145_v30 = vld [vmem:[%s10386_s5 + $0x78] sm:$0xff]  ;;  %v9655_v25 = vld [vmem:[#allocation2 + $0x180] sm:$0xff]  ;;  %v9667_v46 = vld [vmem:[#allocation2 + $0x190] sm:$0xff] }
 0x32e   :  { %10626 = vst [vmem:[#allocation22_spill] sm:$0xff] %v9655_v25  ;;  %v5138_v40 = vld [vmem:[%s10386_s5 + $0x40] sm:$0xff]  ;;  %v9679_v42 = vld [vmem:[#allocation2 + $0x198] sm:$0xff]  ;;  %v9691_v28 = vld [vmem:[#allocation2 + $0x1a8] sm:$0xff] }
 0x32f   :  { %5900 = vmatmul.mubr.msk.f32.gmra.mrb[60].mxu1 %vm257_vm0, %v9408_v45  ;;  %6156 = vmatmul.mubr.msk.f32.gmra.mrb[160].mxu0 %vm257_vm0, %v9408_v45  ;;  %v9697_v63 = vld [vmem:[#allocation2 + $0x1b0] sm:$0xff]  ;;  %v9703_v3 = vld [vmem:[#allocation2 + $0x1b8] sm:$0xff]  ;;  %v9709_v26 = vld [vmem:[#allocation2 + $0x1c0] sm:$0xff] }
 0x330   :  { %5910 = vmatprep.mubr.msk.f32.mxu1 %vm257_vm0, %v9420_v59  ;;  %6166 = vmatprep.mubr.msk.f32.mxu0 %vm257_vm0, %v9420_v59  ;;  %10627 = vst [vmem:[#allocation23_spill] sm:$0xff] %v9697_v63  ;;  %10628 = vst [vmem:[#allocation24_spill] sm:$0xff] %v9703_v3 }
 0x331   :  { %10629 = vst [vmem:[#allocation25_spill] sm:$0xff] %v9709_v26 }
 0x333   :  { %5911 = vmatmul.mubr.msk.f32.vlgmr.msra.gmra.mrb[46].mxu1 %vm257_vm0, %v9426_v36  ;;  %6167 = vmatmul.mubr.msk.f32.vlgmr.msra.gmra.mrb[146].mxu0 %vm257_vm0, %v9426_v36 }
 0x334   :  { %5913 = vmatprep.mubr.msk.f32.mxu1 %vm257_vm0, %v9438_v11  ;;  %6457 = vmatpush3.bf16.msra.mxu1 %v9326_v1  ;;  %v9601_v1 = vld [vmem:[#allocation2 + $0x140] sm:$0xff] }
 0x335   :  { %6169 = vmatprep.mubr.msk.f32.mxu0 %vm257_vm0, %v9438_v11  ;;  %6459 = vmatprep.subr.bf16.mxu1 %v6458_v49 }
 0x336   :  { %6521 = vmatpush3.bf16.msra.mxu0 %v6518_v31  ;;  %v9619_v31 = vld [vmem:[#allocation2 + $0x158] sm:$0xff] }
 0x337   :  { %5914 = vmatmul.mubr.msk.f32.gmra.mrb[48].mxu1 %vm257_vm0, %v9451_v22  ;;  %6170 = vmatmul.mubr.msk.f32.gmra.mrb[148].mxu0 %vm257_vm0, %v9451_v22 }
 0x338   :  { %5916 = vmatprep.mubr.msk.f32.mxu1 %vm257_vm0, %v9463_v12  ;;  %6172 = vmatprep.mubr.msk.f32.mxu0 %vm257_vm0, %v9463_v12 }
 0x339   :  { %6461 = vmatpush3.bf16.msra.mxu1 %v6458_v49  ;;  %6523 = vmatprep.subr.bf16.mxu0 %v6522_v39  ;;  %v9637_v49 = vld [vmem:[#allocation2 + $0x170] sm:$0xff] }
 0x33a   :  { %6525 = vmatpush3.bf16.msra.mxu0 %v6522_v39  ;;  %6463 = vmatprep.subr.bf16.mxu1 %v6462_v47  ;;  %10625 = vst [vmem:[#allocation21_spill] sm:$0xff] %v9637_v49  ;;  %v6474_v39 = vpack.c.bf16 %v5145_v30, %v5144_v52  ;;  %v9727_v52 = vld [vmem:[#allocation2 + $0x1d8] sm:$0xff]  ;;  %v9733_v30 = vld [vmem:[#allocation2 + $0x1e0] sm:$0xff] }
 0x33b   :  { %5917 = vmatmul.mubr.msk.f32.gmra.mrb[50].mxu1 %vm257_vm0, %v9469_v43  ;;  %6173 = vmatmul.mubr.msk.f32.gmra.mrb[150].mxu0 %vm257_vm0, %v9469_v43  ;;  %10632 = vst [vmem:[#allocation28_spill] sm:$0xff] %v9727_v52  ;;  %10633 = vst [vmem:[#allocation29_spill] sm:$0xff] %v9733_v30 }
 0x33c   :  { %5919 = vmatprep.mubr.msk.f32.mxu1 %vm257_vm0, %v9475_v9  ;;  %6175 = vmatprep.mubr.msk.f32.mxu0 %vm257_vm0, %v9475_v9 }
 0x33d   :  { %6527 = vmatprep.subr.bf16.mxu0 %v6526_v24 }
 0x33f   :  { %5920 = vmatmul.mubr.msk.f32.gmra.mrb[62].mxu1 %vm257_vm0, %v9481_v23  ;;  %6176 = vmatmul.mubr.msk.f32.gmra.mrb[152].mxu0 %vm257_vm0, %v9481_v23 }
 0x340   :  { %5922 = vmatprep.mubr.msk.f32.mxu1 %vm257_vm0, %v9487_v7  ;;  %6178 = vmatprep.mubr.msk.f32.mxu0 %vm257_vm0, %v9487_v7 }
 0x343   :  { %5923 = vmatmul.mubr.msk.f32.gmra.mrb[54].mxu1 %vm257_vm0, %v9493_v32  ;;  %6179 = vmatmul.mubr.msk.f32.gmra.mrb[154].mxu0 %vm257_vm0, %v9493_v32 }
 0x344   :  { %5925 = vmatprep.mubr.msk.f32.mxu1 %vm257_vm0, %v9499_v57  ;;  %6181 = vmatprep.mubr.msk.f32.mxu0 %vm257_vm0, %v9499_v57 }
 0x347   :  { %5926 = vmatmul.mubr.msk.f32.gmra.mrb[56].mxu1 %vm257_vm0, %v9505_v53  ;;  %6182 = vmatmul.mubr.msk.f32.gmra.mrb[156].mxu0 %vm257_vm0, %v9505_v53 }
 0x348   :  { %5928 = vmatprep.mubr.msk.f32.mxu1 %vm257_vm0, %v9511_v54  ;;  %6184 = vmatprep.mubr.msk.f32.mxu0 %vm257_vm0, %v9511_v54 }
 0x34b   :  { %5929 = vmatmul.mubr.msk.f32.gmra.mrb[58].mxu1 %vm257_vm0, %v9517_v17  ;;  %6185 = vmatmul.mubr.msk.f32.gmra.mrb[158].mxu0 %vm257_vm0, %v9517_v17 }
 0x34c   :  { %5931 = vmatprep.mubr.msk.f32.mxu1 %vm257_vm0, %v9523_v0  ;;  %6187 = vmatprep.mubr.msk.f32.mxu0 %vm257_vm0, %v9523_v0 }
 0x34f   :  { %5932 = vmatmul.mubr.msk.f32.gmra.mrb[64].mxu1 %vm257_vm0, %v9529_v27  ;;  %6188 = vmatmul.mubr.msk.f32.gmra.mrb[160].mxu0 %vm257_vm0, %v9529_v27 }
 0x350   :  { %5942 = vmatprep.mubr.msk.f32.mxu1 %vm257_vm0, %v9541_v44  ;;  %6198 = vmatprep.mubr.msk.f32.mxu0 %vm257_vm0, %v9541_v44 }
 0x353   :  { %5943 = vmatmul.mubr.msk.f32.vlgmr.msra.gmra.mrb[46].mxu1 %vm257_vm0, %v9547_v6  ;;  %6199 = vmatmul.mubr.msk.f32.vlgmr.msra.gmra.mrb[146].mxu0 %vm257_vm0, %v9547_v6 }
 0x354   :  { %5945 = vmatprep.mubr.msk.f32.mxu1 %vm257_vm0, %v9559_v4  ;;  %6465 = vmatpush3.bf16.msra.mxu1 %v6462_v47  ;;  %v9661_v47 = vld [vmem:[#allocation2 + $0x188] sm:$0xff] }
 0x355   :  { %6201 = vmatprep.mubr.msk.f32.mxu0 %vm257_vm0, %v9559_v4  ;;  %6467 = vmatprep.subr.bf16.mxu1 %v6466_v62 }
 0x356   :  { %6529 = vmatpush3.bf16.msra.mxu0 %v6526_v24  ;;  %v5139_v24 = vld [vmem:[%s10386_s5 + $0x48] sm:$0xff] }
 0x357   :  { %5946 = vmatmul.mubr.msk.f32.gmra.mrb[48].mxu1 %vm257_vm0, %v9571_v51  ;;  %6202 = vmatmul.mubr.msk.f32.gmra.mrb[148].mxu0 %vm257_vm0, %v9571_v51  ;;  %v6478_v37 = vpack.c.bf16 %v5139_v24, %v5138_v40  ;;  %v9745_v40 = vld [vmem:[#allocation2 + $0x1f0] sm:$0xff]  ;;  %v9751_v24 = vld [vmem:[#allocation2 + $0x1f8] sm:$0xff] }
 0x358   :  { %5948 = vmatprep.mubr.msk.f32.mxu1 %vm257_vm0, %v9577_v60  ;;  %6204 = vmatprep.mubr.msk.f32.mxu0 %vm257_vm0, %v9577_v60  ;;  %10635 = vst [vmem:[#allocation4_spill] sm:$0xff] %v9745_v40  ;;  %10636 = vst [vmem:[#allocation31_spill] sm:$0xff] %v9751_v24 }
 0x359   :  { %6469 = vmatpush3.bf16.msra.mxu1 %v6466_v62  ;;  %6531 = vmatprep.subr.bf16.mxu0 %v6530_v34  ;;  %v9685_v62 = vld [vmem:[#allocation2 + $0x1a0] sm:$0xff] }
 0x35a   :  { %6533 = vmatpush3.bf16.msra.mxu0 %v6530_v34  ;;  %6471 = vmatprep.subr.bf16.mxu1 %v6470_v16  ;;  %v9715_v34 = vld [vmem:[#allocation2 + $0x1c8] sm:$0xff] }
 0x35b   :  { %5949 = vmatmul.mubr.msk.f32.gmra.mrb[50].mxu1 %vm257_vm0, %v9583_v18  ;;  %6205 = vmatmul.mubr.msk.f32.gmra.mrb[150].mxu0 %vm257_vm0, %v9583_v18  ;;  %10630 = vst [vmem:[#allocation27_spill] sm:$0xff] %v9715_v34 }
 0x35c   :  { %5951 = vmatprep.mubr.msk.f32.mxu1 %vm257_vm0, %v9589_v15  ;;  %6207 = vmatprep.mubr.msk.f32.mxu0 %vm257_vm0, %v9589_v15 }
 0x35f   :  { %5952 = vmatmul.mubr.msk.f32.gmra.mrb[66].mxu1 %vm257_vm0, %v9595_v33  ;;  %6208 = vmatmul.mubr.msk.f32.gmra.mrb[152].mxu0 %vm257_vm0, %v9595_v33 }
 0x360   :  { %5954 = vmatprep.mubr.msk.f32.mxu1 %vm257_vm0, %v9601_v1  ;;  %6210 = vmatprep.mubr.msk.f32.mxu0 %vm257_vm0, %v9601_v1 }
 0x363   :  { %5955 = vmatmul.mubr.msk.f32.gmra.mrb[54].mxu1 %vm257_vm0, %v9607_v14  ;;  %6211 = vmatmul.mubr.msk.f32.gmra.mrb[154].mxu0 %vm257_vm0, %v9607_v14 }
 0x364   :  { %5957 = vmatprep.mubr.msk.f32.mxu1 %vm257_vm0, %v9613_v41  ;;  %6213 = vmatprep.mubr.msk.f32.mxu0 %vm257_vm0, %v9613_v41 }
 0x367   :  { %5958 = vmatmul.mubr.msk.f32.gmra.mrb[56].mxu1 %vm257_vm0, %v9619_v31  ;;  %6214 = vmatmul.mubr.msk.f32.gmra.mrb[156].mxu0 %vm257_vm0, %v9619_v31 }
 0x368   :  { %5960 = vmatprep.mubr.msk.f32.mxu1 %vm257_vm0, %v9625_v56  ;;  %6216 = vmatprep.mubr.msk.f32.mxu0 %vm257_vm0, %v9625_v56 }
 0x36b   :  { %5961 = vmatmul.mubr.msk.f32.gmra.mrb[58].mxu1 %vm257_vm0, %v9631_v61  ;;  %6217 = vmatmul.mubr.msk.f32.gmra.mrb[158].mxu0 %vm257_vm0, %v9631_v61 }
 0x36c   :  { %5963 = vmatprep.mubr.msk.f32.mxu1 %vm257_vm0, %v9637_v49  ;;  %6219 = vmatprep.mubr.msk.f32.mxu0 %vm257_vm0, %v9637_v49 }
 0x36f   :  { %5964 = vmatmul.mubr.msk.f32.gmra.mrb[68].mxu1 %vm257_vm0, %v9643_v50  ;;  %6220 = vmatmul.mubr.msk.f32.gmra.mrb[160].mxu0 %vm257_vm0, %v9643_v50 }
 0x370   :  { %5974 = vmatprep.mubr.msk.f32.mxu1 %vm257_vm0, %v9655_v25  ;;  %6230 = vmatprep.mubr.msk.f32.mxu0 %vm257_vm0, %v9655_v25 }
 0x373   :  { %5975 = vmatmul.mubr.msk.f32.vlgmr.msra.gmra.mrb[46].mxu1 %vm257_vm0, %v9661_v47  ;;  %6231 = vmatmul.mubr.msk.f32.vlgmr.msra.gmra.mrb[146].mxu0 %vm257_vm0, %v9661_v47 }
 0x374   :  { %5977 = vmatprep.mubr.msk.f32.mxu1 %vm257_vm0, %v9667_v46  ;;  %6473 = vmatpush3.bf16.msra.mxu1 %v6470_v16  ;;  %v9721_v16 = vld [vmem:[#allocation2 + $0x1d0] sm:$0xff] }
 0x375   :  { %6233 = vmatprep.mubr.msk.f32.mxu0 %vm257_vm0, %v9667_v46  ;;  %6475 = vmatprep.subr.bf16.mxu1 %v6474_v39  ;;  %10631 = vst [vmem:[#allocation26_spill] sm:$0xff] %v9721_v16 }
 0x377   :  { %5978 = vmatmul.mubr.msk.f32.gmra.mrb[48].mxu1 %vm257_vm0, %v9679_v42  ;;  %6234 = vmatmul.mubr.msk.f32.gmra.mrb[148].mxu0 %vm257_vm0, %v9679_v42 }
 0x378   :  { %5980 = vmatprep.mubr.msk.f32.mxu1 %vm257_vm0, %v9685_v62  ;;  %6236 = vmatprep.mubr.msk.f32.mxu0 %vm257_vm0, %v9685_v62 }
 0x379   :  { %6477 = vmatpush3.bf16.msra.mxu1 %v6474_v39  ;;  %v9739_v39 = vld [vmem:[#allocation2 + $0x1e8] sm:$0xff] }
 0x37a   :  { %6479 = vmatprep.subr.bf16.mxu1 %v6478_v37  ;;  %10634 = vst [vmem:[#allocation30_spill] sm:$0xff] %v9739_v39 }
 0x37b   :  { %5981 = vmatmul.mubr.msk.f32.gmra.mrb[50].mxu1 %vm257_vm0, %v9691_v28  ;;  %6237 = vmatmul.mubr.msk.f32.gmra.mrb[150].mxu0 %vm257_vm0, %v9691_v28 }
 0x37c   :  { %5983 = vmatprep.mubr.msk.f32.mxu1 %vm257_vm0, %v9697_v63  ;;  %6239 = vmatprep.mubr.msk.f32.mxu0 %vm257_vm0, %v9697_v63 }
 0x37f   :  { %5984 = vmatmul.mubr.msk.f32.gmra.mrb[70].mxu1 %vm257_vm0, %v9703_v3  ;;  %6240 = vmatmul.mubr.msk.f32.gmra.mrb[152].mxu0 %vm257_vm0, %v9703_v3 }
 0x380   :  { %5986 = vmatprep.mubr.msk.f32.mxu1 %vm257_vm0, %v9709_v26  ;;  %6242 = vmatprep.mubr.msk.f32.mxu0 %vm257_vm0, %v9709_v26 }
 0x383   :  { %5987 = vmatmul.mubr.msk.f32.gmra.mrb[54].mxu1 %vm257_vm0, %v9715_v34  ;;  %6243 = vmatmul.mubr.msk.f32.gmra.mrb[154].mxu0 %vm257_vm0, %v9715_v34  ;;  %v5179_v34 = vld [vmem:[%s10386_s5 + $0xc8] sm:$0xff] }
 0x384   :  { %5989 = vmatprep.mubr.msk.f32.mxu1 %vm257_vm0, %v9721_v16  ;;  %6245 = vmatprep.mubr.msk.f32.mxu0 %vm257_vm0, %v9721_v16  ;;  %v5178_v16 = vld [vmem:[%s10386_s5 + $0xc0] sm:$0xff] }
 0x387   :  { %5990 = vmatmul.mubr.msk.f32.gmra.mrb[56].mxu1 %vm257_vm0, %v9727_v52  ;;  %6246 = vmatmul.mubr.msk.f32.gmra.mrb[156].mxu0 %vm257_vm0, %v9727_v52  ;;  %v5141_v52 = vld [vmem:[%s10386_s5 + $0x58] sm:$0xff] }
 0x388   :  { %5992 = vmatprep.mubr.msk.f32.mxu1 %vm257_vm0, %v9733_v30  ;;  %6248 = vmatprep.mubr.msk.f32.mxu0 %vm257_vm0, %v9733_v30  ;;  %v5140_v30 = vld [vmem:[%s10386_s5 + $0x50] sm:$0xff] }
 0x38b   :  { %5993 = vmatmul.mubr.msk.f32.gmra.mrb[58].mxu1 %vm257_vm0, %v9739_v39  ;;  %6249 = vmatmul.mubr.msk.f32.gmra.mrb[158].mxu0 %vm257_vm0, %v9739_v39  ;;  %v9763_v39 = vld [vmem:[#allocation2 + $0x80] sm:$0xff] }
 0x38c   :  { %5995 = vmatprep.mubr.msk.f32.mxu1 %vm257_vm0, %v9745_v40  ;;  %6251 = vmatprep.mubr.msk.f32.mxu0 %vm257_vm0, %v9745_v40  ;;  %v6482_v40 = vpack.c.bf16 %v5141_v52, %v5140_v30  ;;  %v5198_v52 = vld [vmem:[%s10386_s5 + $0xe0] sm:$0xff]  ;;  %v5199_v30 = vld [vmem:[%s10386_s5 + $0xe8] sm:$0xff] }
 0x38f   :  { %5996 = vmatmul.mubr.msk.f32.gmra.mrb[72].mxu1 %vm257_vm0, %v9751_v24  ;;  %6252 = vmatmul.mubr.msk.f32.gmra.mrb[160].mxu0 %vm257_vm0, %v9751_v24  ;;  %v6486_v24 = vpack.c.bf16 %v5179_v34, %v5178_v16  ;;  %v5181_v34 = vld [vmem:[%s10386_s5 + $0xd8] sm:$0xff] }
 0x390   :  { %6006 = vmatprep.mubr.msk.f32.mxu1 %vm257_vm0, %v9763_v39 }
 0x393   :  { %6007 = vmatmul.mubr.msk.f32.vlgmr.msra.gmra.mrb[74].mxu1 %vm257_vm0, %v9277_v10 }
 0x394   :  { %6009 = vmatprep.mubr.msk.f32.mxu1 %vm257_vm0, %v9294_v19  ;;  %6481 = vmatpush3.bf16.msra.mxu1 %v6478_v37  ;;  %v5180_v37 = vld [vmem:[%s10386_s5 + $0xd0] sm:$0xff] }
 0x395   :  { %6483 = vmatprep.subr.bf16.mxu1 %v6482_v40  ;;  %v6490_v16 = vpack.c.bf16 %v5181_v34, %v5180_v37  ;;  %v5201_v37 = vld [vmem:[%s10386_s5 + $0xf8] sm:$0xff] }
 0x397   :  { %6010 = vmatmul.mubr.msk.f32.gmra.mrb[76].mxu1 %vm257_vm0, %v9323_v8 }
 0x398   :  { %6012 = vmatprep.mubr.msk.f32.mxu1 %vm257_vm0, %v9340_v38  ;;  %6485 = vmatpush3.bf16.msra.mxu1 %v6482_v40  ;;  %v6494_v40 = vpack.c.bf16 %v5199_v30, %v5198_v52  ;;  %v5303_v52 = vld [vmem:[%s10386_s5 + $0x168] sm:$0xff] }
 0x399   :  { %6487 = vmatprep.subr.bf16.mxu1 %v6486_v24 }
 0x39b   :  { %6013 = vmatmul.mubr.msk.f32.gmra.mrb[78].mxu1 %vm257_vm0, %v9347_v29 }
 0x39c   :  { %6015 = vmatprep.mubr.msk.f32.mxu1 %vm257_vm0, %v9354_v13 }
 0x39f   :  { %6016 = vmatmul.mubr.msk.f32.gmra.mrb[80].mxu1 %vm257_vm0, %v9360_v48 }
 0x3a0   :  { %6018 = vmatprep.mubr.msk.f32.mxu1 %vm257_vm0, %v9366_v58 }
 0x3a3   :  { %6019 = vmatmul.mubr.msk.f32.gmra.mrb[82].mxu1 %vm257_vm0, %v9372_v2 }
 0x3a4   :  { %6021 = vmatprep.mubr.msk.f32.mxu1 %vm257_vm0, %v9378_v20 }
 0x3a7   :  { %6022 = vmatmul.mubr.msk.f32.gmra.mrb[84].mxu1 %vm257_vm0, %v9384_v35 }
 0x3a8   :  { %6024 = vmatprep.mubr.msk.f32.mxu1 %vm257_vm0, %v9390_v55 }
 0x3ab   :  { %6025 = vmatmul.mubr.msk.f32.gmra.mrb[86].mxu1 %vm257_vm0, %v9396_v5 }
 0x3ac   :  { %6027 = vmatprep.mubr.msk.f32.mxu1 %vm257_vm0, %v9402_v21 }
 0x3af   :  { %6028 = vmatmul.mubr.msk.f32.gmra.mrb[88].mxu1 %vm257_vm0, %v9408_v45 }
 0x3b0   :  { %6038 = vmatprep.mubr.msk.f32.mxu1 %vm257_vm0, %v9420_v59 }
 0x3b3   :  { %6039 = vmatmul.mubr.msk.f32.vlgmr.msra.gmra.mrb[74].mxu1 %vm257_vm0, %v9426_v36 }
 0x3b4   :  { %6041 = vmatprep.mubr.msk.f32.mxu1 %vm257_vm0, %v9438_v11  ;;  %6489 = vmatpush3.bf16.msra.mxu1 %v6486_v24  ;;  %v5200_v24 = vld [vmem:[%s10386_s5 + $0xf0] sm:$0xff] }
 0x3b5   :  { %6491 = vmatprep.subr.bf16.mxu1 %v6490_v16  ;;  %v6498_v34 = vpack.c.bf16 %v5201_v37, %v5200_v24  ;;  %v5305_v24 = vld [vmem:[%s10386_s5 + $0x178] sm:$0xff] }
 0x3b7   :  { %6042 = vmatmul.mubr.msk.f32.gmra.mrb[76].mxu1 %vm257_vm0, %v9451_v22 }
 0x3b8   :  { %6044 = vmatprep.mubr.msk.f32.mxu1 %vm257_vm0, %v9463_v12  ;;  %6493 = vmatpush3.bf16.msra.mxu1 %v6490_v16  ;;  %v5302_v16 = vld [vmem:[%s10386_s5 + $0x160] sm:$0xff] }
 0x3b9   :  { %6495 = vmatprep.subr.bf16.mxu1 %v6494_v40  ;;  %v6534_v30 = vpack.c.bf16 %v5303_v52, %v5302_v16  ;;  %v5298_v16 = vld [vmem:[%s10386_s5 + $0x140] sm:$0xff]  ;;  %v5299_v52 = vld [vmem:[%s10386_s5 + $0x148] sm:$0xff] }
 0x3bb   :  { %6045 = vmatmul.mubr.msk.f32.gmra.mrb[78].mxu1 %vm257_vm0, %v9469_v43 }
 0x3bc   :  { %6047 = vmatprep.mubr.msk.f32.mxu1 %vm257_vm0, %v9475_v9 }
 0x3bf   :  { %6048 = vmatmul.mubr.msk.f32.gmra.mrb[80].mxu1 %vm257_vm0, %v9481_v23 }
 0x3c0   :  { %6050 = vmatprep.mubr.msk.f32.mxu1 %vm257_vm0, %v9487_v7 }
 0x3c3   :  { %6051 = vmatmul.mubr.msk.f32.gmra.mrb[82].mxu1 %vm257_vm0, %v9493_v32 }
 0x3c4   :  { %6053 = vmatprep.mubr.msk.f32.mxu1 %vm257_vm0, %v9499_v57 }
 0x3c7   :  { %6054 = vmatmul.mubr.msk.f32.gmra.mrb[84].mxu1 %vm257_vm0, %v9505_v53 }
 0x3c8   :  { %6056 = vmatprep.mubr.msk.f32.mxu1 %vm257_vm0, %v9511_v54 }
 0x3cb   :  { %6057 = vmatmul.mubr.msk.f32.gmra.mrb[86].mxu1 %vm257_vm0, %v9517_v17 }
 0x3cc   :  { %6059 = vmatprep.mubr.msk.f32.mxu1 %vm257_vm0, %v9523_v0 }
 0x3cf   :  { %6060 = vmatmul.mubr.msk.f32.gmra.mrb[88].mxu1 %vm257_vm0, %v9529_v27 }
 0x3d0   :  { %6070 = vmatprep.mubr.msk.f32.mxu1 %vm257_vm0, %v9541_v44 }
 0x3d3   :  { %6071 = vmatmul.mubr.msk.f32.vlgmr.msra.gmra.mrb[74].mxu1 %vm257_vm0, %v9547_v6 }
 0x3d4   :  { %6073 = vmatprep.mubr.msk.f32.mxu1 %vm257_vm0, %v9559_v4  ;;  %6497 = vmatpush3.bf16.msra.mxu1 %v6494_v40  ;;  %v5304_v40 = vld [vmem:[%s10386_s5 + $0x170] sm:$0xff] }
 0x3d5   :  { %6499 = vmatprep.subr.bf16.mxu1 %v6498_v34  ;;  %v6538_v37 = vpack.c.bf16 %v5305_v24, %v5304_v40  ;;  %v10637_v24 = vld [vmem:[#allocation27_spill] sm:$0xff] }
 0x3d7   :  { %6074 = vmatmul.mubr.msk.f32.gmra.mrb[76].mxu1 %vm257_vm0, %v9571_v51 }
 0x3d8   :  { %6076 = vmatprep.mubr.msk.f32.mxu1 %vm257_vm0, %v9577_v60  ;;  %6501 = vmatpush3.bf16.msra.mxu1 %v6498_v34 }
 0x3d9   :  { %6535 = vmatprep.subr.bf16.mxu1 %v6534_v30 }
 0x3db   :  { %6077 = vmatmul.mubr.msk.f32.gmra.mrb[78].mxu1 %vm257_vm0, %v9583_v18 }
 0x3dc   :  { %6079 = vmatprep.mubr.msk.f32.mxu1 %vm257_vm0, %v9589_v15 }
 0x3df   :  { %6080 = vmatmul.mubr.msk.f32.gmra.mrb[80].mxu1 %vm257_vm0, %v9595_v33 }
 0x3e0   :  { %6082 = vmatprep.mubr.msk.f32.mxu1 %vm257_vm0, %v9601_v1 }
 0x3e3   :  { %6083 = vmatmul.mubr.msk.f32.gmra.mrb[82].mxu1 %vm257_vm0, %v9607_v14 }
 0x3e4   :  { %6085 = vmatprep.mubr.msk.f32.mxu1 %vm257_vm0, %v9613_v41 }
 0x3e7   :  { %6086 = vmatmul.mubr.msk.f32.gmra.mrb[84].mxu1 %vm257_vm0, %v9619_v31 }
 0x3e8   :  { %6088 = vmatprep.mubr.msk.f32.mxu1 %vm257_vm0, %v9625_v56 }
 0x3eb   :  { %6089 = vmatmul.mubr.msk.f32.gmra.mrb[86].mxu1 %vm257_vm0, %v9631_v61 }
 0x3ec   :  { %6091 = vmatprep.mubr.msk.f32.mxu1 %vm257_vm0, %v9637_v49 }
 0x3ef   :  { %6092 = vmatmul.mubr.msk.f32.gmra.mrb[88].mxu1 %vm257_vm0, %v9643_v50 }
 0x3f0   :  { %6102 = vmatprep.mubr.msk.f32.mxu1 %vm257_vm0, %v9655_v25  ;;  %v6542_v25 = vpack.c.bf16 %v5299_v52, %v5298_v16  ;;  %v10640_v16 = vld [vmem:[#allocation29_spill] sm:$0xff]  ;;  %v10641_v52 = vld [vmem:[#allocation30_spill] sm:$0xff] }
 0x3f2   :  { %v5889_v34 = vpop.f32.mrb[52].mxu1 }
 0x3f3   :  { %v2174_v49 = vpop.f32.mrb[53].mxu1  ;;  %6103 = vmatmul.mubr.msk.f32.vlgmr.msra.gmra.mrb[74].mxu1 %vm257_vm0, %v9661_v47  ;;  %v10638_v34 = vld [vmem:[#allocation26_spill] sm:$0xff] }
 0x3f4   :  { %6105 = vmatprep.mubr.msk.f32.mxu1 %vm257_vm0, %v9667_v46  ;;  %6537 = vmatpush3.bf16.msra.mxu1 %v6534_v30 }
 0x3f5   :  { %6539 = vmatprep.subr.bf16.mxu1 %v6538_v37 }
 0x3f7   :  { %6106 = vmatmul.mubr.msk.f32.gmra.mrb[76].mxu1 %vm257_vm0, %v9679_v42 }
 0x3f8   :  { %6108 = vmatprep.mubr.msk.f32.mxu1 %vm257_vm0, %v9685_v62  ;;  %6541 = vmatpush3.bf16.msra.mxu1 %v6538_v37  ;;  %v10639_v37 = vld [vmem:[#allocation28_spill] sm:$0xff] }
 0x3f9   :  { %6543 = vmatprep.subr.bf16.mxu1 %v6542_v25 }
 0x3fb   :  { %6109 = vmatmul.mubr.msk.f32.gmra.mrb[78].mxu1 %vm257_vm0, %v9691_v28 }
 0x3fc   :  { %6111 = vmatprep.mubr.msk.f32.mxu1 %vm257_vm0, %v9697_v63 }
 0x3ff   :  { %6112 = vmatmul.mubr.msk.f32.gmra.mrb[80].mxu1 %vm257_vm0, %v9703_v3  ;;  %v10642_v3 = vld [vmem:[#allocation4_spill] sm:$0xff] }
 0x400   :  { %6114 = vmatprep.mubr.msk.f32.mxu1 %vm257_vm0, %v9709_v26 }
 0x402   :  { %v5901_v30 = vpop.f32.mrb[60].mxu1 }
 0x403   :  { %v2213_v40 = vpop.f32.mrb[61].mxu1  ;;  %6115 = vmatmul.mubr.msk.f32.gmra.mrb[82].mxu1 %vm257_vm0, %v10637_v24  ;;  %v5300_v30 = vld [vmem:[%s10386_s5 + $0x150] sm:$0xff]  ;;  %v10643_v24 = vld [vmem:[#allocation31_spill] sm:$0xff] }
 0x404   :  { %6117 = vmatprep.mubr.msk.f32.mxu1 %vm257_vm0, %v10638_v34  ;;  %v5301_v34 = vld [vmem:[%s10386_s5 + $0x158] sm:$0xff] }
 0x407   :  { %6118 = vmatmul.mubr.msk.f32.gmra.mrb[84].mxu1 %vm257_vm0, %v10639_v37 }
 0x408   :  { %6120 = vmatprep.mubr.msk.f32.mxu1 %vm257_vm0, %v10640_v16  ;;  %v6546_v16 = vpack.c.bf16 %v5301_v34, %v5300_v30 }
 0x40b   :  { %6121 = vmatmul.mubr.msk.f32.gmra.mrb[86].mxu1 %vm257_vm0, %v10641_v52  ;;  %v5339_v52 = vld [vmem:[%s10386_s5 + $0x1c8] sm:$0xff] }
 0x40c   :  { %6123 = vmatprep.mubr.msk.f32.mxu1 %vm257_vm0, %v10642_v3  ;;  %v5338_v3 = vld [vmem:[%s10386_s5 + $0x1c0] sm:$0xff] }
 0x40f   :  { %6124 = vmatmul.mubr.msk.f32.gmra.mrb[88].mxu1 %vm257_vm0, %v10643_v24 }
 0x410   :  { %6262 = vmatprep.mubr.msk.f32.mxu1 %vm257_vm0, %v9763_v39  ;;  %v6550_v39 = vpack.c.bf16 %v5339_v52, %v5338_v3 }
 0x412   :  { %v5921_v37 = vpop.f32.mrb[62].mxu1 }
 0x413   :  { %v2365_v26 = vpop.f32.mrb[63].mxu1  ;;  %6263 = vmatmul.mubr.msk.f32.vlgmr.msra.gmra.mrb[90].mxu1 %vm257_vm0, %v9277_v10 }
 0x414   :  { %v2366_v63 = vadd.f32 %v2365_v26, %v2174_v49  ;;  %6265 = vmatprep.mubr.msk.f32.mxu1 %vm257_vm0, %v9294_v19  ;;  %6545 = vmatpush3.bf16.msra.mxu1 %v6542_v25 }
 0x415   :  { %6547 = vmatprep.subr.bf16.mxu1 %v6546_v16 }
 0x417   :  { %6266 = vmatmul.mubr.msk.f32.gmra.mrb[92].mxu1 %vm257_vm0, %v9323_v8 }
 0x418   :  { %6268 = vmatprep.mubr.msk.f32.mxu1 %vm257_vm0, %v9340_v38  ;;  %6549 = vmatpush3.bf16.msra.mxu1 %v6546_v16  ;;  %v5340_v38 = vld [vmem:[%s10386_s5 + $0x1d0] sm:$0xff] }
 0x419   :  { %6551 = vmatprep.subr.bf16.mxu1 %v6550_v39 }
 0x41b   :  { %6269 = vmatmul.mubr.msk.f32.gmra.mrb[94].mxu1 %vm257_vm0, %v9347_v29  ;;  %v5341_v29 = vld [vmem:[%s10386_s5 + $0x1d8] sm:$0xff] }
 0x41c   :  { %6271 = vmatprep.mubr.msk.f32.mxu1 %vm257_vm0, %v9354_v13  ;;  %v6554_v13 = vpack.c.bf16 %v5341_v29, %v5340_v38 }
 0x41f   :  { %6272 = vmatmul.mubr.msk.f32.gmra.mrb[96].mxu1 %vm257_vm0, %v9360_v48 }
 0x420   :  { %6274 = vmatprep.mubr.msk.f32.mxu1 %vm257_vm0, %v9366_v58  ;;  %v5358_v58 = vld [vmem:[%s10386_s5 + $0x1e0] sm:$0xff] }
 0x422   :  { %v5933_v10 = vpop.f32.mrb[64].mxu1 }
 0x423   :  { %v2404_v19 = vpop.f32.mrb[65].mxu1  ;;  %6275 = vmatmul.mubr.msk.f32.gmra.mrb[98].mxu1 %vm257_vm0, %v9372_v2  ;;  %v5359_v2 = vld [vmem:[%s10386_s5 + $0x1e8] sm:$0xff] }
 0x424   :  { %v2405_v8 = vadd.f32 %v2404_v19, %v2213_v40  ;;  %6277 = vmatprep.mubr.msk.f32.mxu1 %vm257_vm0, %v9378_v20 }
 0x427   :  { %6278 = vmatmul.mubr.msk.f32.gmra.mrb[100].mxu1 %vm257_vm0, %v9384_v35 }
 0x428   :  { %6280 = vmatprep.mubr.msk.f32.mxu1 %vm257_vm0, %v9390_v55  ;;  %v6558_v55 = vpack.c.bf16 %v5359_v2, %v5358_v58 }
 0x42b   :  { %6281 = vmatmul.mubr.msk.f32.gmra.mrb[102].mxu1 %vm257_vm0, %v9396_v5 }
 0x42c   :  { %6283 = vmatprep.mubr.msk.f32.mxu1 %vm257_vm0, %v9402_v21 }
 0x42f   :  { %6284 = vmatmul.mubr.msk.f32.gmra.mrb[104].mxu1 %vm257_vm0, %v9408_v45 }
 0x430   :  { %6294 = vmatprep.mubr.msk.f32.mxu1 %vm257_vm0, %v9420_v59 }
 0x432   :  { %v5953_v48 = vpop.f32.mrb[66].mxu1 }
 0x433   :  { %v2561_v20 = vpop.f32.mrb[67].mxu1  ;;  %6295 = vmatmul.mubr.msk.f32.vlgmr.msra.gmra.mrb[90].mxu1 %vm257_vm0, %v9426_v36 }
 0x434   :  { %v2614_v35 = vadd.f32 %v2561_v20, %v2366_v63  ;;  %6297 = vmatprep.mubr.msk.f32.mxu1 %vm257_vm0, %v9438_v11  ;;  %6553 = vmatpush3.bf16.msra.mxu1 %v6550_v39 }
 0x435   :  { %6555 = vmatprep.subr.bf16.mxu1 %v6554_v13 }
 0x437   :  { %6298 = vmatmul.mubr.msk.f32.gmra.mrb[92].mxu1 %vm257_vm0, %v9451_v22 }
 0x438   :  { %6300 = vmatprep.mubr.msk.f32.mxu1 %vm257_vm0, %v9463_v12  ;;  %6557 = vmatpush3.bf16.msra.mxu1 %v6554_v13 }
 0x439   :  { %6559 = vmatprep.subr.bf16.mxu1 %v6558_v55 }
 0x43b   :  { %6301 = vmatmul.mubr.msk.f32.gmra.mrb[94].mxu1 %vm257_vm0, %v9469_v43 }
 0x43c   :  { %6303 = vmatprep.mubr.msk.f32.mxu1 %vm257_vm0, %v9475_v9 }
 0x43f   :  { %6304 = vmatmul.mubr.msk.f32.gmra.mrb[96].mxu1 %vm257_vm0, %v9481_v23 }
 0x440   :  { %6306 = vmatprep.mubr.msk.f32.mxu1 %vm257_vm0, %v9487_v7 }
 0x442   :  { %v5965_v5 = vpop.f32.mrb[68].mxu1 }
 0x443   :  { %v2600_v21 = vpop.f32.mrb[69].mxu1  ;;  %6307 = vmatmul.mubr.msk.f32.gmra.mrb[98].mxu1 %vm257_vm0, %v9493_v32 }
 0x444   :  { %v2621_v45 = vadd.f32 %v2600_v21, %v2405_v8  ;;  %6309 = vmatprep.mubr.msk.f32.mxu1 %vm257_vm0, %v9499_v57  ;;  %v5360_v57 = vld [vmem:[%s10386_s5 + $0x1f0] sm:$0xff] }
 0x446   :  { %v10013_v59 = vpop.f32.mrb[46].mxu1  ;;  %v10015_v36 = vpop.f32.mrb[146].mxu0 }
 0x447   :  { %v10017_v11 = vpop.f32.mrb[47].mxu1  ;;  %v3981_v22 = vpop.f32.mrb[147].mxu0  ;;  %6310 = vmatmul.mubr.msk.f32.gmra.mrb[100].mxu1 %vm257_vm0, %v9505_v53  ;;  %v5361_v53 = vld [vmem:[%s10386_s5 + $0x1f8] sm:$0xff] }
 0x448   :  { %6312 = vmatprep.mubr.msk.f32.mxu1 %vm257_vm0, %v9511_v54 }
 0x44a   :  { %v10023_v12 = vpop.f32.mrb[48].mxu1  ;;  %v10025_v43 = vpop.f32.mrb[148].mxu0 }
 0x44b   :  { %v10027_v9 = vpop.f32.mrb[49].mxu1  ;;  %v10029_v23 = vpop.f32.mrb[149].mxu0  ;;  %6313 = vmatmul.mubr.msk.f32.gmra.mrb[102].mxu1 %vm257_vm0, %v9517_v17  ;;  %v6562_v17 = vpack.c.bf16 %v5361_v53, %v5360_v57 }
 0x44c   :  { %6315 = vmatprep.mubr.msk.f32.mxu1 %vm257_vm0, %v9523_v0 }
 0x44e   :  { %v10035_v7 = vpop.f32.mrb[50].mxu1  ;;  %v10037_v32 = vpop.f32.mrb[150].mxu0 }
 0x44f   :  { %v10045_v54 = vpop.f32.mrb[51].mxu1  ;;  %v10047_v49 = vpop.f32.mrb[151].mxu0  ;;  %6316 = vmatmul.mubr.msk.f32.gmra.mrb[104].mxu1 %vm257_vm0, %v9529_v27 }
 0x450   :  { %6326 = vmatprep.mubr.msk.f32.mxu1 %vm257_vm0, %v9541_v44 }
 0x452   :  { %v5985_v0 = vpop.f32.mrb[70].mxu1  ;;  %v10053_v25 = vpop.f32.mrb[152].mxu0 }
 0x453   :  { %v2771_v63 = vpop.f32.mrb[71].mxu1  ;;  %v10055_v3 = vpop.f32.mrb[153].mxu0  ;;  %6327 = vmatmul.mubr.msk.f32.vlgmr.msra.gmra.mrb[90].mxu1 %vm257_vm0, %v9547_v6 }
 0x454   :  { %v10059_v26 = vadd.f32 %v2771_v63, %v2614_v35  ;;  %6329 = vmatprep.mubr.msk.f32.mxu1 %vm257_vm0, %v9559_v4  ;;  %6561 = vmatpush3.bf16.msra.mxu1 %v6558_v55 }
 0x455   :  { %6563 = vmatprep.subr.bf16.mxu1 %v6562_v17 }
 0x456   :  { %v10063_v27 = vpop.f32.mrb[54].mxu1  ;;  %v10065_v44 = vpop.f32.mrb[154].mxu0 }
 0x457   :  { %v10067_v40 = vpop.f32.mrb[55].mxu1  ;;  %v4020_v34 = vpop.f32.mrb[155].mxu0  ;;  %6330 = vmatmul.mubr.msk.f32.gmra.mrb[92].mxu1 %vm257_vm0, %v9571_v51 }
 0x458   :  { %6332 = vmatprep.mubr.msk.f32.mxu1 %vm257_vm0, %v9577_v60  ;;  %6565 = vmatpush3.bf16.msra.mxu1 %v6562_v17 }
 0x45a   :  { %v10073_v6 = vpop.f32.mrb[56].mxu1  ;;  %v10075_v37 = vpop.f32.mrb[156].mxu0 }
 0x45b   :  { %v10077_v4 = vpop.f32.mrb[57].mxu1  ;;  %v10079_v16 = vpop.f32.mrb[157].mxu0  ;;  %6333 = vmatmul.mubr.msk.f32.gmra.mrb[94].mxu1 %vm257_vm0, %v9583_v18 }
 0x45c   :  { %6335 = vmatprep.mubr.msk.f32.mxu1 %vm257_vm0, %v9589_v15 }
 0x45e   :  { %v10085_v52 = vpop.f32.mrb[58].mxu1  ;;  %v10087_v51 = vpop.f32.mrb[158].mxu0 }
 0x45f   :  { %v10089_v60 = vpop.f32.mrb[59].mxu1  ;;  %v10091_v30 = vpop.f32.mrb[159].mxu0  ;;  %6336 = vmatmul.mubr.msk.f32.gmra.mrb[96].mxu1 %vm257_vm0, %v9595_v33  ;;  %v10644_v33 = vld [vmem:[#allocation21_spill] sm:$0xff] }
 0x460   :  { %6338 = vmatprep.mubr.msk.f32.mxu1 %vm257_vm0, %v9601_v1  ;;  %v10645_v1 = vld [vmem:[#allocation22_spill] sm:$0xff] }
 0x462   :  { %v5997_v39 = vpop.f32.mrb[72].mxu1  ;;  %v10097_v10 = vpop.f32.mrb[160].mxu0 }
 0x463   :  { %v2810_v18 = vpop.f32.mrb[73].mxu1  ;;  %v10099_v19 = vpop.f32.mrb[161].mxu0  ;;  %6339 = vmatmul.mubr.msk.f32.gmra.mrb[98].mxu1 %vm257_vm0, %v9607_v14  ;;  %v10646_v14 = vld [vmem:[#allocation23_spill] sm:$0xff] }
 0x464   :  { %v10103_v15 = vadd.f32 %v2810_v18, %v2621_v45  ;;  %6341 = vmatprep.mubr.msk.f32.mxu1 %vm257_vm0, %v9613_v41  ;;  %v10647_v41 = vld [vmem:[#allocation24_spill] sm:$0xff] }
 0x467   :  { %6342 = vmatmul.mubr.msk.f32.gmra.mrb[100].mxu1 %vm257_vm0, %v9619_v31  ;;  %v10648_v31 = vld [vmem:[#allocation25_spill] sm:$0xff] }
 0x468   :  { %6344 = vmatprep.mubr.msk.f32.mxu1 %vm257_vm0, %v9625_v56  ;;  %v10649_v56 = vld [vmem:[#allocation27_spill] sm:$0xff] }
 0x46b   :  { %6345 = vmatmul.mubr.msk.f32.gmra.mrb[102].mxu1 %vm257_vm0, %v9631_v61  ;;  %v10650_v61 = vld [vmem:[#allocation26_spill] sm:$0xff] }
 0x46c   :  { %6347 = vmatprep.mubr.msk.f32.mxu1 %vm257_vm0, %v10644_v33 }
 0x46f   :  { %6348 = vmatmul.mubr.msk.f32.gmra.mrb[104].mxu1 %vm257_vm0, %v9643_v50  ;;  %v10651_v50 = vld [vmem:[#allocation28_spill] sm:$0xff] }
 0x470   :  { %6358 = vmatprep.mubr.msk.f32.mxu1 %vm257_vm0, %v10645_v1 }
 0x473   :  { %6359 = vmatmul.mubr.msk.f32.vlgmr.msra.gmra.mrb[90].mxu1 %vm257_vm0, %v9661_v47  ;;  %v10652_v47 = vld [vmem:[#allocation29_spill] sm:$0xff] }
 0x474   :  { %6361 = vmatprep.mubr.msk.f32.mxu1 %vm257_vm0, %v9667_v46  ;;  %v10653_v46 = vld [vmem:[#allocation30_spill] sm:$0xff] }
 0x477   :  { %6362 = vmatmul.mubr.msk.f32.gmra.mrb[92].mxu1 %vm257_vm0, %v9679_v42  ;;  %v10654_v42 = vld [vmem:[#allocation4_spill] sm:$0xff] }
 0x478   :  { %6364 = vmatprep.mubr.msk.f32.mxu1 %vm257_vm0, %v9685_v62 }
 0x47b   :  { %6365 = vmatmul.mubr.msk.f32.gmra.mrb[94].mxu1 %vm257_vm0, %v9691_v28 }
 0x47c   :  { %6367 = vmatprep.mubr.msk.f32.mxu1 %vm257_vm0, %v10646_v14 }
 0x47f   :  { %6368 = vmatmul.mubr.msk.f32.gmra.mrb[96].mxu1 %vm257_vm0, %v10647_v41 }
 0x480   :  { %6370 = vmatprep.mubr.msk.f32.mxu1 %vm257_vm0, %v10648_v31 }
 0x483   :  { %6371 = vmatmul.mubr.msk.f32.gmra.mrb[98].mxu1 %vm257_vm0, %v10649_v56 }
 0x484   :  { %6373 = vmatprep.mubr.msk.f32.mxu1 %vm257_vm0, %v10650_v61 }
 0x487   :  { %6374 = vmatmul.mubr.msk.f32.gmra.mrb[100].mxu1 %vm257_vm0, %v10651_v50 }
 0x488   :  { %6376 = vmatprep.mubr.msk.f32.mxu1 %vm257_vm0, %v10652_v47 }
 0x48b   :  { %6377 = vmatmul.mubr.msk.f32.gmra.mrb[102].mxu1 %vm257_vm0, %v10653_v46 }
 0x48c   :  { %6379 = vmatprep.mubr.msk.f32.mxu1 %vm257_vm0, %v10654_v42 }
 0x48f   :  { %6380 = vmatmul.mubr.msk.f32.gmra.mrb[104].mxu1 %vm257_vm0, %v10643_v24 }
 0x4c6   :  { %v6104_v62 = vpop.f32.mrb[74].mxu1 }
 0x4c7   :  { %v4707_v28 = vrot.slane %v6104_v62, 1  ;;  %v3361_v8 = vpop.f32.mrb[75].mxu1 }
 0x4c8   :  { %v4706_v38 = vrot.slane %v3361_v8, 1 }
 0x4c9   :  { %v4735_v29 = vadd.f32 %v10013_v59, %v4707_v28 }
 0x4ca   :  { %v4734_v13 = vadd.f32 %v4706_v38, %v10017_v11  ;;  %v6107_v48 = vpop.f32.mrb[76].mxu1 }
 0x4cb   :  { %v4709_v58 = vrot.slane %v6107_v48, 1  ;;  %v3371_v2 = vpop.f32.mrb[77].mxu1  ;;  %v4749_v20 = vadd.f32 %v4735_v29, %v10029_v23 }
 0x4cc   :  { %v4708_v35 = vrot.slane %v3371_v2, 1  ;;  %v4748_v55 = vadd.f32 %v10015_v36, %v4734_v13 }
 0x4cd   :  { %v4737_v5 = vadd.f32 %v10023_v12, %v4709_v58 }
 0x4ce   :  { %v4736_v24 = vadd.f32 %v4708_v35, %v10027_v9  ;;  %v6110_v21 = vpop.f32.mrb[78].mxu1 }
 0x4cf   :  { %v4711_v45 = vrot.slane %v6110_v21, 1  ;;  %v3381_v22 = vpop.f32.mrb[79].mxu1  ;;  %v4751_v57 = vadd.f32 %v4737_v5, %v10047_v49 }
 0x4d0   :  { %v4710_v59 = vrot.slane %v3381_v22, 1  ;;  %v4750_v11 = vadd.f32 %v10025_v43, %v4736_v24 }
 0x4d1   :  { %v4739_v53 = vadd.f32 %v10035_v7, %v4711_v45 }
 0x4d2   :  { %v4738_v17 = vadd.f32 %v4710_v59, %v10045_v54  ;;  %v6113_v23 = vpop.f32.mrb[80].mxu1 }
 0x4d3   :  { %v3391_v0 = vpop.f32.mrb[81].mxu1  ;;  %v4753_v36 = vadd.f32 %v4739_v53, %v10055_v3 }
 0x4d4   :  { %v4712_v63 = vrot.slane %v3391_v0, 1  ;;  %v4752_v12 = vadd.f32 %v10037_v32, %v4738_v17 }
 0x4d6   :  { %v4740_v9 = vadd.f32 %v4712_v63, %v10059_v26  ;;  %v6116_v34 = vpop.f32.mrb[82].mxu1 }
 0x4d7   :  { %v4714_v39 = vrot.slane %v6116_v34, 1  ;;  %v3400_v18 = vpop.f32.mrb[83].mxu1 }
 0x4d8   :  { %v4713_v49 = vrot.slane %v3400_v18, 1  ;;  %v4754_v33 = vadd.f32 %v10053_v25, %v4740_v9 }
 0x4d9   :  { %v4742_v43 = vadd.f32 %v10063_v27, %v4714_v39 }
 0x4da   :  { %v4741_v7 = vadd.f32 %v4713_v49, %v10067_v40  ;;  %v6119_v54 = vpop.f32.mrb[84].mxu1 }
 0x4db   :  { %v4716_v1 = vrot.slane %v6119_v54, 1  ;;  %v3410_v14 = vpop.f32.mrb[85].mxu1  ;;  %v10166_v3 = vadd.f32 %v4742_v43, %v10079_v16 }
 0x4dc   :  { %v4715_v41 = vrot.slane %v3410_v14, 1  ;;  %v4755_v32 = vadd.f32 %v10065_v44, %v4741_v7 }
 0x4dd   :  { %v4744_v26 = vadd.f32 %v10073_v6, %v4716_v1 }
 0x4de   :  { %v4743_v31 = vadd.f32 %v4715_v41, %v10077_v4  ;;  %v6122_v56 = vpop.f32.mrb[86].mxu1 }
 0x4df   :  { %v4718_v61 = vrot.slane %v6122_v56, 1  ;;  %v3420_v25 = vpop.f32.mrb[87].mxu1  ;;  %v10172_v27 = vadd.f32 %v4744_v26, %v10091_v30 }
 0x4e0   :  { %v4717_v40 = vrot.slane %v3420_v25, 1  ;;  %v4757_v50 = vadd.f32 %v10075_v37, %v4743_v31 }
 0x4e1   :  { %v4746_v47 = vadd.f32 %v10085_v52, %v4718_v61 }
 0x4e2   :  { %v4745_v16 = vadd.f32 %v4717_v40, %v10089_v60  ;;  %v6125_v46 = vpop.f32.mrb[88].mxu1 }
 0x4e3   :  { %v3430_v42 = vpop.f32.mrb[89].mxu1  ;;  %v10178_v44 = vadd.f32 %v4746_v47, %v10099_v19 }
 0x4e4   :  { %v4719_v6 = vrot.slane %v3430_v42, 1  ;;  %v10181_v4 = vadd.f32 %v10087_v51, %v4745_v16 }
 0x4e6   :  { %v4747_v62 = vadd.f32 %v4719_v6, %v10103_v15 }
 0x4e8   :  { %v10185_v30 = vadd.f32 %v10097_v10, %v4747_v62 }
 0x546   :  { %v6360_v28 = vpop.f32.mrb[90].mxu1 }
 0x547   :  { %v4776_v37 = vrot.slane %v6360_v28, 1  ;;  %v4601_v8 = vpop.f32.mrb[91].mxu1 }
 0x549   :  { %v10187_v52 = vadd.f32 %v4776_v37, %v4748_v55 }
 0x54a   :  { %v6363_v60 = vpop.f32.mrb[92].mxu1 }
 0x54b   :  { %v4778_v38 = vrot.slane %v6363_v60, 1  ;;  %v4610_v29 = vpop.f32.mrb[93].mxu1  ;;  %v4861_v22 = vmul.f32 %v10187_v52, %v10187_v52  ;;  %v4819_v23 = vsel %vm4818_vm1, %v10187_v52, 0.0 }
 0x54c   :  { %v4777_v13 = vrot.slane %v4610_v29, 1 }
 0x54d   :  { %v10189_v19 = vadd.f32 %v4778_v38, %v4750_v11 }
 0x54e   :  { %v10191_v48 = vadd.f32 %v4777_v13, %v4749_v20  ;;  %v6366_v51 = vpop.f32.mrb[94].mxu1 }
 0x54f   :  { %v4780_v58 = vrot.slane %v6366_v51, 1  ;;  %v4620_v2 = vpop.f32.mrb[95].mxu1  ;;  %v4863_v11 = vmul.f32 %v10189_v19, %v10189_v19 }
 0x550   :  { %v4779_v15 = vrot.slane %v4620_v2, 1  ;;  %v4822_v9 = vsel %vm4818_vm1, %v10191_v48, 0.0 }
 0x551   :  { %v10193_v35 = vadd.f32 %v4780_v58, %v4752_v12  ;;  %v4825_v12 = vsel %vm4818_vm1, %v10189_v19, 0.0  ;;  %v4881_v18 = vsel %vm4818_vm1, %v4863_v11, 0.0 }
 0x552   :  { %v10195_v10 = vadd.f32 %v4779_v15, %v4751_v57  ;;  %v6369_v5 = vpop.f32.mrb[96].mxu1  ;;  %v4862_v57 = vmul.f32 %v10191_v48, %v10191_v48 }
 0x553   :  { %v4782_v24 = vrot.slane %v6369_v5, 1  ;;  %v4630_v55 = vpop.f32.mrb[97].mxu1  ;;  %v4865_v0 = vmul.f32 %v10193_v35, %v10193_v35  ;;  %v4831_v1 = vsel %vm4818_vm1, %v10193_v35, 0.0 }
 0x554   :  { %v4781_v21 = vrot.slane %v4630_v55, 1  ;;  %v4864_v34 = vmul.f32 %v10195_v10, %v10195_v10  ;;  %v4878_v54 = vsel %vm4818_vm1, %v4862_v57, 0.0  ;;  %v4828_v26 = vsel %vm4818_vm1, %v10195_v10, 0.0 }
 0x555   :  { %v10197_v45 = vadd.f32 %v4782_v24, %v4754_v33 }
 0x556   :  { %v10201_v20 = vadd.f32 %v4781_v21, %v4753_v36  ;;  %v6372_v59 = vpop.f32.mrb[98].mxu1  ;;  %v4875_v36 = vsel %vm4818_vm1, %v4861_v22, 0.0  ;;  %v4884_v61 = vsel %vm4818_vm1, %v4864_v34, 0.0 }
 0x557   :  { %v4783_v53 = vrot.slane %v6372_v59, 1  ;;  %v4640_v17 = vpop.f32.mrb[99].mxu1  ;;  %v4837_v25 = vsel %vm4818_vm1, %v10197_v45, 0.0  ;;  %v4867_v46 = vmul.f32 %v10197_v45, %v10197_v45 }
 0x558   :  { %v4834_v28 = vsel %vm4818_vm1, %v10201_v20, 0.0 }
 0x559   :  { %v10211_v63 = vadd.f32 %v4783_v53, %v4755_v32  ;;  %v4887_v32 = vsel %vm4818_vm1, %v4865_v0, 0.0 }
 0x55a   :  { %v6375_v39 = vpop.f32.mrb[100].mxu1 }
 0x55b   :  { %v4820_v49 = vsel %vm4818_vm1, %v10211_v63, 0.0  ;;  %v4868_v33 = vmul.f32 %v10211_v63, %v10211_v63  ;;  %v4785_v43 = vrot.slane %v6375_v39, 1  ;;  %v4649_v7 = vpop.f32.mrb[101].mxu1 }
 0x55c   :  { %v4821_v14 = vadd.f32 %v4820_v49, %v4819_v23  ;;  %v4784_v41 = vrot.slane %v4649_v7, 1  ;;  %v4866_v7 = vmul.f32 %v10201_v20, %v10201_v20 }
 0x55d   :  { %v4876_v31 = vsel %vm4818_vm1, %v4868_v33, 0.0  ;;  %v10232_v56 = vadd.f32 %v4785_v43, %v4757_v50  ;;  %v4893_v43 = vsel %vm4818_vm1, %v4867_v46, 0.0 }
 0x55e   :  { %v4877_v40 = vadd.f32 %v4876_v31, %v4875_v36  ;;  %v10238_v47 = vadd.f32 %v4784_v41, %v10166_v3  ;;  %v6378_v16 = vpop.f32.mrb[102].mxu1  ;;  %v4840_v51 = vsel %vm4818_vm1, %v4821_v14, 0.0 }
 0x55f   :  { %v4826_v42 = vsel %vm4818_vm1, %v10232_v56, 0.0  ;;  %v4870_v50 = vmul.f32 %v10232_v56, %v10232_v56  ;;  %v4787_v6 = vrot.slane %v6378_v16, 1  ;;  %v4659_v62 = vpop.f32.mrb[103].mxu1 }
 0x560   :  { %v4827_v37 = vadd.f32 %v4826_v42, %v4825_v12  ;;  %v4823_v3 = vsel %vm4818_vm1, %v10238_v47, 0.0  ;;  %v4869_v8 = vmul.f32 %v10238_v47, %v10238_v47  ;;  %v4786_v13 = vrot.slane %v4659_v62, 1 }
 0x561   :  { %v4882_v60 = vsel %vm4818_vm1, %v4870_v50, 0.0  ;;  %v4824_v38 = vadd.f32 %v4823_v3, %v4822_v9  ;;  %v10254_v29 = vadd.f32 %v4787_v6, %v10181_v4  ;;  %v4896_v58 = vsel %vm4818_vm1, %v4877_v40, 0.0 }
 0x562   :  { %v4883_v2 = vadd.f32 %v4882_v60, %v4881_v18  ;;  %v4879_v15 = vsel %vm4818_vm1, %v4869_v8, 0.0  ;;  %v6381_v5 = vpop.f32.mrb[104].mxu1  ;;  %v4843_v59 = vsel %vm4818_vm1, %v4827_v37, 0.0  ;;  %v10266_v17 = vadd.f32 %v4786_v13, %v10172_v27 }
 0x563   :  { %v4841_v24 = vsel %vm4818_vm1, %v4824_v38, 0.0  ;;  %v4880_v55 = vadd.f32 %v4879_v15, %v4878_v54  ;;  %v4832_v21 = vsel %vm4818_vm1, %v10254_v29, 0.0  ;;  %v4872_v22 = vmul.f32 %v10254_v29, %v10254_v29  ;;  %v4669_v4 = vpop.f32.mrb[105].mxu1 }
 0x564   :  { %v4842_v11 = vadd.f32 %v4841_v24, %v4840_v51  ;;  %v4833_v53 = vadd.f32 %v4832_v21, %v4831_v1  ;;  %v4789_v0 = vrot.slane %v6381_v5, 1  ;;  %v4788_v36 = vrot.slane %v4669_v4, 1 }
 0x565   :  { %v4897_v57 = vsel %vm4818_vm1, %v4880_v55, 0.0  ;;  %v4888_v23 = vsel %vm4818_vm1, %v4872_v22, 0.0  ;;  %v4899_v12 = vsel %vm4818_vm1, %v4883_v2, 0.0  ;;  %v4829_v39 = vsel %vm4818_vm1, %v10266_v17, 0.0 }
 0x566   :  { %v4898_v9 = vadd.f32 %v4897_v57, %v4896_v58  ;;  %v4889_v34 = vadd.f32 %v4888_v23, %v4887_v32  ;;  %v4830_v18 = vadd.f32 %v4829_v39, %v4828_v26  ;;  %v4844_v49 = vadd.f32 %v4843_v59, %v4842_v11 }
 0x567   :  { %v4871_v33 = vmul.f32 %v10266_v17, %v10266_v17  ;;  %v10276_v27 = vadd.f32 %v4789_v0, %v10185_v30  ;;  %v10282_v1 = vadd.f32 %v4788_v36, %v10178_v44  ;;  %v4847_v46 = vsel %vm4818_vm1, %v4833_v53, 0.0 }
 0x568   :  { %v4900_v54 = vadd.f32 %v4899_v12, %v4898_v9  ;;  %v4845_v14 = vsel %vm4818_vm1, %v4830_v18, 0.0  ;;  %v4890_v3 = vsel %vm4818_vm1, %v4866_v7, 0.0  ;;  %v4903_v60 = vsel %vm4818_vm1, %v4889_v34, 0.0  ;;  %v4919_v7 = vld [vmem:[%s10390_s6] sm:$0x1] }
 0x569   :  { %v4885_v41 = vsel %vm4818_vm1, %v4871_v33, 0.0  ;;  %v4838_v32 = vsel %vm4818_vm1, %v10276_v27, 0.0  ;;  %v4874_v30 = vmul.f32 %v10276_v27, %v10276_v27  ;;  %v4846_v26 = vadd.f32 %v4845_v14, %v4844_v49 }
 0x56a   :  { %v4886_v31 = vadd.f32 %v4885_v41, %v4884_v61  ;;  %v4839_v40 = vadd.f32 %v4838_v32, %v4837_v25  ;;  %v4835_v16 = vsel %vm4818_vm1, %v10282_v1, 0.0  ;;  %v4873_v50 = vmul.f32 %v10282_v1, %v10282_v1  ;;  %v4923_v41 = vld [vmem:[%s10391_s7] sm:$0x1] }
 0x56b   :  { %v4894_v44 = vsel %vm4818_vm1, %v4874_v30, 0.0  ;;  %v4836_v42 = vadd.f32 %v4835_v16, %v4834_v28  ;;  %v4848_v37 = vadd.f32 %v4847_v46, %v4846_v26  ;;  %v10655_v30 = vld [vmem:[#allocation14_spill] sm:$0xff] }
 0x56c   :  { %v4901_v6 = vsel %vm4818_vm1, %v4886_v31, 0.0  ;;  %v4895_v62 = vadd.f32 %v4894_v44, %v4893_v43  ;;  %v4891_v25 = vsel %vm4818_vm1, %v4873_v50, 0.0  ;;  %v4851_v28 = vsel %vm4818_vm1, %v4839_v40, 0.0 }
 0x56d   :  { %v4902_v8 = vadd.f32 %v4901_v6, %v4900_v54  ;;  %v4849_v61 = vsel %vm4818_vm1, %v4836_v42, 0.0  ;;  %v4892_v13 = vadd.f32 %v4891_v25, %v4890_v3 }
 0x56e   :  { %v4850_v38 = vadd.f32 %v4849_v61, %v4848_v37  ;;  %v4907_v5 = vsel %vm4818_vm1, %v4895_v62, 0.0 }
 0x56f   :  { %v4904_v51 = vadd.f32 %v4903_v60, %v4902_v8  ;;  %v4905_v2 = vsel %vm4818_vm1, %v4892_v13, 0.0 }
 0x570   :  { %v4852_v58 = vadd.f32 %v4851_v28, %v4850_v38 }
 0x571   :  { %v4906_v15 = vadd.f32 %v4905_v2, %v4904_v51 }
 0x572   :  { %v4853_v24 = vsel %vm4818_vm1, %v4852_v58, 0.0 }
 0x573   :  { %v4854_v55 = vrot.slane %v4853_v24, 4  ;;  %v4908_v21 = vadd.f32 %v4907_v5, %v4906_v15 }
 0x575   :  { %v4855_v22 = vadd.f32 %v4854_v55, %v4853_v24  ;;  %v4909_v4 = vsel %vm4818_vm1, %v4908_v21, 0.0 }
 0x576   :  { %v4910_v59 = vrot.slane %v4909_v4, 4 }
 0x577   :  { %v4856_v11 = vrot.slane %v4855_v22, 2 }
 0x578   :  { %v4911_v53 = vadd.f32 %v4910_v59, %v4909_v4 }
 0x579   :  { %v4857_v57 = vadd.f32 %v4856_v11, %v4855_v22 }
 0x57a   :  { %v4912_v23 = vrot.slane %v4911_v53, 2 }
 0x57b   :  { %v4858_v0 = vrot.slane %v4857_v57, 1 }
 0x57c   :  { %v4913_v36 = vadd.f32 %v4912_v23, %v4911_v53 }
 0x57d   :  { %v4859_v12 = vadd.f32 %v4858_v0, %v4857_v57 }
 0x57e   :  { %v4914_v9 = vrot.slane %v4913_v36, 1 }
 0x57f   :  { %v4860_v34 = vmul.f32 0.010204081, %v4859_v12 }
 0x580   :  { %v4915_v39 = vadd.f32 %v4914_v9, %v4913_v36 }
 0x581   :  { %v4917_v18 = vmul.f32 %v4860_v34, %v4860_v34 }
 0x582   :  { %v4916_v49 = vmul.f32 0.010204081, %v4915_v39 }
 0x584   :  { %v4918_v33 = vsub.f32 %v4916_v49, %v4917_v18 }
 0x586   :  { %v4920_v43 = vadd.f32 1e-05, %v4918_v33 }
 0x588   :  { %6753 = vrsqrt.f32 %v4920_v43 }
 0x592   :  { %v6754_v54 = vpop.eup %6753 }
 0x593   :  { %v4922_v14 = vmul.f32 %v6754_v54, %v4919_v7 }
 0x595   :  { %v4924_v32 = vmul.f32 %v4922_v14, %v4860_v34  ;;  %v4930_v26 = vrot.slane %v4922_v14, %v10655_v30 }
 0x597   :  { %v4925_v31 = vsub.f32 %v4923_v41, %v4924_v32  ;;  %v4932_v40 = vmul.f32 %v4930_v26, %v10187_v52  ;;  %v4933_v16 = vmul.f32 %v4930_v26, %v10191_v48  ;;  %v4934_v46 = vmul.f32 %v4930_v26, %v10189_v19 }
 0x598   :  { %v4935_v44 = vmul.f32 %v4930_v26, %v10195_v10  ;;  %v4936_v42 = vmul.f32 %v4930_v26, %v10193_v35  ;;  %v4937_v50 = vmul.f32 %v4930_v26, %v10201_v20  ;;  %v4938_v6 = vmul.f32 %v4930_v26, %v10197_v45 }
 0x599   :  { %v4939_v62 = vmul.f32 %v4930_v26, %v10211_v63  ;;  %v4940_v37 = vmul.f32 %v4930_v26, %v10238_v47  ;;  %v4941_v3 = vmul.f32 %v4930_v26, %v10232_v56  ;;  %v4942_v52 = vmul.f32 %v4930_v26, %v10266_v17 }
 0x59a   :  { %v4943_v48 = vmul.f32 %v4930_v26, %v10254_v29  ;;  %v4944_v19 = vmul.f32 %v4930_v26, %v10282_v1  ;;  %v4945_v10 = vmul.f32 %v4930_v26, %v10276_v27  ;;  %v4950_v35 = vrot.slane %v4925_v31, %v10655_v30 }
 0x59c   :  { %v4952_v8 = vadd.f32 %v4950_v35, %v4932_v40  ;;  %v4953_v20 = vadd.f32 %v4950_v35, %v4933_v16  ;;  %v4954_v61 = vadd.f32 %v4950_v35, %v4934_v46  ;;  %v4955_v45 = vadd.f32 %v4950_v35, %v4935_v44 }
 0x59d   :  { %v4956_v25 = vadd.f32 %v4950_v35, %v4936_v42  ;;  %v4957_v63 = vadd.f32 %v4950_v35, %v4937_v50  ;;  %v4958_v60 = vadd.f32 %v4950_v35, %v4938_v6  ;;  %v4959_v47 = vadd.f32 %v4950_v35, %v4939_v62 }
 0x59e   :  { %v4960_v38 = vadd.f32 %v4950_v35, %v4940_v37  ;;  %v4961_v56 = vadd.f32 %v4950_v35, %v4941_v3  ;;  %v4962_v13 = vadd.f32 %v4950_v35, %v4942_v52  ;;  %v4963_v17 = vadd.f32 %v4950_v35, %v4943_v48 }
 0x59f   :  { %v4964_v28 = vadd.f32 %v4950_v35, %v4944_v19  ;;  %v4965_v29 = vadd.f32 %v4950_v35, %v4945_v10  ;;  %v4966_v51 = vmax.f32 %v4952_v8, 0.0  ;;  %v4967_v1 = vmax.f32 %v4953_v20, 0.0 }
 0x5a0   :  { %v4968_v58 = vmax.f32 %v4954_v61, 0.0  ;;  %v4969_v27 = vmax.f32 %v4955_v45, 0.0  ;;  %v4970_v2 = vmax.f32 %v4956_v25, 0.0  ;;  %v4971_v15 = vmax.f32 %v4957_v63, 0.0 }
 0x5a1   :  { %v4972_v5 = vmax.f32 %v4958_v60, 0.0  ;;  %v4973_v24 = vmax.f32 %v4959_v47, 0.0  ;;  %v4974_v55 = vmax.f32 %v4960_v38, 0.0  ;;  %v4975_v21 = vmax.f32 %v4961_v56, 0.0  ;;  %4980 = vst.msk [vmem:[%s10392_s8] sm:$0x7f] %vm4818_vm1, %v4966_v51 }
 0x5a2   :  { %4981 = vst.msk [vmem:[%s10392_s8 + $0x8] sm:$0x7f] %vm4818_vm1, %v4967_v1  ;;  %v4976_v22 = vmax.f32 %v4962_v13, 0.0  ;;  %v4977_v4 = vmax.f32 %v4963_v17, 0.0  ;;  %v4978_v59 = vmax.f32 %v4964_v28, 0.0  ;;  %v4979_v11 = vmax.f32 %v4965_v29, 0.0 }
 0x5a3   :  { %4982 = vst.msk [vmem:[%s10392_s8 + $0x10] sm:$0x7f] %vm4818_vm1, %v4968_v58  ;;  %4983 = vst.msk [vmem:[%s10392_s8 + $0x18] sm:$0x7f] %vm4818_vm1, %v4969_v27 }
 0x5a4   :  { %4984 = vst.msk [vmem:[%s10392_s8 + $0x20] sm:$0x7f] %vm4818_vm1, %v4970_v2  ;;  %4985 = vst.msk [vmem:[%s10392_s8 + $0x28] sm:$0x7f] %vm4818_vm1, %v4971_v15 }
 0x5a5   :  { %4986 = vst.msk [vmem:[%s10392_s8 + $0x30] sm:$0x7f] %vm4818_vm1, %v4972_v5  ;;  %4987 = vst.msk [vmem:[%s10392_s8 + $0x38] sm:$0x7f] %vm4818_vm1, %v4973_v24 }
 0x5a6   :  { %4988 = vst.msk [vmem:[%s10392_s8 + $0x40] sm:$0x7f] %vm4818_vm1, %v4974_v55  ;;  %4989 = vst.msk [vmem:[%s10392_s8 + $0x48] sm:$0x7f] %vm4818_vm1, %v4975_v21 }
 0x5a7   :  { %4990 = vst.msk [vmem:[%s10392_s8 + $0x50] sm:$0x7f] %vm4818_vm1, %v4976_v22  ;;  %4991 = vst.msk [vmem:[%s10392_s8 + $0x58] sm:$0x7f] %vm4818_vm1, %v4977_v4 }
 0x5a8   :  { %4992 = vst.msk [vmem:[%s10392_s8 + $0x60] sm:$0x7f] %vm4818_vm1, %v4978_v59  ;;  %4993 = vst.msk [vmem:[%s10392_s8 + $0x68] sm:$0x7f] %vm4818_vm1, %v4979_v11 }

</bundles_post_ra>
